<compile_context>
chip_gen: v7x
topology: tpu7x:2x2x1
jax: 0.10.0
libtpu: 0.0.40
codegen_flags: <defaults>
</compile_context>

<pallas_src>
import jax
import jax.numpy as jnp
from jax.experimental import pallas as pl
from jax.experimental.pallas import tpu as pltpu

IMG = 784              # flattened 28x28 image
IMG_PAD = 896          # 784 padded to a multiple of 128 (zero weight rows)
EMB = 10               # label-embedding width
LBL_PAD = 128          # 10 padded to 128 lanes (zero weight rows)
H1, H2, H3 = 1024, 512, 256
OUT_PAD = 128          # final layer (width 1) padded to 128 lanes
TB_MAX = 256           # batch tile: fills the MXU M dim on v5e/v6e/v7x


def _round_up(n, m):
    return ((n + m - 1) // m) * m


def _disc_kernel(x_ref, c_ref,
                 w1i_ref, w1l_ref, b1_ref,
                 w2_ref, b2_ref, w3_ref, b3_ref, w4_ref, b4_ref,
                 o_ref):
    """Per-batch-tile fused MLP: 3x (Linear + LeakyReLU(0.2)) + Linear + Sigmoid."""

    def leaky(h):                      # keep VPU math in f32 (v5e has no bf16 VPU)
        return jnp.where(h > 0, h, 0.2 * h)

    # Layer 1: image part + label part (the PyTorch concat, folded).
    h = jnp.dot(x_ref[...], w1i_ref[...], preferred_element_type=jnp.float32)
    h = h + jnp.dot(c_ref[...], w1l_ref[...], preferred_element_type=jnp.float32)
    h = leaky(h + b1_ref[...]).astype(jnp.bfloat16)
    # Dropout(0.3) -> identity in eval mode.
    h = jnp.dot(h, w2_ref[...], preferred_element_type=jnp.float32) + b2_ref[...]
    h = leaky(h).astype(jnp.bfloat16)
    h = jnp.dot(h, w3_ref[...], preferred_element_type=jnp.float32) + b3_ref[...]
    h = leaky(h).astype(jnp.bfloat16)
    h = jnp.dot(h, w4_ref[...], preferred_element_type=jnp.float32) + b4_ref[...]
    o_ref[...] = 1.0 / (1.0 + jnp.exp(-h))           # sigmoid in f32 (EUP exp)


@jax.jit
def discriminator_forward(x, labels, params):
    """x: (B, 1, 28, 28) float32 NCHW; labels: (B,) int32 in [0, 10)."""
    B = x.shape[0]
    tb = min(TB_MAX, _round_up(B, 16))        # bf16 sublane packing = 16 rows
    b_pad = _round_up(B, tb)

    # Glue: flatten / gather label embedding, zero-pad lanes + batch, cast bf16.
    x_flat = x.reshape(B, IMG)
    x_pad = jnp.pad(x_flat, ((0, b_pad - B), (0, IMG_PAD - IMG))).astype(jnp.bfloat16)
    c = jnp.take(params["emb"], labels, axis=0)                        # (B, 10)
    c_pad = jnp.pad(c, ((0, b_pad - B), (0, LBL_PAD - EMB))).astype(jnp.bfloat16)

    grid = (b_pad // tb,)

    def row_spec(shape):               # batch-streamed tiles
        return pl.BlockSpec(shape, lambda i: (i, 0))

    def res_spec(shape):               # weights: resident across grid steps
        return pl.BlockSpec(shape, lambda i: (0, 0))

    weight_bytes = 2 * (IMG_PAD * H1 + LBL_PAD * H1 + H1 * H2 + H2 * H3 + H3 * OUT_PAD)
    bias_bytes = 4 * (H1 + H2 + H3 + OUT_PAD)
    cost = pl.CostEstimate(
        flops=2 * b_pad * (IMG_PAD * H1 + LBL_PAD * H1 + H1 * H2 + H2 * H3 + H3 * OUT_PAD),
        transcendentals=b_pad * OUT_PAD,
        bytes_accessed=weight_bytes + bias_bytes
        + b_pad * (IMG_PAD + LBL_PAD) * 2 + b_pad * OUT_PAD * 4,
    )

    out = pl.pallas_call(
        _disc_kernel,
        out_shape=jax.ShapeDtypeStruct((b_pad, OUT_PAD), jnp.float32),
        grid=grid,
        in_specs=[
            row_spec((tb, IMG_PAD)),        # x tile   (streamed, bf16)
            row_spec((tb, LBL_PAD)),        # c tile   (streamed, bf16)
            res_spec((IMG_PAD, H1)),        # w1 image rows (bf16, resident)
            res_spec((LBL_PAD, H1)),        # w1 label rows (bf16, resident)
            res_spec((1, H1)),              # b1 (f32)
            res_spec((H1, H2)),             # w2
            res_spec((1, H2)),              # b2
            res_spec((H2, H3)),             # w3
            res_spec((1, H3)),              # b3
            res_spec((H3, OUT_PAD)),        # w4 (only column 0 is real)
            res_spec((1, OUT_PAD)),         # b4
        ],
        out_specs=row_spec((tb, OUT_PAD)),
        compiler_params=pltpu.CompilerParams(
            dimension_semantics=("parallel",),     # v7x: shard batch over 2 TCs
            vmem_limit_bytes=32 * 1024 * 1024),    # headroom for tb=256 on v5e
        cost_estimate=cost,
    )(x_pad, c_pad,
      params["w1_img"], params["w1_lbl"], params["b1"],
      params["w2"], params["b2"],
      params["w3"], params["b3"],
      params["w4"], params["b4"])

    # Column 0 holds the real (width-1) output; squeeze like the PyTorch module.
    return out[:B, 0]


def init_params(key):
    ks = jax.random.split(key, 9)

    def lin(kw, kb, fan_in, fan_out, pad_out=None):
        bound = 1.0 / jnp.sqrt(fan_in)
        w = jax.random.uniform(kw, (fan_in, fan_out), jnp.float32, -bound, bound)
        b = jax.random.uniform(kb, (1, fan_out), jnp.float32, -bound, bound)
        if pad_out is not None and pad_out > fan_out:
            w = jnp.pad(w, ((0, 0), (0, pad_out - fan_out)))
            b = jnp.pad(b, ((0, 0), (0, pad_out - fan_out)))
        return w, b

    emb = jax.random.normal(ks[0], (10, 10), jnp.float32)          # nn.Embedding(10,10)
    w1, b1 = lin(ks[1], ks[2], IMG + EMB, H1)                       # (794, 1024)
    w2, b2 = lin(ks[3], ks[4], H1, H2)                              # (1024, 512)
    w3, b3 = lin(ks[5], ks[6], H2, H3)                              # (512, 256)
    w4, b4 = lin(ks[7], ks[8], H3, 1, pad_out=OUT_PAD)              # (256, 128) col0 real

    # Split W1 into image / label halves and zero-pad to lane-aligned shapes;
    # weights stored in bf16, biases stay f32 (added to the f32 accumulator).
    w1_img = jnp.pad(w1[:IMG], ((0, IMG_PAD - IMG), (0, 0))).astype(jnp.bfloat16)
    w1_lbl = jnp.pad(w1[IMG:], ((0, LBL_PAD - EMB), (0, 0))).astype(jnp.bfloat16)
    return dict(emb=emb,
                w1_img=w1_img, w1_lbl=w1_lbl, b1=b1,
                w2=w2.astype(jnp.bfloat16), b2=b2,
                w3=w3.astype(jnp.bfloat16), b3=b3,
                w4=w4.astype(jnp.bfloat16), b4=b4)


if __name__ == "__main__":
    key = jax.random.PRNGKey(0)
    k_x, k_l, k_p = jax.random.split(key, 3)

    B = 8
    x = jax.random.normal(k_x, (B, 1, 28, 28), jnp.float32)
    labels = jax.random.randint(k_l, (B,), 0, 10, jnp.int32)
    params = init_params(k_p)

    out = discriminator_forward(x, labels, params)
    out = jax.block_until_ready(out)
    assert out.shape == (B,)
    assert bool(jnp.all(jnp.isfinite(out)))
    assert bool(jnp.all((out >= 0.0) & (out <= 1.0)))
    print("KERNEL_OK")
</pallas_src>

<mosaic_0001>
module attributes {stable_mosaic.version = 11 : i64} {
  func.func @_disc_kernel(%arg0: i32, %arg1: memref<16x896xbf16, #tpu.memory_space<vmem>>, %arg2: memref<16x128xbf16, #tpu.memory_space<vmem>>, %arg3: memref<896x1024xbf16, #tpu.memory_space<vmem>>, %arg4: memref<128x1024xbf16, #tpu.memory_space<vmem>>, %arg5: memref<1x1024xf32, #tpu.memory_space<vmem>>, %arg6: memref<1024x512xbf16, #tpu.memory_space<vmem>>, %arg7: memref<1x512xf32, #tpu.memory_space<vmem>>, %arg8: memref<512x256xbf16, #tpu.memory_space<vmem>>, %arg9: memref<1x256xf32, #tpu.memory_space<vmem>>, %arg10: memref<256x128xbf16, #tpu.memory_space<vmem>>, %arg11: memref<1x128xf32, #tpu.memory_space<vmem>>, %arg12: memref<16x128xf32, #tpu.memory_space<vmem>>) attributes {dimension_semantics = [#tpu.dimension_semantics<parallel>], iteration_bounds = array<i64: 1>, scalar_prefetch = 0 : i64, scratch_operands = 0 : i64, tpu.core_type = #tpu.core_type<tc>, window_params = [{transform_indices = @transform_0, window_bounds = array<i64: 16, 896>}, {transform_indices = @transform_1, window_bounds = array<i64: 16, 128>}, {pipeline_mode = #tpu.pipeline_mode<synchronous>, transform_indices = @transform_2, window_bounds = array<i64: 896, 1024>}, {pipeline_mode = #tpu.pipeline_mode<synchronous>, transform_indices = @transform_3, window_bounds = array<i64: 128, 1024>}, {pipeline_mode = #tpu.pipeline_mode<synchronous>, transform_indices = @transform_4, window_bounds = array<i64: 1, 1024>}, {pipeline_mode = #tpu.pipeline_mode<synchronous>, transform_indices = @transform_5, window_bounds = array<i64: 1024, 512>}, {pipeline_mode = #tpu.pipeline_mode<synchronous>, transform_indices = @transform_6, window_bounds = array<i64: 1, 512>}, {pipeline_mode = #tpu.pipeline_mode<synchronous>, transform_indices = @transform_7, window_bounds = array<i64: 512, 256>}, {pipeline_mode = #tpu.pipeline_mode<synchronous>, transform_indices = @transform_8, window_bounds = array<i64: 1, 256>}, {pipeline_mode = #tpu.pipeline_mode<synchronous>, transform_indices = @transform_9, window_bounds = array<i64: 256, 128>}, {pipeline_mode = #tpu.pipeline_mode<synchronous>, transform_indices = @transform_10, window_bounds = array<i64: 1, 128>}, {transform_indices = @transform_11, window_bounds = array<i64: 16, 128>}]} {
    %c0 = arith.constant 0 : index
    %c0_0 = arith.constant 0 : index
    %0 = vector.load %arg1[%c0, %c0_0] : memref<16x896xbf16, #tpu.memory_space<vmem>>, vector<16x896xbf16>
    %c0_1 = arith.constant 0 : index
    %c0_2 = arith.constant 0 : index
    %1 = vector.load %arg3[%c0_1, %c0_2] : memref<896x1024xbf16, #tpu.memory_space<vmem>>, vector<896x1024xbf16>
    %cst = arith.constant dense<0.000000e+00> : vector<16x1024xf32>
    %2 = tpu.matmul %0, %1, %cst {dimension_numbers = #tpu.dot_dimension_numbers<[1], [0], [0], [1], [0, 0, 1, 1], [], []>} : vector<16x896xbf16>, vector<896x1024xbf16>, vector<16x1024xf32> -> vector<16x1024xf32>
    %c0_3 = arith.constant 0 : index
    %c0_4 = arith.constant 0 : index
    %3 = vector.load %arg2[%c0_3, %c0_4] : memref<16x128xbf16, #tpu.memory_space<vmem>>, vector<16x128xbf16>
    %c0_5 = arith.constant 0 : index
    %c0_6 = arith.constant 0 : index
    %4 = vector.load %arg4[%c0_5, %c0_6] : memref<128x1024xbf16, #tpu.memory_space<vmem>>, vector<128x1024xbf16>
    %cst_7 = arith.constant dense<0.000000e+00> : vector<16x1024xf32>
    %5 = tpu.matmul %3, %4, %cst_7 {dimension_numbers = #tpu.dot_dimension_numbers<[1], [0], [0], [1], [0, 0, 1, 1], [], []>} : vector<16x128xbf16>, vector<128x1024xbf16>, vector<16x1024xf32> -> vector<16x1024xf32>
    %6 = arith.addf %2, %5 : vector<16x1024xf32>
    %c0_8 = arith.constant 0 : index
    %c0_9 = arith.constant 0 : index
    %7 = vector.load %arg5[%c0_8, %c0_9] : memref<1x1024xf32, #tpu.memory_space<vmem>>, vector<1x1024xf32>
    %8 = vector.broadcast %7 : vector<1x1024xf32> to vector<16x1024xf32>
    %9 = arith.addf %6, %8 : vector<16x1024xf32>
    %cst_10 = arith.constant 0.000000e+00 : f32
    %10 = vector.broadcast %cst_10 : f32 to vector<16x1024xf32>
    %11 = arith.cmpf ogt, %9, %10 : vector<16x1024xf32>
    %cst_11 = arith.constant 2.000000e-01 : f32
    %12 = vector.broadcast %cst_11 : f32 to vector<16x1024xf32>
    %13 = arith.mulf %12, %9 : vector<16x1024xf32>
    %14 = arith.select %11, %9, %13 : vector<16x1024xi1>, vector<16x1024xf32>
    %15 = arith.truncf %14 : vector<16x1024xf32> to vector<16x1024xbf16>
    %c0_12 = arith.constant 0 : index
    %c0_13 = arith.constant 0 : index
    %16 = vector.load %arg6[%c0_12, %c0_13] : memref<1024x512xbf16, #tpu.memory_space<vmem>>, vector<1024x512xbf16>
    %cst_14 = arith.constant dense<0.000000e+00> : vector<16x512xf32>
    %17 = tpu.matmul %15, %16, %cst_14 {dimension_numbers = #tpu.dot_dimension_numbers<[1], [0], [0], [1], [0, 0, 1, 1], [], []>} : vector<16x1024xbf16>, vector<1024x512xbf16>, vector<16x512xf32> -> vector<16x512xf32>
    %c0_15 = arith.constant 0 : index
    %c0_16 = arith.constant 0 : index
    %18 = vector.load %arg7[%c0_15, %c0_16] : memref<1x512xf32, #tpu.memory_space<vmem>>, vector<1x512xf32>
    %19 = vector.broadcast %18 : vector<1x512xf32> to vector<16x512xf32>
    %20 = arith.addf %17, %19 : vector<16x512xf32>
    %cst_17 = arith.constant 0.000000e+00 : f32
    %21 = vector.broadcast %cst_17 : f32 to vector<16x512xf32>
    %22 = arith.cmpf ogt, %20, %21 : vector<16x512xf32>
    %cst_18 = arith.constant 2.000000e-01 : f32
    %23 = vector.broadcast %cst_18 : f32 to vector<16x512xf32>
    %24 = arith.mulf %23, %20 : vector<16x512xf32>
    %25 = arith.select %22, %20, %24 : vector<16x512xi1>, vector<16x512xf32>
    %26 = arith.truncf %25 : vector<16x512xf32> to vector<16x512xbf16>
    %c0_19 = arith.constant 0 : index
    %c0_20 = arith.constant 0 : index
    %27 = vector.load %arg8[%c0_19, %c0_20] : memref<512x256xbf16, #tpu.memory_space<vmem>>, vector<512x256xbf16>
    %cst_21 = arith.constant dense<0.000000e+00> : vector<16x256xf32>
    %28 = tpu.matmul %26, %27, %cst_21 {dimension_numbers = #tpu.dot_dimension_numbers<[1], [0], [0], [1], [0, 0, 1, 1], [], []>} : vector<16x512xbf16>, vector<512x256xbf16>, vector<16x256xf32> -> vector<16x256xf32>
    %c0_22 = arith.constant 0 : index
    %c0_23 = arith.constant 0 : index
    %29 = vector.load %arg9[%c0_22, %c0_23] : memref<1x256xf32, #tpu.memory_space<vmem>>, vector<1x256xf32>
    %30 = vector.broadcast %29 : vector<1x256xf32> to vector<16x256xf32>
    %31 = arith.addf %28, %30 : vector<16x256xf32>
    %cst_24 = arith.constant 0.000000e+00 : f32
    %32 = vector.broadcast %cst_24 : f32 to vector<16x256xf32>
    %33 = arith.cmpf ogt, %31, %32 : vector<16x256xf32>
    %cst_25 = arith.constant 2.000000e-01 : f32
    %34 = vector.broadcast %cst_25 : f32 to vector<16x256xf32>
    %35 = arith.mulf %34, %31 : vector<16x256xf32>
    %36 = arith.select %33, %31, %35 : vector<16x256xi1>, vector<16x256xf32>
    %37 = arith.truncf %36 : vector<16x256xf32> to vector<16x256xbf16>
    %c0_26 = arith.constant 0 : index
    %c0_27 = arith.constant 0 : index
    %38 = vector.load %arg10[%c0_26, %c0_27] : memref<256x128xbf16, #tpu.memory_space<vmem>>, vector<256x128xbf16>
    %cst_28 = arith.constant dense<0.000000e+00> : vector<16x128xf32>
    %39 = tpu.matmul %37, %38, %cst_28 {dimension_numbers = #tpu.dot_dimension_numbers<[1], [0], [0], [1], [0, 0, 1, 1], [], []>} : vector<16x256xbf16>, vector<256x128xbf16>, vector<16x128xf32> -> vector<16x128xf32>
    %c0_29 = arith.constant 0 : index
    %c0_30 = arith.constant 0 : index
    %40 = vector.load %arg11[%c0_29, %c0_30] : memref<1x128xf32, #tpu.memory_space<vmem>>, vector<1x128xf32>
    %41 = vector.broadcast %40 : vector<1x128xf32> to vector<16x128xf32>
    %42 = arith.addf %39, %41 : vector<16x128xf32>
    %cst_31 = arith.constant 0.000000e+00 : f32
    %43 = vector.broadcast %cst_31 : f32 to vector<16x128xf32>
    %44 = arith.subf %43, %42 : vector<16x128xf32>
    %45 = math.exp %44 : vector<16x128xf32>
    %cst_32 = arith.constant 1.000000e+00 : f32
    %46 = vector.broadcast %cst_32 : f32 to vector<16x128xf32>
    %47 = arith.addf %46, %45 : vector<16x128xf32>
    %cst_33 = arith.constant 1.000000e+00 : f32
    %48 = vector.broadcast %cst_33 : f32 to vector<16x128xf32>
    %49 = arith.divf %48, %47 : vector<16x128xf32>
    %c0_34 = arith.constant 0 : index
    %c0_35 = arith.constant 0 : index
    %50 = vector.load %arg12[%c0_34, %c0_35] : memref<16x128xf32, #tpu.memory_space<vmem>>, vector<16x128xf32>
    tpu.vector_store %arg12[%c0_34, %c0_35], %49 {strides = array<i32>} : memref<16x128xf32, #tpu.memory_space<vmem>>, vector<16x128xf32>,
    return
  }
  func.func @transform_0(%arg0: i32) -> (i32, i32) {
    %c0_i32 = arith.constant 0 : i32
    %c0_i32_0 = arith.constant 0 : i32
    return %arg0, %c0_i32 : i32, i32
  }
  func.func @transform_1(%arg0: i32) -> (i32, i32) {
    %c0_i32 = arith.constant 0 : i32
    %c0_i32_0 = arith.constant 0 : i32
    return %arg0, %c0_i32 : i32, i32
  }
  func.func @transform_2(%arg0: i32) -> (i32, i32) {
    %c0_i32 = arith.constant 0 : i32
    %c0_i32_0 = arith.constant 0 : i32
    %c0_i32_1 = arith.constant 0 : i32
    return %c0_i32, %c0_i32_0 : i32, i32
  }
  func.func @transform_3(%arg0: i32) -> (i32, i32) {
    %c0_i32 = arith.constant 0 : i32
    %c0_i32_0 = arith.constant 0 : i32
    %c0_i32_1 = arith.constant 0 : i32
    return %c0_i32, %c0_i32_0 : i32, i32
  }
  func.func @transform_4(%arg0: i32) -> (i32, i32) {
    %c0_i32 = arith.constant 0 : i32
    %c0_i32_0 = arith.constant 0 : i32
    %c0_i32_1 = arith.constant 0 : i32
    return %c0_i32, %c0_i32_0 : i32, i32
  }
  func.func @transform_5(%arg0: i32) -> (i32, i32) {
    %c0_i32 = arith.constant 0 : i32
    %c0_i32_0 = arith.constant 0 : i32
    %c0_i32_1 = arith.constant 0 : i32
    return %c0_i32, %c0_i32_0 : i32, i32
  }
  func.func @transform_6(%arg0: i32) -> (i32, i32) {
    %c0_i32 = arith.constant 0 : i32
    %c0_i32_0 = arith.constant 0 : i32
    %c0_i32_1 = arith.constant 0 : i32
    return %c0_i32, %c0_i32_0 : i32, i32
  }
  func.func @transform_7(%arg0: i32) -> (i32, i32) {
    %c0_i32 = arith.constant 0 : i32
    %c0_i32_0 = arith.constant 0 : i32
    %c0_i32_1 = arith.constant 0 : i32
    return %c0_i32, %c0_i32_0 : i32, i32
  }
  func.func @transform_8(%arg0: i32) -> (i32, i32) {
    %c0_i32 = arith.constant 0 : i32
    %c0_i32_0 = arith.constant 0 : i32
    %c0_i32_1 = arith.constant 0 : i32
    return %c0_i32, %c0_i32_0 : i32, i32
  }
  func.func @transform_9(%arg0: i32) -> (i32, i32) {
    %c0_i32 = arith.constant 0 : i32
    %c0_i32_0 = arith.constant 0 : i32
    %c0_i32_1 = arith.constant 0 : i32
    return %c0_i32, %c0_i32_0 : i32, i32
  }
  func.func @transform_10(%arg0: i32) -> (i32, i32) {
    %c0_i32 = arith.constant 0 : i32
    %c0_i32_0 = arith.constant 0 : i32
    %c0_i32_1 = arith.constant 0 : i32
    return %c0_i32, %c0_i32_0 : i32, i32
  }
  func.func @transform_11(%arg0: i32) -> (i32, i32) {
    %c0_i32 = arith.constant 0 : i32
    %c0_i32_0 = arith.constant 0 : i32
    return %arg0, %c0_i32 : i32, i32
  }
}

</mosaic_0001>

<bundles_post_ra>
// kernel: discriminator_forward.1
= control target key start
LH: loop header
LB: loop body
LE: loop exit
PB: predicated region body
PF: predicated region fallthrough
CT: control target
= control target key end

     0   :  { %16 = vsyncpa [#allocation3], 0  ;;  %s9006_s0 = inlined_call_operand.vmem [shape: bf16[16,896], index: 0, kind: input, shape index: {}]   ;;  %s9007_s1 = inlined_call_operand.vmem [shape: bf16[16,128], index: 1, kind: input, shape index: {}]   ;;  %s9008_s2 = inlined_call_operand.hbm [shape: bf16[896,1024], index: 2, kind: input, shape index: {}]   ;;  %s9009_s3 = inlined_call_operand.hbm [shape: bf16[128,1024], index: 3, kind: input, shape index: {}]   ;;  %s9010_s4 = inlined_call_operand.hbm [shape: f32[1,1024], index: 4, kind: input, shape index: {}]   ;;  %s9011_s5 = inlined_call_operand.hbm [shape: bf16[1024,512], index: 5, kind: input, shape index: {}]   ;;  %s9012_s6 = inlined_call_operand.hbm [shape: f32[1,512], index: 6, kind: input, shape index: {}]   ;;  %s9013_s7 = inlined_call_operand.hbm [shape: bf16[512,256], index: 7, kind: input, shape index: {}]   ;;  %s9014_s8 = inlined_call_operand.hbm [shape: f32[1,256], index: 8, kind: input, shape index: {}]   ;;  %s9015_s9 = inlined_call_operand.hbm [shape: bf16[256,128], index: 9, kind: input, shape index: {}]   ;;  %s9016_s10 = inlined_call_operand.hbm [shape: f32[1,128], index: 10, kind: input, shape index: {}]   ;;  %s9017_s11 = inlined_call_operand.vmem [shape: f32[16,128], index: 11, kind: output, shape index: {}]  }
   0x1   :  { %17 = vsyncpa [#allocation5], 0 }
   0x2   :  { %18 = vsyncpa [#allocation8], 0 }
   0x3   :  { %19 = vsyncpa [#allocation11], 0 }
   0x4   :  { %20 = vsyncpa [#allocation14], 0  ;;  %s8608_s17 = smov [#allocation4]   ;;  %s8609_s19 = smov [#allocation7]  }
   0x5   :  { %s42_s18 = sshll.u32 %s8608_s17, 4  ;;  %s64_s20 = sshll.u32 %s8609_s19, 4  ;;  %s43_s18 = int_to_ptr.vmem [resolvable:$true] %s42_s18  ;;  %s8686_s20 = int_to_ptr.vmem [resolvable:$true] %s64_s20 }
   0x6   :  { %s8400_s23 = scalar_lea.hbm %s9009_s3, 8192 }
   0x7   :  { %p8401_p0 = scmp.ne.s32.totalorder %s9009_s3, %s8400_s23  ;;  %p8404_p1 = scmp.lt.u32.totalorder %s8400_s23, %s9009_s3 }
   0x9   :  { %p8406_p2 = pnand %p8404_p1, %p8401_p0 }
   0xb   :  { %8409 = shalt.err (!%p8406_p2)
}
   0xc   :  { %s8410_s28 = scalar_lea.vmem %s43_s18, 8192  ;;  %p8415_p4 = scmp.lt.s32.totalorder %s43_s18, %s43_s18 }
   0xd   :  { %p8411_p3 = scmp.ne.s32.totalorder %s43_s18, %s8410_s28  ;;  %p8416_p5 = scmp.lt.s32.totalorder %s8410_s28, %s8410_s28 }
   0xf   :  { %p8417_p6 = por %p8416_p5, %p8415_p4 }
  0x11   :  { %p8418_p7 = pnand %p8417_p6, %p8411_p3 }
  0x13   :  { %8421 = shalt.err (!%p8418_p7)
}
  0x14   :  { %s8610_s29 = smov 512   ;;  %s8611_s30 = smov 32  }
  0x15   :  { %48 = dma.hbm_to_vmem [thread:$0]  %s9009_s3, 8192, %s43_s18, [#allocation5], %s8610_s29, %s8610_s29, %s8611_s30  }
  0x16   :  { %s8422_s16 = scalar_lea.hbm %s9011_s5, 32768 }
  0x17   :  { %p8423_p8 = scmp.ne.s32.totalorder %s9011_s5, %s8422_s16  ;;  %p8426_p9 = scmp.lt.u32.totalorder %s8422_s16, %s9011_s5 }
  0x19   :  { %p8428_p10 = pnand %p8426_p9, %p8423_p8 }
  0x1b   :  { %8431 = shalt.err (!%p8428_p10)
}
  0x1c   :  { %s8432_s23 = scalar_lea.vmem %s8686_s20, 32768  ;;  %p8437_p12 = scmp.lt.s32.totalorder %s8686_s20, %s8686_s20 }
  0x1d   :  { %p8433_p11 = scmp.ne.s32.totalorder %s8686_s20, %s8432_s23  ;;  %p8438_p13 = scmp.lt.s32.totalorder %s8432_s23, %s8432_s23 }
  0x1f   :  { %p8439_p0 = por %p8438_p13, %p8437_p12 }
  0x21   :  { %p8440_p1 = pnand %p8439_p0, %p8433_p11 }
  0x23   :  { %8443 = shalt.err (!%p8440_p1)
}
  0x24   :  { %s8612_s3 = smov 256   ;;  %s8613_s18 = smov 16  }
  0x25   :  { %70 = dma.hbm_to_vmem [thread:$0]  %s9011_s5, 32768, %s8686_s20, [#allocation8], %s8612_s3, %s8612_s3, %s8613_s18  }
  0x26   :  { %s8614_s26 = smov [#allocation10]   ;;  %s8444_s13 = scalar_lea.hbm %s9013_s7, 8192 }
  0x27   :  { %s86_s27 = sshll.u32 %s8614_s26, 4  ;;  %p8445_p2 = scmp.ne.s32.totalorder %s9013_s7, %s8444_s13  ;;  %s87_s27 = int_to_ptr.vmem [resolvable:$true] %s86_s27 }
  0x28   :  { %p8448_p3 = scmp.lt.u32.totalorder %s8444_s13, %s9013_s7 }
  0x2a   :  { %p8450_p4 = pnand %p8448_p3, %p8445_p2 }
  0x2c   :  { %8453 = shalt.err (!%p8450_p4)
}
  0x2d   :  { %s8454_s19 = scalar_lea.vmem %s87_s27, 8192  ;;  %p8459_p6 = scmp.lt.s32.totalorder %s87_s27, %s87_s27 }
  0x2e   :  { %p8455_p5 = scmp.ne.s32.totalorder %s87_s27, %s8454_s19  ;;  %p8460_p7 = scmp.lt.s32.totalorder %s8454_s19, %s8454_s19 }
  0x30   :  { %p8461_p8 = por %p8460_p7, %p8459_p6 }
  0x32   :  { %p8462_p9 = pnand %p8461_p8, %p8455_p5 }
  0x34   :  { %8465 = shalt.err (!%p8462_p9)
}
  0x35   :  { %s8615_s5 = smov 128   ;;  %s8616_s20 = smov 8  }
  0x36   :  { %92 = dma.hbm_to_vmem [thread:$0]  %s9013_s7, 8192, %s87_s27, [#allocation11], %s8615_s5, %s8615_s5, %s8616_s20  }
  0x37   :  { %s8617_s23 = smov [#allocation13]   ;;  %s8466_s25 = scalar_lea.hbm %s9015_s9, 2048 }
  0x38   :  { %s108_s3 = sshll.u32 %s8617_s23, 4  ;;  %p8467_p10 = scmp.ne.s32.totalorder %s9015_s9, %s8466_s25  ;;  %s109_s3 = int_to_ptr.vmem [resolvable:$true] %s108_s3 }
  0x39   :  { %p8470_p11 = scmp.lt.u32.totalorder %s8466_s25, %s9015_s9 }
  0x3b   :  { %p8472_p12 = pnand %p8470_p11, %p8467_p10 }
  0x3d   :  { %8475 = shalt.err (!%p8472_p12)
}
  0x3e   :  { %s8476_s14 = scalar_lea.vmem %s109_s3, 2048  ;;  %p8481_p0 = scmp.lt.s32.totalorder %s109_s3, %s109_s3 }
  0x3f   :  { %p8477_p13 = scmp.ne.s32.totalorder %s109_s3, %s8476_s14  ;;  %p8482_p1 = scmp.lt.s32.totalorder %s8476_s14, %s8476_s14 }
  0x41   :  { %p8483_p2 = por %p8482_p1, %p8481_p0 }
  0x43   :  { %p8484_p3 = pnand %p8483_p2, %p8477_p13 }
  0x45   :  { %8487 = shalt.err (!%p8484_p3)
}
  0x46   :  { %s8618_s7 = smov 64   ;;  %s8619_s27 = smov 4  }
  0x47   :  { %114 = dma.hbm_to_vmem [thread:$0]  %s9015_s9, 2048, %s109_s3, [#allocation14], %s8618_s7, %s8618_s7, %s8619_s27  }
  0x48   :  { %s8620_s17 = smov [#allocation2]   ;;  %s8621_s5 = smov [#allocation6]  }
  0x49   :  { %s30_s19 = sshll.u32 %s8620_s17, 4  ;;  %s55_s20 = sshll.u32 %s8621_s5, 4  ;;  %s31_s19 = int_to_ptr.vmem [resolvable:$true] %s30_s19  ;;  %s56_s20 = int_to_ptr.vmem [resolvable:$true] %s55_s20 }
  0x4a   :  { %s8488_s23 = scalar_lea.hbm %s9008_s2, 57344 }
  0x4b   :  { %p8489_p4 = scmp.ne.s32.totalorder %s9008_s2, %s8488_s23  ;;  %p8492_p5 = scmp.lt.u32.totalorder %s8488_s23, %s9008_s2 }
  0x4d   :  { %p8494_p6 = pnand %p8492_p5, %p8489_p4 }
  0x4f   :  { %8497 = shalt.err (!%p8494_p6)
}
  0x50   :  { %s8498_s9 = scalar_lea.vmem %s31_s19, 57344  ;;  %p8503_p8 = scmp.lt.s32.totalorder %s31_s19, %s31_s19 }
  0x51   :  { %p8499_p7 = scmp.ne.s32.totalorder %s31_s19, %s8498_s9  ;;  %p8504_p9 = scmp.lt.s32.totalorder %s8498_s9, %s8498_s9 }
  0x53   :  { %p8505_p10 = por %p8504_p9, %p8503_p8 }
  0x55   :  { %p8506_p11 = pnand %p8505_p10, %p8499_p7 }
  0x57   :  { %8509 = shalt.err (!%p8506_p11)
}
  0x58   :  { %36 = dma.hbm_to_vmem [thread:$0]  %s9008_s2, 57344, %s31_s19, [#allocation3], %s8610_s29, %s8610_s29, %s8611_s30  }
  0x59   :  { %s8510_s14 = scalar_lea.hbm %s9010_s4, 128 }
  0x5a   :  { %p8511_p12 = scmp.ne.s32.totalorder %s9010_s4, %s8510_s14  ;;  %p8514_p13 = scmp.lt.u32.totalorder %s8510_s14, %s9010_s4 }
  0x5c   :  { %p8516_p0 = pnand %p8514_p13, %p8511_p12 }
  0x5e   :  { %8519 = shalt.err (!%p8516_p0)
}
  0x5f   :  { %s8520_s17 = scalar_lea.vmem %s56_s20, 128  ;;  %p8525_p2 = scmp.lt.s32.totalorder %s56_s20, %s56_s20 }
  0x60   :  { %p8521_p1 = scmp.ne.s32.totalorder %s56_s20, %s8520_s17  ;;  %p8526_p3 = scmp.lt.s32.totalorder %s8520_s17, %s8520_s17 }
  0x62   :  { %p8527_p4 = por %p8526_p3, %p8525_p2 }
  0x64   :  { %p8528_p5 = pnand %p8527_p4, %p8521_p1 }
  0x66   :  { %8531 = shalt.err (!%p8528_p5)
}
  0x67   :  { %58 = dma.hbm_to_vmem [thread:$0]  %s9010_s4, 128, %s56_s20, [#allocation5]  }
  0x68   :  { %s8622_s30 = smov [#allocation9]   ;;  %s8623_s5 = smov [#allocation12]  }
  0x69   :  { %s77_s19 = sshll.u32 %s8622_s30, 4  ;;  %s99_s21 = sshll.u32 %s8623_s5, 4  ;;  %s78_s19 = int_to_ptr.vmem [resolvable:$true] %s77_s19  ;;  %s100_s21 = int_to_ptr.vmem [resolvable:$true] %s99_s21 }
  0x6a   :  { %s8532_s18 = scalar_lea.hbm %s9012_s6, 64 }
  0x6b   :  { %p8533_p6 = scmp.ne.s32.totalorder %s9012_s6, %s8532_s18  ;;  %p8536_p7 = scmp.lt.u32.totalorder %s8532_s18, %s9012_s6 }
  0x6d   :  { %p8538_p8 = pnand %p8536_p7, %p8533_p6 }
  0x6f   :  { %8541 = shalt.err (!%p8538_p8)
}
  0x70   :  { %s8542_s4 = scalar_lea.vmem %s78_s19, 64  ;;  %p8547_p10 = scmp.lt.s32.totalorder %s78_s19, %s78_s19 }
  0x71   :  { %p8543_p9 = scmp.ne.s32.totalorder %s78_s19, %s8542_s4  ;;  %p8548_p11 = scmp.lt.s32.totalorder %s8542_s4, %s8542_s4 }
  0x73   :  { %p8549_p12 = por %p8548_p11, %p8547_p10 }
  0x75   :  { %p8550_p13 = pnand %p8549_p12, %p8543_p9 }
  0x77   :  { %8553 = shalt.err (!%p8550_p13)
}
  0x78   :  { %80 = dma.hbm_to_vmem [thread:$0]  %s9012_s6, 64, %s78_s19, [#allocation8]  }
  0x79   :  { %s8554_s13 = scalar_lea.hbm %s9014_s8, 32 }
  0x7a   :  { %p8555_p0 = scmp.ne.s32.totalorder %s9014_s8, %s8554_s13  ;;  %p8558_p1 = scmp.lt.u32.totalorder %s8554_s13, %s9014_s8 }
  0x7c   :  { %p8560_p2 = pnand %p8558_p1, %p8555_p0 }
  0x7e   :  { %8563 = shalt.err (!%p8560_p2)
}
  0x7f   :  { %s8564_s16 = scalar_lea.vmem %s100_s21, 32  ;;  %p8569_p4 = scmp.lt.s32.totalorder %s100_s21, %s100_s21 }
  0x80   :  { %p8565_p3 = scmp.ne.s32.totalorder %s100_s21, %s8564_s16  ;;  %p8570_p5 = scmp.lt.s32.totalorder %s8564_s16, %s8564_s16 }
  0x82   :  { %p8571_p6 = por %p8570_p5, %p8569_p4 }
  0x84   :  { %p8572_p7 = pnand %p8571_p6, %p8565_p3 }
  0x86   :  { %8575 = shalt.err (!%p8572_p7)
}
  0x87   :  { %102 = dma.hbm_to_vmem [thread:$0]  %s9014_s8, 32, %s100_s21, [#allocation11]  }
  0x88   :  { %s8624_s2 = smov [#allocation15]   ;;  %s8576_s5 = scalar_lea.hbm %s9016_s10, 16 }
  0x89   :  { %s121_s29 = sshll.u32 %s8624_s2, 4  ;;  %p8577_p8 = scmp.ne.s32.totalorder %s9016_s10, %s8576_s5  ;;  %s122_s29 = int_to_ptr.vmem [resolvable:$true] %s121_s29 }
  0x8a   :  { %p8580_p9 = scmp.lt.u32.totalorder %s8576_s5, %s9016_s10 }
  0x8c   :  { %p8582_p10 = pnand %p8580_p9, %p8577_p8 }
  0x8e   :  { %8585 = shalt.err (!%p8582_p10)
}
  0x8f   :  { %s8586_s25 = scalar_lea.vmem %s122_s29, 16  ;;  %s8590_s8 = scalar_lea.vmem %s122_s29, 32 }
  0x90   :  { %p8587_p11 = scmp.ne.s32.totalorder %s122_s29, %s8586_s25  ;;  %p8591_p12 = scmp.lt.s32.totalorder %s122_s29, %s122_s29 }
  0x91   :  { %p8592_p13 = scmp.lt.s32.totalorder %s8590_s8, %s8586_s25 }
  0x93   :  { %p8593_p0 = por %p8592_p13, %p8591_p12 }
  0x95   :  { %p8594_p1 = pnand %p8593_p0, %p8587_p11 }
  0x97   :  { %8597 = shalt.err (!%p8594_p1)
}
  0x98   :  { %124 = dma.hbm_to_vmem [thread:$0]  %s9016_s10, 16, %s122_s29, [#allocation14]  }
  0x99   :  { %8598 = dma.done.wait [#allocation3], 57344  }
  0x9a   :  { %8599 = vsyncadd [#allocation3], 4294909952 }
  0x9b   :  { %8600 = dma.done.wait [#allocation5], 8320  }
  0x9c   :  { %8601 = vsyncadd [#allocation5], 4294958976 }
  0x9d   :  { %8602 = dma.done.wait [#allocation8], 32832  }
  0x9e   :  { %8603 = vsyncadd [#allocation8], 4294934464 }
  0x9f   :  { %8604 = dma.done.wait [#allocation11], 8224  }
  0xa0   :  { %8605 = vsyncadd [#allocation11], 4294959072 }
  0xa1   :  { %8606 = dma.done.wait [#allocation14], 2064  }
  0xa2   :  { %8607 = vsyncadd [#allocation14], 4294965232  ;;  %v8625_v0 = vmov 0   ;;  %v611_v1 = vld [vmem:[#allocation4] sm:$0xff]  ;;  %v613_v3 = vld [vmem:[#allocation4 + $0x10] sm:$0xff] }
  0xa3   :  { %1033 = vmatprep.mubr.bf16.mxu1 %v8625_v0  ;;  %1119 = vmatprep.mubr.bf16.mxu0 %v8625_v0  ;;  %v615_v2 = vld [vmem:[#allocation4 + $0x20] sm:$0xff]  ;;  %v617_v5 = vld [vmem:[#allocation4 + $0x30] sm:$0xff]  ;;  %v612_v63 = vld [vmem:[#allocation4 + $0x8] sm:$0xff] }
  0xa4   :  { %v6878_v4 = vcombine.high %v611_v1, %v615_v2  ;;  %v6877_v6 = vcombine.low %v611_v1, %v615_v2  ;;  %v619_v7 = vld [vmem:[#allocation4 + $0x40] sm:$0xff]  ;;  %v6882_v9 = vcombine.high %v613_v3, %v617_v5  ;;  %v6881_v10 = vcombine.low %v613_v3, %v617_v5  ;;  %v621_v12 = vld [vmem:[#allocation4 + $0x50] sm:$0xff]  ;;  %v616_v1 = vld [vmem:[#allocation4 + $0x28] sm:$0xff] }
  0xa5   :  { %v623_v8 = vld [vmem:[#allocation4 + $0x60] sm:$0xff]  ;;  %v625_v13 = vld [vmem:[#allocation4 + $0x70] sm:$0xff] }
  0xa6   :  { %v6886_v11 = vcombine.high %v619_v7, %v623_v8  ;;  %v627_v14 = vld [vmem:[#allocation4 + $0x80] sm:$0xff]  ;;  %1001 = vmatprep.subr.bf16.mxu1 %v6878_v4  ;;  %v6890_v15 = vcombine.high %v621_v12, %v625_v13  ;;  %v629_v17 = vld [vmem:[#allocation4 + $0x90] sm:$0xff]  ;;  %1087 = vmatprep.subr.bf16.mxu0 %v6882_v9  ;;  %v6885_v19 = vcombine.low %v619_v7, %v623_v8  ;;  %v620_v8 = vld [vmem:[#allocation4 + $0x48] sm:$0xff] }
  0xa7   :  { %v631_v16 = vld [vmem:[#allocation4 + $0xa0] sm:$0xff]  ;;  %v633_v18 = vld [vmem:[#allocation4 + $0xb0] sm:$0xff]  ;;  %1002 = vmatpush1.bf16.msra.mxu1 %v6877_v6  ;;  %1088 = vmatpush1.bf16.msra.mxu0 %v6881_v10  ;;  %v6889_v20 = vcombine.low %v621_v12, %v625_v13  ;;  %v6880_v6 = vcombine.high %v612_v63, %v616_v1  ;;  %v624_v9 = vld [vmem:[#allocation4 + $0x68] sm:$0xff]  ;;  %v6879_v13 = vcombine.low %v612_v63, %v616_v1 }
  0xa8   :  { %1003 = vmatprep.subr.bf16.mxu1 %v6886_v11  ;;  %v6894_v21 = vcombine.high %v627_v14, %v631_v16  ;;  %1089 = vmatprep.subr.bf16.mxu0 %v6890_v15  ;;  %v6898_v22 = vcombine.high %v629_v17, %v633_v18  ;;  %v635_v23 = vld [vmem:[#allocation4 + $0xc0] sm:$0xff]  ;;  %v637_v25 = vld [vmem:[#allocation4 + $0xd0] sm:$0xff]  ;;  %v6893_v27 = vcombine.low %v627_v14, %v631_v16 }
  0xa9   :  { %v639_v24 = vld [vmem:[#allocation4 + $0xe0] sm:$0xff]  ;;  %v641_v26 = vld [vmem:[#allocation4 + $0xf0] sm:$0xff]  ;;  %v6897_v28 = vcombine.low %v629_v17, %v633_v18  ;;  %v6888_v15 = vcombine.high %v620_v8, %v624_v9  ;;  %v628_v17 = vld [vmem:[#allocation4 + $0x88] sm:$0xff] }
  0xaa   :  { %v6902_v29 = vcombine.high %v635_v23, %v639_v24  ;;  %v6906_v30 = vcombine.high %v637_v25, %v641_v26  ;;  %v643_v31 = vld [vmem:[#allocation4 + $0x100] sm:$0xff]  ;;  %v645_v33 = vld [vmem:[#allocation4 + $0x110] sm:$0xff]  ;;  %v6901_v35 = vcombine.low %v635_v23, %v639_v24  ;;  %v6905_v36 = vcombine.low %v637_v25, %v641_v26  ;;  %v632_v18 = vld [vmem:[#allocation4 + $0xa8] sm:$0xff] }
  0xab   :  { %1004 = vmatpush1.bf16.msra.mxu1 %v6885_v19  ;;  %1090 = vmatpush1.bf16.msra.mxu0 %v6889_v20  ;;  %v647_v32 = vld [vmem:[#allocation4 + $0x120] sm:$0xff]  ;;  %v649_v34 = vld [vmem:[#allocation4 + $0x130] sm:$0xff]  ;;  %v6896_v24 = vcombine.high %v628_v17, %v632_v18  ;;  %v636_v26 = vld [vmem:[#allocation4 + $0xc8] sm:$0xff] }
  0xac   :  { %1005 = vmatprep.subr.bf16.mxu1 %v6894_v21  ;;  %1091 = vmatprep.subr.bf16.mxu0 %v6898_v22  ;;  %v6910_v37 = vcombine.high %v643_v31, %v647_v32  ;;  %v6914_v38 = vcombine.high %v645_v33, %v649_v34  ;;  %v651_v39 = vld [vmem:[#allocation4 + $0x140] sm:$0xff]  ;;  %v653_v41 = vld [vmem:[#allocation4 + $0x150] sm:$0xff]  ;;  %v6909_v43 = vcombine.low %v643_v31, %v647_v32 }
  0xad   :  { %v655_v40 = vld [vmem:[#allocation4 + $0x160] sm:$0xff]  ;;  %v657_v42 = vld [vmem:[#allocation4 + $0x170] sm:$0xff]  ;;  %v6913_v44 = vcombine.low %v645_v33, %v649_v34  ;;  %v6887_v22 = vcombine.low %v620_v8, %v624_v9  ;;  %v644_v34 = vld [vmem:[#allocation4 + $0x108] sm:$0xff] }
  0xae   :  { %v6918_v45 = vcombine.high %v651_v39, %v655_v40  ;;  %v6922_v46 = vcombine.high %v653_v41, %v657_v42  ;;  %v659_v47 = vld [vmem:[#allocation4 + $0x180] sm:$0xff]  ;;  %v661_v49 = vld [vmem:[#allocation4 + $0x190] sm:$0xff]  ;;  %v6917_v51 = vcombine.low %v651_v39, %v655_v40  ;;  %v6921_v52 = vcombine.low %v653_v41, %v657_v42  ;;  %v652_v42 = vld [vmem:[#allocation4 + $0x148] sm:$0xff] }
  0xaf   :  { %1006 = vmatpush1.bf16.msra.mxu1 %v6893_v27  ;;  %1092 = vmatpush1.bf16.msra.mxu0 %v6897_v28  ;;  %v663_v48 = vld [vmem:[#allocation4 + $0x1a0] sm:$0xff]  ;;  %v665_v50 = vld [vmem:[#allocation4 + $0x1b0] sm:$0xff]  ;;  %v640_v27 = vld [vmem:[#allocation4 + $0xe8] sm:$0xff] }
  0xb0   :  { %1007 = vmatprep.subr.bf16.mxu1 %v6902_v29  ;;  %1093 = vmatprep.subr.bf16.mxu0 %v6906_v30  ;;  %v6926_v53 = vcombine.high %v659_v47, %v663_v48  ;;  %v6930_v54 = vcombine.high %v661_v49, %v665_v50  ;;  %v667_v55 = vld [vmem:[#allocation4 + $0x1c0] sm:$0xff]  ;;  %v669_v57 = vld [vmem:[#allocation4 + $0x1d0] sm:$0xff]  ;;  %v6925_v59 = vcombine.low %v659_v47, %v663_v48 }
  0xb1   :  { %v671_v56 = vld [vmem:[#allocation4 + $0x1e0] sm:$0xff]  ;;  %v673_v58 = vld [vmem:[#allocation4 + $0x1f0] sm:$0xff]  ;;  %v6929_v60 = vcombine.low %v661_v49, %v665_v50  ;;  %v6895_v30 = vcombine.low %v628_v17, %v632_v18  ;;  %v6904_v32 = vcombine.high %v636_v26, %v640_v27  ;;  %v660_v50 = vld [vmem:[#allocation4 + $0x188] sm:$0xff] }
  0xb2   :  { %v6934_v61 = vcombine.high %v667_v55, %v671_v56  ;;  %v6938_v62 = vcombine.high %v669_v57, %v673_v58  ;;  %v161_v2 = vld [vmem:[#allocation2] sm:$0xff]  ;;  %v6933_v4 = vcombine.low %v667_v55, %v671_v56  ;;  %v6937_v5 = vcombine.low %v669_v57, %v673_v58  ;;  %v668_v58 = vld [vmem:[#allocation4 + $0x1c8] sm:$0xff] }
  0xb3   :  { %1008 = vmatpush1.bf16.msra.mxu1 %v6901_v35  ;;  %1094 = vmatpush1.bf16.msra.mxu0 %v6905_v36  ;;  %v165_v3 = vld [vmem:[#allocation2 + $0x20] sm:$0xff]  ;;  %v648_v35 = vld [vmem:[#allocation4 + $0x128] sm:$0xff] }
  0xb4   :  { %1009 = vmatprep.subr.bf16.mxu1 %v6910_v37  ;;  %1095 = vmatprep.subr.bf16.mxu0 %v6914_v38  ;;  %v6949_v7 = vcombine.high %v161_v2, %v165_v3  ;;  %v8812_v10 = vld [vmem:[%s9007_s1] sm:$0xff]   ;;  %v6948_v14 = vcombine.low %v161_v2, %v165_v3  ;;  %v6903_v38 = vcombine.low %v636_v26, %v640_v27  ;;  %v614_v3 = vld [vmem:[#allocation4 + $0x18] sm:$0xff] }
  0xb5   :  { %v169_v11 = vld [vmem:[#allocation2 + $0x40] sm:$0xff]  ;;  %v6912_v40 = vcombine.high %v644_v34, %v648_v35 }
  0xb6   :  { %v173_v12 = vld [vmem:[#allocation2 + $0x60] sm:$0xff] }
  0xb7   :  { %1010 = vmatpush1.bf16.msra.mxu1 %v6909_v43  ;;  %1096 = vmatpush1.bf16.msra.mxu0 %v6913_v44  ;;  %v6957_v16 = vcombine.high %v169_v11, %v173_v12  ;;  %v177_v19 = vld [vmem:[#allocation2 + $0x80] sm:$0xff]  ;;  %v6956_v23 = vcombine.low %v169_v11, %v173_v12  ;;  %v656_v43 = vld [vmem:[#allocation4 + $0x168] sm:$0xff]  ;;  %v622_v12 = vld [vmem:[#allocation4 + $0x58] sm:$0xff] }
  0xb8   :  { %1011 = vmatprep.subr.bf16.mxu1 %v6918_v45  ;;  %1097 = vmatprep.subr.bf16.mxu0 %v6922_v46  ;;  %v181_v20 = vld [vmem:[#allocation2 + $0xa0] sm:$0xff]  ;;  %v6911_v46 = vcombine.low %v644_v34, %v648_v35  ;;  %v6920_v48 = vcombine.high %v652_v42, %v656_v43 }
  0xb9   :  { %v8818_v21 = vld [vmem:[%s9006_s0 + $0x4] ss:$28 sps:$4 sm:$0xff]   ;;  %v6965_v25 = vcombine.high %v177_v19, %v181_v20  ;;  %v6964_v31 = vcombine.low %v177_v19, %v181_v20  ;;  %v630_v20 = vld [vmem:[#allocation4 + $0x98] sm:$0xff] }
  0xba   :  { %v185_v28 = vld [vmem:[#allocation2 + $0xc0] sm:$0xff] }
  0xbb   :  { %1012 = vmatpush1.bf16.msra.mxu1 %v6917_v51  ;;  %1098 = vmatpush1.bf16.msra.mxu0 %v6921_v52  ;;  %v189_v29 = vld [vmem:[#allocation2 + $0xe0] sm:$0xff]  ;;  %v664_v51 = vld [vmem:[#allocation4 + $0x1a8] sm:$0xff] }
  0xbc   :  { %1013 = vmatprep.subr.bf16.mxu1 %v6926_v53  ;;  %1099 = vmatprep.subr.bf16.mxu0 %v6930_v54  ;;  %v6973_v33 = vcombine.high %v185_v28, %v189_v29  ;;  %v193_v36 = vld [vmem:[#allocation2 + $0x100] sm:$0xff]  ;;  %v6972_v39 = vcombine.low %v185_v28, %v189_v29  ;;  %v6919_v54 = vcombine.low %v652_v42, %v656_v43  ;;  %v638_v28 = vld [vmem:[#allocation4 + $0xd8] sm:$0xff] }
  0xbd   :  { %v197_v37 = vld [vmem:[#allocation2 + $0x120] sm:$0xff]  ;;  %v6928_v56 = vcombine.high %v660_v50, %v664_v51  ;;  %v642_v29 = vld [vmem:[#allocation4 + $0xf8] sm:$0xff] }
  0xbe   :  { %v6981_v41 = vcombine.high %v193_v36, %v197_v37  ;;  %v201_v44 = vld [vmem:[#allocation2 + $0x140] sm:$0xff]  ;;  %v6980_v47 = vcombine.low %v193_v36, %v197_v37  ;;  %v6908_v35 = vcombine.high %v638_v28, %v642_v29  ;;  %v646_v36 = vld [vmem:[#allocation4 + $0x118] sm:$0xff] }
  0xbf   :  { %1014 = vmatpush1.bf16.msra.mxu1 %v6925_v59  ;;  %1100 = vmatpush1.bf16.msra.mxu0 %v6929_v60  ;;  %v205_v45 = vld [vmem:[#allocation2 + $0x160] sm:$0xff]  ;;  %v672_v59 = vld [vmem:[#allocation4 + $0x1e8] sm:$0xff]  ;;  %v650_v37 = vld [vmem:[#allocation4 + $0x138] sm:$0xff] }
  0xc0   :  { %1015 = vmatprep.subr.bf16.mxu1 %v6934_v61  ;;  %1101 = vmatprep.subr.bf16.mxu0 %v6938_v62  ;;  %v6989_v49 = vcombine.high %v201_v44, %v205_v45  ;;  %v209_v52 = vld [vmem:[#allocation2 + $0x180] sm:$0xff]  ;;  %v6988_v55 = vcombine.low %v201_v44, %v205_v45  ;;  %v6927_v62 = vcombine.low %v660_v50, %v664_v51  ;;  %v654_v44 = vld [vmem:[#allocation4 + $0x158] sm:$0xff] }
  0xc1   :  { %v213_v53 = vld [vmem:[#allocation2 + $0x1a0] sm:$0xff]  ;;  %v6936_v1 = vcombine.high %v668_v58, %v672_v59  ;;  %v6916_v43 = vcombine.high %v646_v36, %v650_v37  ;;  %v658_v45 = vld [vmem:[#allocation4 + $0x178] sm:$0xff] }
  0xc2   :  { %v6997_v57 = vcombine.high %v209_v52, %v213_v53  ;;  %v217_v60 = vld [vmem:[#allocation2 + $0x1c0] sm:$0xff]  ;;  %v6996_v63 = vcombine.low %v209_v52, %v213_v53  ;;  %v6924_v51 = vcombine.high %v654_v44, %v658_v45  ;;  %v662_v52 = vld [vmem:[#allocation4 + $0x198] sm:$0xff] }
  0xc3   :  { %1016 = vmatpush1.bf16.msra.mxu1 %v6933_v4  ;;  %1102 = vmatpush1.bf16.msra.mxu0 %v6937_v5  ;;  %v221_v61 = vld [vmem:[#allocation2 + $0x1e0] sm:$0xff]  ;;  %v618_v4 = vld [vmem:[#allocation4 + $0x38] sm:$0xff] }
  0xc4   :  { %1044 = vmatprep.subr.bf16.mxu1 %v6880_v6  ;;  %3449 = vmatprep.subr.bf16.mxu0 %v6949_v7  ;;  %v7005_v2 = vcombine.high %v217_v60, %v221_v61  ;;  %v225_v5 = vld [vmem:[#allocation2 + $0x200] sm:$0xff]  ;;  %v6935_v7 = vcombine.low %v668_v58, %v672_v59  ;;  %v7004_v8 = vcombine.low %v217_v60, %v221_v61  ;;  %v666_v53 = vld [vmem:[#allocation4 + $0x1b8] sm:$0xff] }
  0xc5   :  { %v229_v6 = vld [vmem:[#allocation2 + $0x220] sm:$0xff]  ;;  %v6884_v9 = vcombine.high %v614_v3, %v618_v4  ;;  %v6932_v59 = vcombine.high %v662_v52, %v666_v53  ;;  %v670_v60 = vld [vmem:[#allocation4 + $0x1d8] sm:$0xff] }
  0xc6   :  { %1034 = vmatmul.mubr.bf16.vlgmr.msra.gmra.mrb[0].mxu1 %v8812_v10  ;;  %1120 = vmatmul.mubr.bf16.vlgmr.msra.gmra.mrb[0].mxu0 %v8812_v10  ;;  %v7013_v11 = vcombine.high %v225_v5, %v229_v6  ;;  %v7012_v17 = vcombine.low %v225_v5, %v229_v6  ;;  %v674_v61 = vld [vmem:[#allocation4 + $0x1f8] sm:$0xff]  ;;  %v289_v5 = vld [vmem:[#allocation2 + $0x400] sm:$0xff] }
  0xc7   :  { %1045 = vmatpush1.bf16.msra.mxu1 %v6879_v13  ;;  %3450 = vmatpush1.bf16.msra.mxu0 %v6948_v14  ;;  %v626_v13 = vld [vmem:[#allocation4 + $0x78] sm:$0xff]  ;;  %v233_v14 = vld [vmem:[#allocation2 + $0x240] sm:$0xff] }
  0xc8   :  { %1046 = vmatprep.subr.bf16.mxu1 %v6888_v15  ;;  %3451 = vmatprep.subr.bf16.mxu0 %v6957_v16  ;;  %v237_v15 = vld [vmem:[#allocation2 + $0x260] sm:$0xff]  ;;  %v6883_v16 = vcombine.low %v614_v3, %v618_v4  ;;  %v6892_v18 = vcombine.high %v622_v12, %v626_v13  ;;  %v6940_v4 = vcombine.high %v670_v60, %v674_v61 }
  0xc9   :  { %1076 = vmatprep.mubr.bf16.mxu1 %v8625_v0  ;;  %3481 = vmatprep.mubr.bf16.mxu0 %v8818_v21  ;;  %v7021_v19 = vcombine.high %v233_v14, %v237_v15  ;;  %v7020_v26 = vcombine.low %v233_v14, %v237_v15  ;;  %v293_v6 = vld [vmem:[#allocation2 + $0x420] sm:$0xff] }
  0xca   :  { %v297_v14 = vld [vmem:[#allocation2 + $0x440] sm:$0xff] }
  0xcb   :  { %1047 = vmatpush1.bf16.msra.mxu1 %v6887_v22  ;;  %3452 = vmatpush1.bf16.msra.mxu0 %v6956_v23  ;;  %v634_v22 = vld [vmem:[#allocation4 + $0xb8] sm:$0xff]  ;;  %v241_v23 = vld [vmem:[#allocation2 + $0x280] sm:$0xff] }
  0xcc   :  { %1048 = vmatprep.subr.bf16.mxu1 %v6896_v24  ;;  %3453 = vmatprep.subr.bf16.mxu0 %v6965_v25  ;;  %v245_v24 = vld [vmem:[#allocation2 + $0x2a0] sm:$0xff]  ;;  %v6891_v25 = vcombine.low %v622_v12, %v626_v13  ;;  %v6900_v27 = vcombine.high %v630_v20, %v634_v22 }
  0xcd   :  { %v7028_v34 = vcombine.low %v241_v23, %v245_v24  ;;  %v301_v15 = vld [vmem:[#allocation2 + $0x460] sm:$0xff] }
  0xcf   :  { %1049 = vmatpush1.bf16.msra.mxu1 %v6895_v30  ;;  %3454 = vmatpush1.bf16.msra.mxu0 %v6964_v31  ;;  %v249_v30 = vld [vmem:[#allocation2 + $0x2c0] sm:$0xff]  ;;  %v7029_v31 = vcombine.high %v241_v23, %v245_v24 }
  0xd0   :  { %1050 = vmatprep.subr.bf16.mxu1 %v6904_v32  ;;  %3455 = vmatprep.subr.bf16.mxu0 %v6973_v33  ;;  %v253_v32 = vld [vmem:[#allocation2 + $0x2e0] sm:$0xff]  ;;  %v6899_v33 = vcombine.low %v630_v20, %v634_v22  ;;  %v7076_v22 = vcombine.low %v289_v5, %v293_v6 }
  0xd1   :  { %v7036_v42 = vcombine.low %v249_v30, %v253_v32  ;;  %v305_v24 = vld [vmem:[#allocation2 + $0x480] sm:$0xff] }
  0xd3   :  { %1051 = vmatpush1.bf16.msra.mxu1 %v6903_v38  ;;  %3456 = vmatpush1.bf16.msra.mxu0 %v6972_v39  ;;  %v257_v38 = vld [vmem:[#allocation2 + $0x300] sm:$0xff]  ;;  %v7037_v39 = vcombine.high %v249_v30, %v253_v32 }
  0xd4   :  { %1052 = vmatprep.subr.bf16.mxu1 %v6912_v40  ;;  %3457 = vmatprep.subr.bf16.mxu0 %v6981_v41  ;;  %v261_v40 = vld [vmem:[#allocation2 + $0x320] sm:$0xff]  ;;  %v6907_v41 = vcombine.low %v638_v28, %v642_v29  ;;  %v182_v28 = vld [vmem:[#allocation2 + $0xa8] sm:$0xff] }
  0xd5   :  { %v7044_v50 = vcombine.low %v257_v38, %v261_v40  ;;  %v8833_v29 = vld [vmem:[%s9006_s0 + $0xc] ss:$28 sps:$4 sm:$0xff]  }
  0xd7   :  { %1053 = vmatpush1.bf16.msra.mxu1 %v6911_v46  ;;  %3458 = vmatpush1.bf16.msra.mxu0 %v6980_v47  ;;  %v265_v46 = vld [vmem:[#allocation2 + $0x340] sm:$0xff]  ;;  %v7045_v47 = vcombine.high %v257_v38, %v261_v40 }
  0xd8   :  { %1054 = vmatprep.subr.bf16.mxu1 %v6920_v48  ;;  %3459 = vmatprep.subr.bf16.mxu0 %v6989_v49  ;;  %v269_v48 = vld [vmem:[#allocation2 + $0x360] sm:$0xff]  ;;  %v6915_v49 = vcombine.low %v646_v36, %v650_v37  ;;  %v190_v37 = vld [vmem:[#allocation2 + $0xe8] sm:$0xff] }
  0xd9   :  { %v7052_v58 = vcombine.low %v265_v46, %v269_v48  ;;  %v321_v40 = vld [vmem:[#allocation2 + $0x500] sm:$0xff] }
  0xdb   :  { %1055 = vmatpush1.bf16.msra.mxu1 %v6919_v54  ;;  %3460 = vmatpush1.bf16.msra.mxu0 %v6988_v55  ;;  %v273_v54 = vld [vmem:[#allocation2 + $0x380] sm:$0xff]  ;;  %v7053_v55 = vcombine.high %v265_v46, %v269_v48 }
  0xdc   :  { %1056 = vmatprep.subr.bf16.mxu1 %v6928_v56  ;;  %3461 = vmatprep.subr.bf16.mxu0 %v6997_v57  ;;  %v277_v56 = vld [vmem:[#allocation2 + $0x3a0] sm:$0xff]  ;;  %v6923_v57 = vcombine.low %v654_v44, %v658_v45  ;;  %v198_v44 = vld [vmem:[#allocation2 + $0x128] sm:$0xff] }
  0xdd   :  { %v7060_v3 = vcombine.low %v273_v54, %v277_v56  ;;  %v329_v48 = vld [vmem:[#allocation2 + $0x540] sm:$0xff] }
  0xdf   :  { %1057 = vmatpush1.bf16.msra.mxu1 %v6927_v62  ;;  %3462 = vmatpush1.bf16.msra.mxu0 %v6996_v63  ;;  %v281_v62 = vld [vmem:[#allocation2 + $0x3c0] sm:$0xff]  ;;  %v7061_v63 = vcombine.high %v273_v54, %v277_v56 }
  0xe0   :  { %1058 = vmatprep.subr.bf16.mxu1 %v6936_v1  ;;  %3463 = vmatprep.subr.bf16.mxu0 %v7005_v2  ;;  %v285_v1 = vld [vmem:[#allocation2 + $0x3e0] sm:$0xff]  ;;  %v6931_v2 = vcombine.low %v662_v52, %v666_v53 }
  0xe1   :  { %v7068_v12 = vcombine.low %v281_v62, %v285_v1  ;;  %v341_v56 = vld [vmem:[#allocation2 + $0x5a0] sm:$0xff] }
  0xe3   :  { %1059 = vmatpush1.bf16.msra.mxu1 %v6935_v7  ;;  %3464 = vmatpush1.bf16.msra.mxu0 %v7004_v8  ;;  %v162_v7 = vld [vmem:[#allocation2 + $0x8] sm:$0xff]  ;;  %v7069_v8 = vcombine.high %v281_v62, %v285_v1  ;;  %v349_v1 = vld [vmem:[#allocation2 + $0x5e0] sm:$0xff] }
  0xe4   :  { %1130 = vmatprep.subr.bf16.mxu1 %v6884_v9  ;;  %3465 = vmatprep.subr.bf16.mxu0 %v7013_v11  ;;  %v166_v9 = vld [vmem:[#allocation2 + $0x28] sm:$0xff]  ;;  %v6939_v11 = vcombine.low %v670_v60, %v674_v61 }
  0xe5   :  { %v6951_v13 = vcombine.high %v162_v7, %v166_v9  ;;  %v6950_v20 = vcombine.low %v162_v7, %v166_v9  ;;  %v357_v9 = vld [vmem:[#allocation2 + $0x620] sm:$0xff] }
  0xe6   :  { %1077 = vmatmul.mubr.bf16.vlgmr.msra.gmra.mrb[4].mxu1 %v8812_v10 }
  0xe7   :  { %1131 = vmatpush1.bf16.msra.mxu1 %v6883_v16  ;;  %1162 = vmatprep.mubr.bf16.mxu1 %v8625_v0  ;;  %v170_v16 = vld [vmem:[#allocation2 + $0x48] sm:$0xff] }
  0xe8   :  { %3466 = vmatpush1.bf16.msra.mxu0 %v7012_v17  ;;  %1132 = vmatprep.subr.bf16.mxu1 %v6892_v18  ;;  %v7077_v17 = vcombine.high %v289_v5, %v293_v6  ;;  %v8828_v18 = vld [vmem:[%s9006_s0] ss:$28 sps:$4 sm:$0xff]  }
  0xe9   :  { %3467 = vmatprep.subr.bf16.mxu0 %v7021_v19  ;;  %v174_v19 = vld [vmem:[#allocation2 + $0x68] sm:$0xff] }
  0xea   :  { %v6959_v23 = vcombine.high %v170_v16, %v174_v19  ;;  %v6958_v30 = vcombine.low %v170_v16, %v174_v19  ;;  %v365_v19 = vld [vmem:[#allocation2 + $0x660] sm:$0xff] }
  0xeb   :  { %1133 = vmatpush1.bf16.msra.mxu1 %v6891_v25  ;;  %v309_v25 = vld [vmem:[#allocation2 + $0x4a0] sm:$0xff] }
  0xec   :  { %3468 = vmatpush1.bf16.msra.mxu0 %v7020_v26  ;;  %1134 = vmatprep.subr.bf16.mxu1 %v6900_v27  ;;  %v7085_v26 = vcombine.high %v297_v14, %v301_v15  ;;  %v178_v27 = vld [vmem:[#allocation2 + $0x88] sm:$0xff]  ;;  %v7093_v36 = vcombine.high %v305_v24, %v309_v25  ;;  %v7092_v38 = vcombine.low %v305_v24, %v309_v25 }
  0xed   :  { %3469 = vmatprep.subr.bf16.mxu0 %v7029_v31  ;;  %v7084_v31 = vcombine.low %v297_v14, %v301_v15  ;;  %v6967_v32 = vcombine.high %v178_v27, %v182_v28 }
  0xef   :  { %1135 = vmatpush1.bf16.msra.mxu1 %v6899_v33  ;;  %v313_v33 = vld [vmem:[#allocation2 + $0x4c0] sm:$0xff] }
  0xf0   :  { %3470 = vmatpush1.bf16.msra.mxu0 %v7028_v34  ;;  %1136 = vmatprep.subr.bf16.mxu1 %v6908_v35  ;;  %v317_v34 = vld [vmem:[#allocation2 + $0x4e0] sm:$0xff]  ;;  %v186_v35 = vld [vmem:[#allocation2 + $0xc8] sm:$0xff] }
  0xf1   :  { %3471 = vmatprep.subr.bf16.mxu0 %v7037_v39  ;;  %v6975_v39 = vcombine.high %v186_v35, %v190_v37  ;;  %v6974_v45 = vcombine.low %v186_v35, %v190_v37  ;;  %v7100_v46 = vcombine.low %v313_v33, %v317_v34  ;;  %v381_v37 = vld [vmem:[#allocation2 + $0x6e0] sm:$0xff] }
  0xf3   :  { %1137 = vmatpush1.bf16.msra.mxu1 %v6907_v41  ;;  %v325_v41 = vld [vmem:[#allocation2 + $0x520] sm:$0xff] }
  0xf4   :  { %3472 = vmatpush1.bf16.msra.mxu0 %v7036_v42  ;;  %1138 = vmatprep.subr.bf16.mxu1 %v6916_v43  ;;  %v194_v42 = vld [vmem:[#allocation2 + $0x108] sm:$0xff]  ;;  %v7101_v43 = vcombine.high %v313_v33, %v317_v34  ;;  %v7108_v53 = vcombine.low %v321_v40, %v325_v41 }
  0xf5   :  { %3473 = vmatprep.subr.bf16.mxu0 %v7045_v47  ;;  %v6983_v47 = vcombine.high %v194_v42, %v198_v44  ;;  %v6982_v52 = vcombine.low %v194_v42, %v198_v44  ;;  %v389_v44 = vld [vmem:[#allocation2 + $0x720] sm:$0xff] }
  0xf7   :  { %1139 = vmatpush1.bf16.msra.mxu1 %v6915_v49  ;;  %v202_v49 = vld [vmem:[#allocation2 + $0x148] sm:$0xff] }
  0xf8   :  { %3474 = vmatpush1.bf16.msra.mxu0 %v7044_v50  ;;  %1140 = vmatprep.subr.bf16.mxu1 %v6924_v51  ;;  %v7109_v50 = vcombine.high %v321_v40, %v325_v41  ;;  %v206_v51 = vld [vmem:[#allocation2 + $0x168] sm:$0xff] }
  0xf9   :  { %3475 = vmatprep.subr.bf16.mxu0 %v7053_v55  ;;  %v6991_v54 = vcombine.high %v202_v49, %v206_v51  ;;  %v337_v55 = vld [vmem:[#allocation2 + $0x580] sm:$0xff]  ;;  %v6990_v60 = vcombine.low %v202_v49, %v206_v51 }
  0xfa   :  { %v7124_v6 = vcombine.low %v337_v55, %v341_v56  ;;  %v397_v51 = vld [vmem:[#allocation2 + $0x760] sm:$0xff] }
  0xfb   :  { %1141 = vmatpush1.bf16.msra.mxu1 %v6923_v57  ;;  %v210_v57 = vld [vmem:[#allocation2 + $0x188] sm:$0xff] }
  0xfc   :  { %3476 = vmatpush1.bf16.msra.mxu0 %v7052_v58  ;;  %1142 = vmatprep.subr.bf16.mxu1 %v6932_v59  ;;  %v214_v59 = vld [vmem:[#allocation2 + $0x1a8] sm:$0xff] }
  0xfd   :  { %3477 = vmatprep.subr.bf16.mxu0 %v7061_v63  ;;  %v6999_v62 = vcombine.high %v210_v57, %v214_v59  ;;  %v345_v63 = vld [vmem:[#allocation2 + $0x5c0] sm:$0xff]  ;;  %v6998_v5 = vcombine.low %v210_v57, %v214_v59 }
  0xfe   :  { %v7132_v15 = vcombine.low %v345_v63, %v349_v1  ;;  %v405_v59 = vld [vmem:[#allocation2 + $0x7a0] sm:$0xff] }
  0xff   :  { %1143 = vmatpush1.bf16.msra.mxu1 %v6931_v2  ;;  %v218_v2 = vld [vmem:[#allocation2 + $0x1c8] sm:$0xff] }
 0x100   :  { %3478 = vmatpush1.bf16.msra.mxu0 %v7060_v3  ;;  %1144 = vmatprep.subr.bf16.mxu1 %v6940_v4  ;;  %v7125_v3 = vcombine.high %v337_v55, %v341_v56  ;;  %v222_v4 = vld [vmem:[#allocation2 + $0x1e8] sm:$0xff] }
 0x101   :  { %3479 = vmatprep.subr.bf16.mxu0 %v7069_v8  ;;  %v7007_v7 = vcombine.high %v218_v2, %v222_v4  ;;  %v353_v8 = vld [vmem:[#allocation2 + $0x600] sm:$0xff]  ;;  %v7006_v14 = vcombine.low %v218_v2, %v222_v4 }
 0x102   :  { %v7140_v25 = vcombine.low %v353_v8, %v357_v9  ;;  %v413_v4 = vld [vmem:[#allocation2 + $0x7e0] sm:$0xff] }
 0x103   :  { %1145 = vmatpush1.bf16.msra.mxu1 %v6939_v11  ;;  %v226_v11 = vld [vmem:[#allocation2 + $0x208] sm:$0xff] }
 0x104   :  { %3480 = vmatpush1.bf16.msra.mxu0 %v7068_v12  ;;  %3621 = vmatprep.subr.bf16.mxu1 %v6951_v13  ;;  %v7133_v12 = vcombine.high %v345_v63, %v349_v1  ;;  %v230_v13 = vld [vmem:[#allocation2 + $0x228] sm:$0xff] }
 0x105   :  { %3492 = vmatprep.subr.bf16.mxu0 %v7077_v17  ;;  %v7015_v16 = vcombine.high %v226_v11, %v230_v13  ;;  %v361_v17 = vld [vmem:[#allocation2 + $0x640] sm:$0xff]  ;;  %v7014_v24 = vcombine.low %v226_v11, %v230_v13 }
 0x106   :  { %1163 = vmatmul.mubr.bf16.vlgmr.msra.gmra.mrb[8].mxu1 %v8812_v10  ;;  %v6966_v10 = vcombine.low %v178_v27, %v182_v28  ;;  %v369_v27 = vld [vmem:[#allocation2 + $0x680] sm:$0xff]  ;;  %v7148_v34 = vcombine.low %v361_v17, %v365_v19 }
 0x107   :  { %3482 = vmatmul.mubr.bf16.vlgmr.msra.gmra.mrb[4].mxu0 %v8828_v18  ;;  %3622 = vmatpush1.bf16.msra.mxu1 %v6950_v20  ;;  %v234_v20 = vld [vmem:[#allocation2 + $0x248] sm:$0xff]  ;;  %v373_v28 = vld [vmem:[#allocation2 + $0x6a0] sm:$0xff] }
 0x108   :  { %3493 = vmatpush1.bf16.msra.mxu0 %v7076_v22  ;;  %3623 = vmatprep.subr.bf16.mxu1 %v6959_v23  ;;  %v7141_v22 = vcombine.high %v353_v8, %v357_v9  ;;  %v238_v23 = vld [vmem:[#allocation2 + $0x268] sm:$0xff]  ;;  %v7156_v41 = vcombine.low %v369_v27, %v373_v28  ;;  %v421_v13 = vld [vmem:[#allocation2 + $0x820] sm:$0xff] }
 0x109   :  { %3494 = vmatprep.subr.bf16.mxu0 %v7085_v26  ;;  %3524 = vmatprep.mubr.bf16.mxu0 %v8833_v29  ;;  %v7023_v26 = vcombine.high %v234_v20, %v238_v23  ;;  %v7022_v33 = vcombine.low %v234_v20, %v238_v23  ;;  %v429_v23 = vld [vmem:[#allocation2 + $0x860] sm:$0xff] }
 0x10a   :  { %3653 = vmatprep.mubr.bf16.mxu1 %v8818_v21  ;;  %v333_v21 = vld [vmem:[#allocation2 + $0x560] sm:$0xff] }
 0x10b   :  { %3624 = vmatpush1.bf16.msra.mxu1 %v6958_v30  ;;  %v7117_v58 = vcombine.high %v329_v48, %v333_v21  ;;  %v7116_v61 = vcombine.low %v329_v48, %v333_v21  ;;  %v7149_v30 = vcombine.high %v361_v17, %v365_v19 }
 0x10c   :  { %3495 = vmatpush1.bf16.msra.mxu0 %v7084_v31  ;;  %3625 = vmatprep.subr.bf16.mxu1 %v6967_v32  ;;  %v242_v31 = vld [vmem:[#allocation2 + $0x288] sm:$0xff] }
 0x10d   :  { %3496 = vmatprep.subr.bf16.mxu0 %v7093_v36  ;;  %v246_v32 = vld [vmem:[#allocation2 + $0x2a8] sm:$0xff]  ;;  %v377_v36 = vld [vmem:[#allocation2 + $0x6c0] sm:$0xff] }
 0x10e   :  { %v7031_v35 = vcombine.high %v242_v31, %v246_v32  ;;  %v7030_v40 = vcombine.low %v242_v31, %v246_v32  ;;  %v7164_v21 = vcombine.low %v377_v36, %v381_v37  ;;  %v433_v32 = vld [vmem:[#allocation2 + $0x880] sm:$0xff] }
 0x10f   :  { %3626 = vmatpush1.bf16.msra.mxu1 %v6966_v10  ;;  %v250_v10 = vld [vmem:[#allocation2 + $0x2c8] sm:$0xff] }
 0x110   :  { %3497 = vmatpush1.bf16.msra.mxu0 %v7092_v38  ;;  %3627 = vmatprep.subr.bf16.mxu1 %v6975_v39  ;;  %v7157_v38 = vcombine.high %v369_v27, %v373_v28  ;;  %v254_v39 = vld [vmem:[#allocation2 + $0x2e8] sm:$0xff] }
 0x111   :  { %3498 = vmatprep.subr.bf16.mxu0 %v7101_v43  ;;  %v7039_v42 = vcombine.high %v250_v10, %v254_v39  ;;  %v385_v43 = vld [vmem:[#allocation2 + $0x700] sm:$0xff]  ;;  %v7038_v48 = vcombine.low %v250_v10, %v254_v39  ;;  %v302_v27 = vld [vmem:[#allocation2 + $0x468] sm:$0xff] }
 0x112   :  { %v7172_v56 = vcombine.low %v385_v43, %v389_v44 }
 0x113   :  { %3628 = vmatpush1.bf16.msra.mxu1 %v6974_v45  ;;  %v258_v45 = vld [vmem:[#allocation2 + $0x308] sm:$0xff] }
 0x114   :  { %3499 = vmatpush1.bf16.msra.mxu0 %v7100_v46  ;;  %3629 = vmatprep.subr.bf16.mxu1 %v6983_v47  ;;  %v7165_v46 = vcombine.high %v377_v36, %v381_v37  ;;  %v262_v47 = vld [vmem:[#allocation2 + $0x328] sm:$0xff]  ;;  %v8847_v37 = vld [vmem:[%s9006_s0 + $0x14] ss:$28 sps:$4 sm:$0xff]  }
 0x115   :  { %3500 = vmatprep.subr.bf16.mxu0 %v7109_v50  ;;  %v7047_v49 = vcombine.high %v258_v45, %v262_v47  ;;  %v393_v50 = vld [vmem:[#allocation2 + $0x740] sm:$0xff]  ;;  %v7046_v55 = vcombine.low %v258_v45, %v262_v47 }
 0x116   :  { %v7180_v1 = vcombine.low %v393_v50, %v397_v51  ;;  %v449_v47 = vld [vmem:[#allocation2 + $0x900] sm:$0xff] }
 0x117   :  { %3630 = vmatpush1.bf16.msra.mxu1 %v6982_v52  ;;  %v266_v52 = vld [vmem:[#allocation2 + $0x348] sm:$0xff] }
 0x118   :  { %3501 = vmatpush1.bf16.msra.mxu0 %v7108_v53  ;;  %3631 = vmatprep.subr.bf16.mxu1 %v6991_v54  ;;  %v7173_v53 = vcombine.high %v385_v43, %v389_v44  ;;  %v270_v54 = vld [vmem:[#allocation2 + $0x368] sm:$0xff] }
 0x119   :  { %3502 = vmatprep.subr.bf16.mxu0 %v7117_v58  ;;  %v7055_v57 = vcombine.high %v266_v52, %v270_v54  ;;  %v401_v58 = vld [vmem:[#allocation2 + $0x780] sm:$0xff]  ;;  %v7054_v63 = vcombine.low %v266_v52, %v270_v54  ;;  %v318_v44 = vld [vmem:[#allocation2 + $0x4e8] sm:$0xff] }
 0x11a   :  { %v7188_v9 = vcombine.low %v401_v58, %v405_v59  ;;  %v457_v54 = vld [vmem:[#allocation2 + $0x940] sm:$0xff] }
 0x11b   :  { %3632 = vmatpush1.bf16.msra.mxu1 %v6990_v60  ;;  %v274_v60 = vld [vmem:[#allocation2 + $0x388] sm:$0xff] }
 0x11c   :  { %3503 = vmatpush1.bf16.msra.mxu0 %v7116_v61  ;;  %3633 = vmatprep.subr.bf16.mxu1 %v6999_v62  ;;  %v7181_v61 = vcombine.high %v393_v50, %v397_v51  ;;  %v278_v62 = vld [vmem:[#allocation2 + $0x3a8] sm:$0xff] }
 0x11d   :  { %3504 = vmatprep.subr.bf16.mxu0 %v7125_v3  ;;  %v7063_v2 = vcombine.high %v274_v60, %v278_v62  ;;  %v409_v3 = vld [vmem:[#allocation2 + $0x7c0] sm:$0xff]  ;;  %v7062_v8 = vcombine.low %v274_v60, %v278_v62  ;;  %v326_v50 = vld [vmem:[#allocation2 + $0x528] sm:$0xff] }
 0x11e   :  { %v7196_v19 = vcombine.low %v409_v3, %v413_v4  ;;  %v469_v62 = vld [vmem:[#allocation2 + $0x9a0] sm:$0xff] }
 0x11f   :  { %3634 = vmatpush1.bf16.msra.mxu1 %v6998_v5  ;;  %v282_v5 = vld [vmem:[#allocation2 + $0x3c8] sm:$0xff] }
 0x120   :  { %3505 = vmatpush1.bf16.msra.mxu0 %v7124_v6  ;;  %3635 = vmatprep.subr.bf16.mxu1 %v7007_v7  ;;  %v7189_v6 = vcombine.high %v401_v58, %v405_v59  ;;  %v286_v7 = vld [vmem:[#allocation2 + $0x3e8] sm:$0xff] }
 0x121   :  { %3506 = vmatprep.subr.bf16.mxu0 %v7133_v12  ;;  %v7071_v11 = vcombine.high %v282_v5, %v286_v7  ;;  %v417_v12 = vld [vmem:[#allocation2 + $0x800] sm:$0xff]  ;;  %v7070_v17 = vcombine.low %v282_v5, %v286_v7 }
 0x122   :  { %v477_v7 = vld [vmem:[#allocation2 + $0x9e0] sm:$0xff] }
 0x123   :  { %3636 = vmatpush1.bf16.msra.mxu1 %v7006_v14  ;;  %v290_v14 = vld [vmem:[#allocation2 + $0x408] sm:$0xff] }
 0x124   :  { %3507 = vmatpush1.bf16.msra.mxu0 %v7132_v15  ;;  %3637 = vmatprep.subr.bf16.mxu1 %v7015_v16  ;;  %v7197_v15 = vcombine.high %v409_v3, %v413_v4  ;;  %v294_v16 = vld [vmem:[#allocation2 + $0x428] sm:$0xff] }
 0x125   :  { %3508 = vmatprep.subr.bf16.mxu0 %v7141_v22  ;;  %v7079_v20 = vcombine.high %v290_v14, %v294_v16  ;;  %v425_v22 = vld [vmem:[#allocation2 + $0x840] sm:$0xff]  ;;  %v7078_v28 = vcombine.low %v290_v14, %v294_v16 }
 0x126   :  { %v7213_v36 = vcombine.high %v425_v22, %v429_v23  ;;  %v485_v16 = vld [vmem:[#allocation2 + $0xa20] sm:$0xff] }
 0x127   :  { %3638 = vmatpush1.bf16.msra.mxu1 %v7014_v24  ;;  %v298_v24 = vld [vmem:[#allocation2 + $0x448] sm:$0xff] }
 0x128   :  { %3509 = vmatpush1.bf16.msra.mxu0 %v7140_v25  ;;  %3639 = vmatprep.subr.bf16.mxu1 %v7023_v26  ;;  %v7205_v25 = vcombine.high %v417_v12, %v421_v13  ;;  %v8842_v26 = vld [vmem:[%s9006_s0 + $0x8] ss:$28 sps:$4 sm:$0xff]   ;;  %v7087_v31 = vcombine.high %v298_v24, %v302_v27  ;;  %v7086_v10 = vcombine.low %v298_v24, %v302_v27 }
 0x129   :  { %3510 = vmatprep.subr.bf16.mxu0 %v7149_v30  ;;  %v7204_v30 = vcombine.low %v417_v12, %v421_v13  ;;  %v493_v27 = vld [vmem:[#allocation2 + $0xa60] sm:$0xff] }
 0x12b   :  { %3640 = vmatpush1.bf16.msra.mxu1 %v7022_v33  ;;  %v437_v33 = vld [vmem:[#allocation2 + $0x8a0] sm:$0xff] }
 0x12c   :  { %3511 = vmatpush1.bf16.msra.mxu0 %v7148_v34  ;;  %3641 = vmatprep.subr.bf16.mxu1 %v7031_v35  ;;  %v306_v34 = vld [vmem:[#allocation2 + $0x488] sm:$0xff]  ;;  %v7221_v43 = vcombine.high %v433_v32, %v437_v33  ;;  %v7220_v45 = vcombine.low %v433_v32, %v437_v33 }
 0x12d   :  { %3512 = vmatprep.subr.bf16.mxu0 %v7157_v38  ;;  %v310_v35 = vld [vmem:[#allocation2 + $0x4a8] sm:$0xff]  ;;  %v7212_v38 = vcombine.low %v425_v22, %v429_v23 }
 0x12e   :  { %v7095_v39 = vcombine.high %v306_v34, %v310_v35 }
 0x12f   :  { %3642 = vmatpush1.bf16.msra.mxu1 %v7030_v40  ;;  %v441_v40 = vld [vmem:[#allocation2 + $0x8c0] sm:$0xff] }
 0x130   :  { %3513 = vmatpush1.bf16.msra.mxu0 %v7156_v41  ;;  %3643 = vmatprep.subr.bf16.mxu1 %v7039_v42  ;;  %v445_v41 = vld [vmem:[#allocation2 + $0x8e0] sm:$0xff]  ;;  %v314_v42 = vld [vmem:[#allocation2 + $0x4c8] sm:$0xff] }
 0x131   :  { %3514 = vmatprep.subr.bf16.mxu0 %v7165_v46  ;;  %v7103_v46 = vcombine.high %v314_v42, %v318_v44  ;;  %v7102_v51 = vcombine.low %v314_v42, %v318_v44  ;;  %v7228_v52 = vcombine.low %v441_v40, %v445_v41  ;;  %v509_v44 = vld [vmem:[#allocation2 + $0xae0] sm:$0xff] }
 0x133   :  { %3644 = vmatpush1.bf16.msra.mxu1 %v7038_v48  ;;  %v453_v48 = vld [vmem:[#allocation2 + $0x920] sm:$0xff] }
 0x134   :  { %3515 = vmatpush1.bf16.msra.mxu0 %v7164_v21  ;;  %3645 = vmatprep.subr.bf16.mxu1 %v7047_v49  ;;  %v322_v21 = vld [vmem:[#allocation2 + $0x508] sm:$0xff]  ;;  %v7229_v49 = vcombine.high %v441_v40, %v445_v41  ;;  %v7236_v59 = vcombine.low %v449_v47, %v453_v48 }
 0x135   :  { %3516 = vmatprep.subr.bf16.mxu0 %v7173_v53  ;;  %v7111_v53 = vcombine.high %v322_v21, %v326_v50  ;;  %v7110_v58 = vcombine.low %v322_v21, %v326_v50  ;;  %v517_v50 = vld [vmem:[#allocation2 + $0xb20] sm:$0xff] }
 0x137   :  { %3646 = vmatpush1.bf16.msra.mxu1 %v7046_v55  ;;  %v330_v55 = vld [vmem:[#allocation2 + $0x548] sm:$0xff] }
 0x138   :  { %3517 = vmatpush1.bf16.msra.mxu0 %v7172_v56  ;;  %3647 = vmatprep.subr.bf16.mxu1 %v7055_v57  ;;  %v7237_v56 = vcombine.high %v449_v47, %v453_v48  ;;  %v334_v57 = vld [vmem:[#allocation2 + $0x568] sm:$0xff] }
 0x139   :  { %3518 = vmatprep.subr.bf16.mxu0 %v7181_v61  ;;  %v7119_v60 = vcombine.high %v330_v55, %v334_v57  ;;  %v465_v61 = vld [vmem:[#allocation2 + $0x980] sm:$0xff]  ;;  %v7118_v3 = vcombine.low %v330_v55, %v334_v57 }
 0x13a   :  { %v7252_v13 = vcombine.low %v465_v61, %v469_v62  ;;  %v525_v57 = vld [vmem:[#allocation2 + $0xb60] sm:$0xff] }
 0x13b   :  { %3648 = vmatpush1.bf16.msra.mxu1 %v7054_v63  ;;  %v338_v63 = vld [vmem:[#allocation2 + $0x588] sm:$0xff] }
 0x13c   :  { %3519 = vmatpush1.bf16.msra.mxu0 %v7180_v1  ;;  %3649 = vmatprep.subr.bf16.mxu1 %v7063_v2  ;;  %v342_v2 = vld [vmem:[#allocation2 + $0x5a8] sm:$0xff] }
 0x13d   :  { %3520 = vmatprep.subr.bf16.mxu0 %v7189_v6  ;;  %v7127_v5 = vcombine.high %v338_v63, %v342_v2  ;;  %v473_v6 = vld [vmem:[#allocation2 + $0x9c0] sm:$0xff]  ;;  %v7126_v12 = vcombine.low %v338_v63, %v342_v2 }
 0x13e   :  { %v7260_v23 = vcombine.low %v473_v6, %v477_v7  ;;  %v533_v2 = vld [vmem:[#allocation2 + $0xba0] sm:$0xff] }
 0x13f   :  { %3650 = vmatpush1.bf16.msra.mxu1 %v7062_v8  ;;  %v346_v8 = vld [vmem:[#allocation2 + $0x5c8] sm:$0xff] }
 0x140   :  { %3521 = vmatpush1.bf16.msra.mxu0 %v7188_v9  ;;  %3651 = vmatprep.subr.bf16.mxu1 %v7071_v11  ;;  %v7253_v9 = vcombine.high %v465_v61, %v469_v62  ;;  %v350_v11 = vld [vmem:[#allocation2 + $0x5e8] sm:$0xff] }
 0x141   :  { %3522 = vmatprep.subr.bf16.mxu0 %v7197_v15  ;;  %v7135_v14 = vcombine.high %v346_v8, %v350_v11  ;;  %v481_v15 = vld [vmem:[#allocation2 + $0xa00] sm:$0xff]  ;;  %v7134_v22 = vcombine.low %v346_v8, %v350_v11 }
 0x142   :  { %v7268_v33 = vcombine.low %v481_v15, %v485_v16  ;;  %v541_v11 = vld [vmem:[#allocation2 + $0xbe0] sm:$0xff] }
 0x143   :  { %3652 = vmatpush1.bf16.msra.mxu1 %v7070_v17  ;;  %v354_v17 = vld [vmem:[#allocation2 + $0x608] sm:$0xff] }
 0x144   :  { %3523 = vmatpush1.bf16.msra.mxu0 %v7196_v19  ;;  %3664 = vmatprep.subr.bf16.mxu1 %v7079_v20  ;;  %v7261_v19 = vcombine.high %v473_v6, %v477_v7  ;;  %v358_v20 = vld [vmem:[#allocation2 + $0x628] sm:$0xff] }
 0x145   :  { %3535 = vmatprep.subr.bf16.mxu0 %v7205_v25  ;;  %v7143_v24 = vcombine.high %v354_v17, %v358_v20  ;;  %v489_v25 = vld [vmem:[#allocation2 + $0xa40] sm:$0xff]  ;;  %v7142_v32 = vcombine.low %v354_v17, %v358_v20 }
 0x146   :  { %3654 = vmatmul.mubr.bf16.vlgmr.msra.gmra.mrb[4].mxu1 %v8828_v18  ;;  %v7094_v18 = vcombine.low %v306_v34, %v310_v35  ;;  %v497_v35 = vld [vmem:[#allocation2 + $0xa80] sm:$0xff]  ;;  %v7276_v41 = vcombine.low %v489_v25, %v493_v27 }
 0x147   :  { %3525 = vmatmul.mubr.bf16.vlgmr.msra.gmra.mrb[4].mxu0 %v8842_v26  ;;  %3665 = vmatpush1.bf16.msra.mxu1 %v7078_v28  ;;  %v362_v28 = vld [vmem:[#allocation2 + $0x648] sm:$0xff]  ;;  %v549_v20 = vld [vmem:[#allocation2 + $0xc20] sm:$0xff] }
 0x148   :  { %3536 = vmatpush1.bf16.msra.mxu0 %v7204_v30  ;;  %3666 = vmatprep.subr.bf16.mxu1 %v7087_v31  ;;  %v7269_v30 = vcombine.high %v481_v15, %v485_v16  ;;  %v366_v31 = vld [vmem:[#allocation2 + $0x668] sm:$0xff] }
 0x149   :  { %3537 = vmatprep.subr.bf16.mxu0 %v7213_v36  ;;  %3567 = vmatprep.mubr.bf16.mxu0 %v8847_v37  ;;  %v7151_v34 = vcombine.high %v362_v28, %v366_v31  ;;  %v501_v36 = vld [vmem:[#allocation2 + $0xaa0] sm:$0xff]  ;;  %v7150_v40 = vcombine.low %v362_v28, %v366_v31 }
 0x14a   :  { %3696 = vmatprep.mubr.bf16.mxu1 %v8833_v29  ;;  %v461_v29 = vld [vmem:[#allocation2 + $0x960] sm:$0xff]  ;;  %v7284_v48 = vcombine.low %v497_v35, %v501_v36 }
 0x14b   :  { %3667 = vmatpush1.bf16.msra.mxu1 %v7086_v10  ;;  %v7245_v1 = vcombine.high %v457_v54, %v461_v29  ;;  %v7244_v4 = vcombine.low %v457_v54, %v461_v29  ;;  %v370_v10 = vld [vmem:[#allocation2 + $0x688] sm:$0xff]  ;;  %v557_v31 = vld [vmem:[#allocation2 + $0xc60] sm:$0xff] }
 0x14c   :  { %3538 = vmatpush1.bf16.msra.mxu0 %v7212_v38  ;;  %3668 = vmatprep.subr.bf16.mxu1 %v7095_v39  ;;  %v7277_v38 = vcombine.high %v489_v25, %v493_v27  ;;  %v374_v39 = vld [vmem:[#allocation2 + $0x6a8] sm:$0xff] }
 0x14d   :  { %3539 = vmatprep.subr.bf16.mxu0 %v7221_v43  ;;  %v7159_v42 = vcombine.high %v370_v10, %v374_v39  ;;  %v505_v43 = vld [vmem:[#allocation2 + $0xac0] sm:$0xff]  ;;  %v7158_v47 = vcombine.low %v370_v10, %v374_v39 }
 0x14e   :  { %v7292_v29 = vcombine.low %v505_v43, %v509_v44  ;;  %v561_v39 = vld [vmem:[#allocation2 + $0xc80] sm:$0xff] }
 0x14f   :  { %3669 = vmatpush1.bf16.msra.mxu1 %v7094_v18  ;;  %v378_v18 = vld [vmem:[#allocation2 + $0x6c8] sm:$0xff] }
 0x150   :  { %3540 = vmatpush1.bf16.msra.mxu0 %v7220_v45  ;;  %3670 = vmatprep.subr.bf16.mxu1 %v7103_v46  ;;  %v7285_v45 = vcombine.high %v497_v35, %v501_v36  ;;  %v382_v46 = vld [vmem:[#allocation2 + $0x6e8] sm:$0xff] }
 0x151   :  { %3541 = vmatprep.subr.bf16.mxu0 %v7229_v49  ;;  %v7167_v21 = vcombine.high %v378_v18, %v382_v46  ;;  %v513_v49 = vld [vmem:[#allocation2 + $0xb00] sm:$0xff]  ;;  %v7166_v54 = vcombine.low %v378_v18, %v382_v46  ;;  %v430_v35 = vld [vmem:[#allocation2 + $0x868] sm:$0xff] }
 0x152   :  { %v7300_v62 = vcombine.low %v513_v49, %v517_v50  ;;  %v569_v46 = vld [vmem:[#allocation2 + $0xcc0] sm:$0xff] }
 0x153   :  { %3671 = vmatpush1.bf16.msra.mxu1 %v7102_v51  ;;  %v386_v51 = vld [vmem:[#allocation2 + $0x708] sm:$0xff] }
 0x154   :  { %3542 = vmatpush1.bf16.msra.mxu0 %v7228_v52  ;;  %3672 = vmatprep.subr.bf16.mxu1 %v7111_v53  ;;  %v7293_v52 = vcombine.high %v505_v43, %v509_v44  ;;  %v390_v53 = vld [vmem:[#allocation2 + $0x728] sm:$0xff] }
 0x155   :  { %3543 = vmatprep.subr.bf16.mxu0 %v7237_v56  ;;  %v7175_v55 = vcombine.high %v386_v51, %v390_v53  ;;  %v521_v56 = vld [vmem:[#allocation2 + $0xb40] sm:$0xff]  ;;  %v7174_v61 = vcombine.low %v386_v51, %v390_v53  ;;  %v438_v43 = vld [vmem:[#allocation2 + $0x8a8] sm:$0xff] }
 0x156   :  { %v7308_v7 = vcombine.low %v521_v56, %v525_v57  ;;  %v581_v53 = vld [vmem:[#allocation2 + $0xd20] sm:$0xff] }
 0x157   :  { %3673 = vmatpush1.bf16.msra.mxu1 %v7110_v58  ;;  %v394_v58 = vld [vmem:[#allocation2 + $0x748] sm:$0xff] }
 0x158   :  { %3544 = vmatpush1.bf16.msra.mxu0 %v7236_v59  ;;  %3674 = vmatprep.subr.bf16.mxu1 %v7119_v60  ;;  %v7301_v59 = vcombine.high %v513_v49, %v517_v50  ;;  %v398_v60 = vld [vmem:[#allocation2 + $0x768] sm:$0xff] }
 0x159   :  { %3545 = vmatprep.subr.bf16.mxu0 %v7245_v1  ;;  %v7183_v63 = vcombine.high %v394_v58, %v398_v60  ;;  %v529_v1 = vld [vmem:[#allocation2 + $0xb80] sm:$0xff]  ;;  %v7182_v6 = vcombine.low %v394_v58, %v398_v60  ;;  %v446_v49 = vld [vmem:[#allocation2 + $0x8e8] sm:$0xff] }
 0x15a   :  { %v7316_v16 = vcombine.low %v529_v1, %v533_v2  ;;  %v458_v60 = vld [vmem:[#allocation2 + $0x948] sm:$0xff] }
 0x15b   :  { %3675 = vmatpush1.bf16.msra.mxu1 %v7118_v3  ;;  %v402_v3 = vld [vmem:[#allocation2 + $0x788] sm:$0xff] }
 0x15c   :  { %3546 = vmatpush1.bf16.msra.mxu0 %v7244_v4  ;;  %3676 = vmatprep.subr.bf16.mxu1 %v7127_v5  ;;  %v7309_v4 = vcombine.high %v521_v56, %v525_v57  ;;  %v406_v5 = vld [vmem:[#allocation2 + $0x7a8] sm:$0xff] }
 0x15d   :  { %3547 = vmatprep.subr.bf16.mxu0 %v7253_v9  ;;  %v7191_v8 = vcombine.high %v402_v3, %v406_v5  ;;  %v537_v9 = vld [vmem:[#allocation2 + $0xbc0] sm:$0xff]  ;;  %v7190_v15 = vcombine.low %v402_v3, %v406_v5  ;;  %v466_v5 = vld [vmem:[#allocation2 + $0x988] sm:$0xff] }
 0x15e   :  { %v7324_v27 = vcombine.low %v537_v9, %v541_v11  ;;  %v593_v3 = vld [vmem:[#allocation2 + $0xd80] sm:$0xff] }
 0x15f   :  { %3677 = vmatpush1.bf16.msra.mxu1 %v7126_v12  ;;  %v410_v12 = vld [vmem:[#allocation2 + $0x7c8] sm:$0xff] }
 0x160   :  { %3548 = vmatpush1.bf16.msra.mxu0 %v7252_v13  ;;  %3678 = vmatprep.subr.bf16.mxu1 %v7135_v14  ;;  %v7317_v13 = vcombine.high %v529_v1, %v533_v2  ;;  %v414_v14 = vld [vmem:[#allocation2 + $0x7e8] sm:$0xff] }
 0x161   :  { %3549 = vmatprep.subr.bf16.mxu0 %v7261_v19  ;;  %v7199_v17 = vcombine.high %v410_v12, %v414_v14  ;;  %v545_v19 = vld [vmem:[#allocation2 + $0xc00] sm:$0xff]  ;;  %v7198_v25 = vcombine.low %v410_v12, %v414_v14 }
 0x162   :  { %v7332_v10 = vcombine.low %v545_v19, %v549_v20  ;;  %v601_v12 = vld [vmem:[#allocation2 + $0xdc0] sm:$0xff] }
 0x163   :  { %3679 = vmatpush1.bf16.msra.mxu1 %v7134_v22  ;;  %v418_v22 = vld [vmem:[#allocation2 + $0x808] sm:$0xff] }
 0x164   :  { %3550 = vmatpush1.bf16.msra.mxu0 %v7260_v23  ;;  %3680 = vmatprep.subr.bf16.mxu1 %v7143_v24  ;;  %v7325_v23 = vcombine.high %v537_v9, %v541_v11  ;;  %v422_v24 = vld [vmem:[#allocation2 + $0x828] sm:$0xff] }
 0x165   :  { %3551 = vmatprep.subr.bf16.mxu0 %v7269_v30  ;;  %v7207_v28 = vcombine.high %v418_v22, %v422_v24  ;;  %v553_v30 = vld [vmem:[#allocation2 + $0xc40] sm:$0xff]  ;;  %v7206_v36 = vcombine.low %v418_v22, %v422_v24 }
 0x166   :  { %v7340_v18 = vcombine.low %v553_v30, %v557_v31 }
 0x167   :  { %3681 = vmatpush1.bf16.msra.mxu1 %v7142_v32  ;;  %v426_v32 = vld [vmem:[#allocation2 + $0x848] sm:$0xff] }
 0x168   :  { %3552 = vmatpush1.bf16.msra.mxu0 %v7268_v33  ;;  %3682 = vmatprep.subr.bf16.mxu1 %v7151_v34  ;;  %v7333_v33 = vcombine.high %v545_v19, %v549_v20  ;;  %v8856_v34 = vld [vmem:[%s9006_s0 + $0x10] ss:$28 sps:$4 sm:$0xff]   ;;  %v7214_v44 = vcombine.low %v426_v32, %v430_v35  ;;  %v605_v19 = vld [vmem:[#allocation2 + $0xde0] sm:$0xff] }
 0x169   :  { %3553 = vmatprep.subr.bf16.mxu0 %v7277_v38  ;;  %v7215_v38 = vcombine.high %v426_v32, %v430_v35  ;;  %v167_v32 = vld [vmem:[#allocation2 + $0x30] sm:$0xff]  ;;  %v7388_v35 = vcombine.low %v601_v12, %v605_v19 }
 0x16b   :  { %3683 = vmatpush1.bf16.msra.mxu1 %v7150_v40  ;;  %v565_v40 = vld [vmem:[#allocation2 + $0xca0] sm:$0xff] }
 0x16c   :  { %3554 = vmatpush1.bf16.msra.mxu0 %v7276_v41  ;;  %3684 = vmatprep.subr.bf16.mxu1 %v7159_v42  ;;  %v434_v41 = vld [vmem:[#allocation2 + $0x888] sm:$0xff]  ;;  %v7341_v42 = vcombine.high %v553_v30, %v557_v31  ;;  %v7348_v50 = vcombine.low %v561_v39, %v565_v40  ;;  %v163_v31 = vld [vmem:[#allocation2 + $0x10] sm:$0xff] }
 0x16d   :  { %3555 = vmatprep.subr.bf16.mxu0 %v7285_v45  ;;  %v7223_v45 = vcombine.high %v434_v41, %v438_v43  ;;  %v486_v30 = vld [vmem:[#allocation2 + $0xa28] sm:$0xff] }
 0x16f   :  { %3685 = vmatpush1.bf16.msra.mxu1 %v7158_v47  ;;  %v573_v47 = vld [vmem:[#allocation2 + $0xce0] sm:$0xff] }
 0x170   :  { %3556 = vmatpush1.bf16.msra.mxu0 %v7284_v48  ;;  %3686 = vmatprep.subr.bf16.mxu1 %v7167_v21  ;;  %v442_v48 = vld [vmem:[#allocation2 + $0x8c8] sm:$0xff]  ;;  %v7349_v21 = vcombine.high %v561_v39, %v565_v40  ;;  %v7356_v57 = vcombine.low %v569_v46, %v573_v47  ;;  %v171_v40 = vld [vmem:[#allocation2 + $0x50] sm:$0xff] }
 0x171   :  { %3557 = vmatprep.subr.bf16.mxu0 %v7293_v52  ;;  %v7231_v51 = vcombine.high %v442_v48, %v446_v49  ;;  %v577_v52 = vld [vmem:[#allocation2 + $0xd00] sm:$0xff]  ;;  %v7230_v56 = vcombine.low %v442_v48, %v446_v49  ;;  %v494_v39 = vld [vmem:[#allocation2 + $0xa68] sm:$0xff]  ;;  %v179_v48 = vld [vmem:[#allocation2 + $0x90] sm:$0xff] }
 0x172   :  { %v7364_v1 = vcombine.low %v577_v52, %v581_v53 }
 0x173   :  { %3687 = vmatpush1.bf16.msra.mxu1 %v7166_v54  ;;  %v450_v54 = vld [vmem:[#allocation2 + $0x908] sm:$0xff] }
 0x174   :  { %3558 = vmatpush1.bf16.msra.mxu0 %v7292_v29  ;;  %3688 = vmatprep.subr.bf16.mxu1 %v7175_v55  ;;  %v7357_v29 = vcombine.high %v569_v46, %v573_v47  ;;  %v454_v55 = vld [vmem:[#allocation2 + $0x928] sm:$0xff] }
 0x175   :  { %3559 = vmatprep.subr.bf16.mxu0 %v7301_v59  ;;  %v7239_v58 = vcombine.high %v450_v54, %v454_v55  ;;  %v585_v59 = vld [vmem:[#allocation2 + $0xd40] sm:$0xff]  ;;  %v498_v46 = vld [vmem:[#allocation2 + $0xa88] sm:$0xff] }
 0x176   :  { %v502_v47 = vld [vmem:[#allocation2 + $0xaa8] sm:$0xff] }
 0x177   :  { %3689 = vmatpush1.bf16.msra.mxu1 %v7174_v61  ;;  %v7365_v61 = vcombine.high %v577_v52, %v581_v53  ;;  %v506_v52 = vld [vmem:[#allocation2 + $0xac8] sm:$0xff] }
 0x178   :  { %3560 = vmatpush1.bf16.msra.mxu0 %v7300_v62  ;;  %3690 = vmatprep.subr.bf16.mxu1 %v7183_v63  ;;  %v462_v62 = vld [vmem:[#allocation2 + $0x968] sm:$0xff]  ;;  %v7238_v63 = vcombine.low %v450_v54, %v454_v55  ;;  %v8879_v54 = vld [vmem:[%s9006_s0 + $0x4] ss:$28 sps:$4 sm:$0xff]   ;;  %v191_v55 = vld [vmem:[#allocation2 + $0xf0] sm:$0xff] }
 0x179   :  { %3561 = vmatprep.subr.bf16.mxu0 %v7309_v4  ;;  %v7247_v2 = vcombine.high %v458_v60, %v462_v62  ;;  %v597_v4 = vld [vmem:[#allocation2 + $0xda0] sm:$0xff]  ;;  %v510_v53 = vld [vmem:[#allocation2 + $0xae8] sm:$0xff] }
 0x17a   :  { %v7380_v24 = vcombine.low %v593_v3, %v597_v4 }
 0x17b   :  { %3691 = vmatpush1.bf16.msra.mxu1 %v7182_v6 }
 0x17c   :  { %3562 = vmatpush1.bf16.msra.mxu0 %v7308_v7  ;;  %3692 = vmatprep.subr.bf16.mxu1 %v7191_v8  ;;  %v470_v7 = vld [vmem:[#allocation2 + $0x9a8] sm:$0xff]  ;;  %v7246_v8 = vcombine.low %v458_v60, %v462_v62  ;;  %v199_v62 = vld [vmem:[#allocation2 + $0x130] sm:$0xff] }
 0x17d   :  { %3563 = vmatprep.subr.bf16.mxu0 %v7317_v13  ;;  %v7255_v11 = vcombine.high %v466_v5, %v470_v7  ;;  %v474_v13 = vld [vmem:[#allocation2 + $0x9c8] sm:$0xff]  ;;  %v7254_v22 = vcombine.low %v466_v5, %v470_v7  ;;  %v207_v7 = vld [vmem:[#allocation2 + $0x170] sm:$0xff] }
 0x17e   :  { %v518_v60 = vld [vmem:[#allocation2 + $0xb28] sm:$0xff] }
 0x17f   :  { %3693 = vmatpush1.bf16.msra.mxu1 %v7190_v15  ;;  %v7381_v15 = vcombine.high %v593_v3, %v597_v4  ;;  %v522_v4 = vld [vmem:[#allocation2 + $0xb48] sm:$0xff] }
 0x180   :  { %3564 = vmatpush1.bf16.msra.mxu0 %v7316_v16  ;;  %3694 = vmatprep.subr.bf16.mxu1 %v7199_v17  ;;  %v478_v16 = vld [vmem:[#allocation2 + $0x9e8] sm:$0xff] }
 0x181   :  { %3565 = vmatprep.subr.bf16.mxu0 %v7325_v23  ;;  %v526_v5 = vld [vmem:[#allocation2 + $0xb68] sm:$0xff] }
 0x183   :  { %3695 = vmatpush1.bf16.msra.mxu1 %v7198_v25  ;;  %v7263_v25 = vcombine.high %v474_v13, %v478_v16 }
 0x184   :  { %3566 = vmatpush1.bf16.msra.mxu0 %v7324_v27  ;;  %3707 = vmatprep.subr.bf16.mxu1 %v7207_v28  ;;  %v7389_v27 = vcombine.high %v601_v12, %v605_v19  ;;  %v482_v28 = vld [vmem:[#allocation2 + $0xa08] sm:$0xff]  ;;  %v215_v19 = vld [vmem:[#allocation2 + $0x1b0] sm:$0xff] }
 0x185   :  { %3578 = vmatprep.subr.bf16.mxu0 %v7333_v33  ;;  %v7262_v33 = vcombine.low %v474_v13, %v478_v16  ;;  %v530_v13 = vld [vmem:[#allocation2 + $0xb88] sm:$0xff]  ;;  %v211_v16 = vld [vmem:[#allocation2 + $0x190] sm:$0xff] }
 0x186   :  { %3697 = vmatmul.mubr.bf16.vlgmr.msra.gmra.mrb[4].mxu1 %v8842_v26  ;;  %v7222_v26 = vcombine.low %v434_v41, %v438_v43  ;;  %v175_v41 = vld [vmem:[#allocation2 + $0x70] sm:$0xff]  ;;  %v7270_v43 = vcombine.low %v482_v28, %v486_v30 }
 0x187   :  { %3568 = vmatmul.mubr.bf16.vlgmr.msra.gmra.mrb[4].mxu0 %v8856_v34  ;;  %3708 = vmatpush1.bf16.msra.mxu1 %v7206_v36  ;;  %v7271_v36 = vcombine.high %v482_v28, %v486_v30  ;;  %v538_v28 = vld [vmem:[#allocation2 + $0xbc8] sm:$0xff] }
 0x188   :  { %3579 = vmatpush1.bf16.msra.mxu0 %v7332_v10  ;;  %3709 = vmatprep.subr.bf16.mxu1 %v7215_v38  ;;  %v6953_v10 = vcombine.high %v163_v31, %v167_v32  ;;  %v490_v38 = vld [vmem:[#allocation2 + $0xa48] sm:$0xff] }
 0x189   :  { %3580 = vmatprep.subr.bf16.mxu0 %v7341_v42  ;;  %3610 = vmatprep.mubr.bf16.mxu0 %v8625_v0  ;;  %v8873_v42 = vld [vmem:[%s9006_s0 + $0x18] ss:$28 sps:$4 sm:$0xff]   ;;  %v7278_v49 = vcombine.low %v490_v38, %v494_v39  ;;  %v542_v30 = vld [vmem:[#allocation2 + $0xbe8] sm:$0xff] }
 0x18a   :  { %3739 = vmatprep.mubr.bf16.mxu1 %v8847_v37  ;;  %v589_v37 = vld [vmem:[#allocation2 + $0xd60] sm:$0xff] }
 0x18b   :  { %3710 = vmatpush1.bf16.msra.mxu1 %v7214_v44  ;;  %v7373_v6 = vcombine.high %v585_v59, %v589_v37  ;;  %v7372_v9 = vcombine.low %v585_v59, %v589_v37  ;;  %v6952_v44 = vcombine.low %v163_v31, %v167_v32  ;;  %v514_v37 = vld [vmem:[#allocation2 + $0xb08] sm:$0xff]  ;;  %v219_v31 = vld [vmem:[#allocation2 + $0x1d0] sm:$0xff] }
 0x18c   :  { %3581 = vmatpush1.bf16.msra.mxu0 %v7340_v18  ;;  %3711 = vmatprep.subr.bf16.mxu1 %v7223_v45  ;;  %v7279_v18 = vcombine.high %v490_v38, %v494_v39  ;;  %v6961_v45 = vcombine.high %v171_v40, %v175_v41  ;;  %v223_v32 = vld [vmem:[#allocation2 + $0x1f0] sm:$0xff]  ;;  %v546_v38 = vld [vmem:[#allocation2 + $0xc08] sm:$0xff] }
 0x18d   :  { %3582 = vmatprep.subr.bf16.mxu0 %v7349_v21  ;;  %v183_v21 = vld [vmem:[#allocation2 + $0xb0] sm:$0xff]  ;;  %v550_v39 = vld [vmem:[#allocation2 + $0xc28] sm:$0xff] }
 0x18f   :  { %3712 = vmatpush1.bf16.msra.mxu1 %v7222_v26  ;;  %v6960_v26 = vcombine.low %v171_v40, %v175_v41  ;;  %v227_v40 = vld [vmem:[#allocation2 + $0x210] sm:$0xff] }
 0x190   :  { %3583 = vmatpush1.bf16.msra.mxu0 %v7348_v50  ;;  %3713 = vmatprep.subr.bf16.mxu1 %v7231_v51  ;;  %v7287_v50 = vcombine.high %v498_v46, %v502_v47  ;;  %v6969_v51 = vcombine.high %v179_v48, %v183_v21  ;;  %v231_v41 = vld [vmem:[#allocation2 + $0x230] sm:$0xff] }
 0x191   :  { %3584 = vmatprep.subr.bf16.mxu0 %v7357_v29  ;;  %v187_v29 = vld [vmem:[#allocation2 + $0xd0] sm:$0xff] }
 0x192   :  { %v6977_v59 = vcombine.high %v187_v29, %v191_v55 }
 0x193   :  { %3714 = vmatpush1.bf16.msra.mxu1 %v7230_v56  ;;  %v7286_v56 = vcombine.low %v498_v46, %v502_v47  ;;  %v554_v46 = vld [vmem:[#allocation2 + $0xc48] sm:$0xff] }
 0x194   :  { %3585 = vmatpush1.bf16.msra.mxu0 %v7356_v57  ;;  %3715 = vmatprep.subr.bf16.mxu1 %v7239_v58  ;;  %v6968_v57 = vcombine.low %v179_v48, %v183_v21  ;;  %v7295_v58 = vcombine.high %v506_v52, %v510_v53  ;;  %v558_v47 = vld [vmem:[#allocation2 + $0xc68] sm:$0xff]  ;;  %v235_v48 = vld [vmem:[#allocation2 + $0x250] sm:$0xff] }
 0x195   :  { %3586 = vmatprep.subr.bf16.mxu0 %v7365_v61  ;;  %v195_v61 = vld [vmem:[#allocation2 + $0x110] sm:$0xff] }
 0x196   :  { %v6985_v3 = vcombine.high %v195_v61, %v199_v62  ;;  %v239_v21 = vld [vmem:[#allocation2 + $0x270] sm:$0xff] }
 0x197   :  { %3716 = vmatpush1.bf16.msra.mxu1 %v7238_v63  ;;  %v7294_v63 = vcombine.low %v506_v52, %v510_v53  ;;  %v562_v52 = vld [vmem:[#allocation2 + $0xc88] sm:$0xff] }
 0x198   :  { %3587 = vmatpush1.bf16.msra.mxu0 %v7364_v1  ;;  %3717 = vmatprep.subr.bf16.mxu1 %v7247_v2  ;;  %v6976_v1 = vcombine.low %v187_v29, %v191_v55  ;;  %v7303_v2 = vcombine.high %v514_v37, %v518_v60  ;;  %v566_v53 = vld [vmem:[#allocation2 + $0xca8] sm:$0xff]  ;;  %v243_v29 = vld [vmem:[#allocation2 + $0x290] sm:$0xff] }
 0x199   :  { %v8862_v14 = vpop.f32.mrb[0].mxu1  ;;  %3588 = vmatprep.subr.bf16.mxu0 %v7373_v6  ;;  %v203_v6 = vld [vmem:[#allocation2 + $0x150] sm:$0xff] }
 0x19a   :  { %v8864_v17 = vpop.f32.mrb[1].mxu1  ;;  %v6993_v12 = vcombine.high %v203_v6, %v207_v7  ;;  %v247_v55 = vld [vmem:[#allocation2 + $0x2b0] sm:$0xff] }
 0x19b   :  { %v8866_v20 = vpop.f32.mrb[2].mxu1  ;;  %3718 = vmatpush1.bf16.msra.mxu1 %v7246_v8  ;;  %v7302_v8 = vcombine.low %v514_v37, %v518_v60  ;;  %v570_v37 = vld [vmem:[#allocation2 + $0xcc8] sm:$0xff] }
 0x19c   :  { %3589 = vmatpush1.bf16.msra.mxu0 %v7372_v9  ;;  %v8868_v23 = vpop.f32.mrb[3].mxu1  ;;  %3719 = vmatprep.subr.bf16.mxu1 %v7255_v11  ;;  %v6984_v9 = vcombine.low %v195_v61, %v199_v62  ;;  %v7311_v11 = vcombine.high %v522_v4, %v526_v5  ;;  %v574_v60 = vld [vmem:[#allocation2 + $0xce8] sm:$0xff]  ;;  %v251_v61 = vld [vmem:[#allocation2 + $0x2d0] sm:$0xff] }
 0x19d   :  { %3590 = vmatprep.subr.bf16.mxu0 %v7381_v15  ;;  %v534_v15 = vld [vmem:[#allocation2 + $0xba8] sm:$0xff]  ;;  %v255_v62 = vld [vmem:[#allocation2 + $0x2f0] sm:$0xff] }
 0x19f   :  { %3720 = vmatpush1.bf16.msra.mxu1 %v7254_v22  ;;  %v7310_v22 = vcombine.low %v522_v4, %v526_v5  ;;  %v582_v4 = vld [vmem:[#allocation2 + $0xd28] sm:$0xff]  ;;  %v259_v5 = vld [vmem:[#allocation2 + $0x310] sm:$0xff] }
 0x1a0   :  { %3591 = vmatpush1.bf16.msra.mxu0 %v7380_v24  ;;  %3721 = vmatprep.subr.bf16.mxu1 %v7263_v25  ;;  %v6992_v24 = vcombine.low %v203_v6, %v207_v7  ;;  %v7319_v25 = vcombine.high %v530_v13, %v534_v15  ;;  %v263_v6 = vld [vmem:[#allocation2 + $0x330] sm:$0xff]  ;;  %v7358_v7 = vcombine.low %v570_v37, %v574_v60 }
 0x1a1   :  { %3592 = vmatprep.subr.bf16.mxu0 %v7389_v27  ;;  %v7001_v27 = vcombine.high %v211_v16, %v215_v19 }
 0x1a3   :  { %3722 = vmatpush1.bf16.msra.mxu1 %v7262_v33  ;;  %v7318_v33 = vcombine.low %v530_v13, %v534_v15  ;;  %v590_v13 = vld [vmem:[#allocation2 + $0xd68] sm:$0xff]  ;;  %v267_v15 = vld [vmem:[#allocation2 + $0x350] sm:$0xff] }
 0x1a4   :  { %3593 = vmatpush1.bf16.msra.mxu0 %v7388_v35  ;;  %3723 = vmatprep.subr.bf16.mxu1 %v7271_v36  ;;  %v7000_v35 = vcombine.low %v211_v16, %v215_v19  ;;  %v7327_v36 = vcombine.high %v538_v28, %v542_v30  ;;  %v271_v16 = vld [vmem:[#allocation2 + $0x370] sm:$0xff] }
 0x1a5   :  { %3793 = vmatprep.subr.bf16.mxu0 %v6953_v10  ;;  %v7009_v10 = vcombine.high %v219_v31, %v223_v32 }
 0x1a7   :  { %3611 = vmatmul.mubr.bf16.vlgmr.msra.gmra.mrb[4].mxu0 %v8873_v42  ;;  %3724 = vmatpush1.bf16.msra.mxu1 %v7270_v43  ;;  %v7326_v43 = vcombine.low %v538_v28, %v542_v30  ;;  %v598_v28 = vld [vmem:[#allocation2 + $0xda8] sm:$0xff]  ;;  %v275_v30 = vld [vmem:[#allocation2 + $0x390] sm:$0xff] }
 0x1a8   :  { %3794 = vmatpush1.bf16.msra.mxu0 %v6952_v44  ;;  %3725 = vmatprep.subr.bf16.mxu1 %v7279_v18  ;;  %v7008_v44 = vcombine.low %v219_v31, %v223_v32  ;;  %v7335_v18 = vcombine.high %v546_v38, %v550_v39  ;;  %v279_v31 = vld [vmem:[#allocation2 + $0x3b0] sm:$0xff] }
 0x1a9   :  { %3795 = vmatprep.subr.bf16.mxu0 %v6961_v45  ;;  %3825 = vmatprep.mubr.bf16.mxu0 %v8879_v54  ;;  %v7017_v45 = vcombine.high %v227_v40, %v231_v41 }
 0x1ab   :  { %3726 = vmatpush1.bf16.msra.mxu1 %v7278_v49  ;;  %v7334_v49 = vcombine.low %v546_v38, %v550_v39  ;;  %v606_v38 = vld [vmem:[#allocation2 + $0xde8] sm:$0xff]  ;;  %v283_v39 = vld [vmem:[#allocation2 + $0x3d0] sm:$0xff] }
 0x1ac   :  { %3796 = vmatpush1.bf16.msra.mxu0 %v6960_v26  ;;  %3727 = vmatprep.subr.bf16.mxu1 %v7287_v50  ;;  %v7016_v26 = vcombine.low %v227_v40, %v231_v41  ;;  %v7343_v50 = vcombine.high %v554_v46, %v558_v47  ;;  %v287_v40 = vld [vmem:[#allocation2 + $0x3f0] sm:$0xff] }
 0x1ad   :  { %3797 = vmatprep.subr.bf16.mxu0 %v6969_v51  ;;  %v7025_v51 = vcombine.high %v235_v48, %v239_v21 }
 0x1af   :  { %3728 = vmatpush1.bf16.msra.mxu1 %v7286_v56  ;;  %v7342_v56 = vcombine.low %v554_v46, %v558_v47  ;;  %v168_v46 = vld [vmem:[#allocation2 + $0x38] sm:$0xff]  ;;  %v291_v47 = vld [vmem:[#allocation2 + $0x410] sm:$0xff] }
 0x1b0   :  { %3798 = vmatpush1.bf16.msra.mxu0 %v6968_v57  ;;  %3729 = vmatprep.subr.bf16.mxu1 %v7295_v58  ;;  %v7024_v57 = vcombine.low %v235_v48, %v239_v21  ;;  %v7351_v58 = vcombine.high %v562_v52, %v566_v53  ;;  %v295_v48 = vld [vmem:[#allocation2 + $0x430] sm:$0xff] }
 0x1b1   :  { %3799 = vmatprep.subr.bf16.mxu0 %v6977_v59  ;;  %v7033_v59 = vcombine.high %v243_v29, %v247_v55 }
 0x1b3   :  { %3730 = vmatpush1.bf16.msra.mxu1 %v7294_v63  ;;  %v7350_v63 = vcombine.low %v562_v52, %v566_v53  ;;  %v176_v52 = vld [vmem:[#allocation2 + $0x78] sm:$0xff]  ;;  %v299_v53 = vld [vmem:[#allocation2 + $0x450] sm:$0xff] }
 0x1b4   :  { %3800 = vmatpush1.bf16.msra.mxu0 %v6976_v1  ;;  %3731 = vmatprep.subr.bf16.mxu1 %v7303_v2  ;;  %v7359_v1 = vcombine.high %v570_v37, %v574_v60  ;;  %v7041_v2 = vcombine.high %v251_v61, %v255_v62  ;;  %v184_v37 = vld [vmem:[#allocation2 + $0xb8] sm:$0xff]  ;;  %v307_v60 = vld [vmem:[#allocation2 + $0x490] sm:$0xff] }
 0x1b5   :  { %3801 = vmatprep.subr.bf16.mxu0 %v6985_v3  ;;  %v578_v3 = vld [vmem:[#allocation2 + $0xd08] sm:$0xff] }
 0x1b6   :  { %v7366_v19 = vcombine.low %v578_v3, %v582_v4 }
 0x1b7   :  { %3732 = vmatpush1.bf16.msra.mxu1 %v7302_v8  ;;  %v7040_v8 = vcombine.low %v251_v61, %v255_v62  ;;  %v311_v61 = vld [vmem:[#allocation2 + $0x4b0] sm:$0xff]  ;;  %v8888_v62 = vld [vmem:[%s9006_s0] ss:$28 sps:$4 sm:$0xff]  }
 0x1b8   :  { %3802 = vmatpush1.bf16.msra.mxu0 %v6984_v9  ;;  %3733 = vmatprep.subr.bf16.mxu1 %v7311_v11  ;;  %v7367_v9 = vcombine.high %v578_v3, %v582_v4  ;;  %v7049_v11 = vcombine.high %v259_v5, %v263_v6  ;;  %v188_v3 = vld [vmem:[#allocation2 + $0xd8] sm:$0xff] }
 0x1b9   :  { %3803 = vmatprep.subr.bf16.mxu0 %v6993_v12  ;;  %v586_v12 = vld [vmem:[#allocation2 + $0xd48] sm:$0xff]  ;;  %v192_v4 = vld [vmem:[#allocation2 + $0xf8] sm:$0xff] }
 0x1ba   :  { %v7374_v32 = vcombine.low %v586_v12, %v590_v13 }
 0x1bb   :  { %3734 = vmatpush1.bf16.msra.mxu1 %v7310_v22  ;;  %v7048_v22 = vcombine.low %v259_v5, %v263_v6  ;;  %v315_v5 = vld [vmem:[#allocation2 + $0x4d0] sm:$0xff] }
 0x1bc   :  { %3804 = vmatpush1.bf16.msra.mxu0 %v6992_v24  ;;  %3735 = vmatprep.subr.bf16.mxu1 %v7319_v25  ;;  %v7375_v24 = vcombine.high %v586_v12, %v590_v13  ;;  %v7057_v25 = vcombine.high %v267_v15, %v271_v16  ;;  %v319_v6 = vld [vmem:[#allocation2 + $0x4f0] sm:$0xff]  ;;  %v196_v12 = vld [vmem:[#allocation2 + $0x118] sm:$0xff] }
 0x1bd   :  { %3805 = vmatprep.subr.bf16.mxu0 %v7001_v27  ;;  %v594_v27 = vld [vmem:[#allocation2 + $0xd88] sm:$0xff]  ;;  %v200_v13 = vld [vmem:[#allocation2 + $0x138] sm:$0xff] }
 0x1be   :  { %v7382_v41 = vcombine.low %v594_v27, %v598_v28 }
 0x1bf   :  { %3736 = vmatpush1.bf16.msra.mxu1 %v7318_v33  ;;  %v7056_v33 = vcombine.low %v267_v15, %v271_v16  ;;  %v323_v15 = vld [vmem:[#allocation2 + $0x510] sm:$0xff] }
 0x1c0   :  { %3806 = vmatpush1.bf16.msra.mxu0 %v7000_v35  ;;  %3737 = vmatprep.subr.bf16.mxu1 %v7327_v36  ;;  %v7383_v35 = vcombine.high %v594_v27, %v598_v28  ;;  %v7065_v36 = vcombine.high %v275_v30, %v279_v31  ;;  %v327_v16 = vld [vmem:[#allocation2 + $0x530] sm:$0xff]  ;;  %v208_v27 = vld [vmem:[#allocation2 + $0x178] sm:$0xff] }
 0x1c1   :  { %3807 = vmatprep.subr.bf16.mxu0 %v7009_v10  ;;  %v602_v10 = vld [vmem:[#allocation2 + $0xdc8] sm:$0xff]  ;;  %v331_v28 = vld [vmem:[#allocation2 + $0x550] sm:$0xff] }
 0x1c2   :  { %v7390_v21 = vcombine.low %v602_v10, %v606_v38 }
 0x1c3   :  { %3738 = vmatpush1.bf16.msra.mxu1 %v7326_v43  ;;  %v7064_v43 = vcombine.low %v275_v30, %v279_v31  ;;  %v335_v30 = vld [vmem:[#allocation2 + $0x570] sm:$0xff]  ;;  %v6986_v31 = vcombine.low %v196_v12, %v200_v13 }
 0x1c4   :  { %3808 = vmatpush1.bf16.msra.mxu0 %v7008_v44  ;;  %3750 = vmatprep.subr.bf16.mxu1 %v7335_v18  ;;  %v7391_v44 = vcombine.high %v602_v10, %v606_v38  ;;  %v7073_v18 = vcombine.high %v283_v39, %v287_v40  ;;  %v216_v10 = vld [vmem:[#allocation2 + $0x1b8] sm:$0xff]  ;;  %v339_v38 = vld [vmem:[#allocation2 + $0x590] sm:$0xff] }
 0x1c5   :  { %3809 = vmatprep.subr.bf16.mxu0 %v7017_v45  ;;  %v164_v45 = vld [vmem:[#allocation2 + $0x18] sm:$0xff] }
 0x1c6   :  { %3740 = vmatmul.mubr.bf16.vlgmr.msra.gmra.mrb[4].mxu1 %v8856_v34  ;;  %v7032_v34 = vcombine.low %v243_v29, %v247_v55  ;;  %v303_v29 = vld [vmem:[#allocation2 + $0x470] sm:$0xff]  ;;  %v6954_v55 = vcombine.low %v164_v45, %v168_v46 }
 0x1c7   :  { %3751 = vmatpush1.bf16.msra.mxu1 %v7334_v49  ;;  %3782 = vmatprep.mubr.bf16.mxu1 %v8625_v0  ;;  %v7072_v49 = vcombine.low %v283_v39, %v287_v40  ;;  %v343_v39 = vld [vmem:[#allocation2 + $0x5b0] sm:$0xff] }
 0x1c8   :  { %3810 = vmatpush1.bf16.msra.mxu0 %v7016_v26  ;;  %3752 = vmatprep.subr.bf16.mxu1 %v7343_v50  ;;  %v6955_v26 = vcombine.high %v164_v45, %v168_v46  ;;  %v7081_v50 = vcombine.high %v291_v47, %v295_v48  ;;  %v224_v45 = vld [vmem:[#allocation2 + $0x1f8] sm:$0xff]  ;;  %v347_v46 = vld [vmem:[#allocation2 + $0x5d0] sm:$0xff] }
 0x1c9   :  { %3811 = vmatprep.subr.bf16.mxu0 %v7025_v51  ;;  %v172_v51 = vld [vmem:[#allocation2 + $0x58] sm:$0xff] }
 0x1cb   :  { %3753 = vmatpush1.bf16.msra.mxu1 %v7342_v56  ;;  %v7080_v56 = vcombine.low %v291_v47, %v295_v48  ;;  %v351_v47 = vld [vmem:[#allocation2 + $0x5f0] sm:$0xff] }
 0x1cc   :  { %3812 = vmatpush1.bf16.msra.mxu0 %v7024_v57  ;;  %3754 = vmatprep.subr.bf16.mxu1 %v7351_v58  ;;  %v6963_v57 = vcombine.high %v172_v51, %v176_v52  ;;  %v7089_v58 = vcombine.high %v299_v53, %v303_v29 }
 0x1cd   :  { %3813 = vmatprep.subr.bf16.mxu0 %v7033_v59  ;;  %v180_v59 = vld [vmem:[#allocation2 + $0x98] sm:$0xff] }
 0x1cf   :  { %3755 = vmatpush1.bf16.msra.mxu1 %v7350_v63  ;;  %v6962_v63 = vcombine.low %v172_v51, %v176_v52  ;;  %v232_v51 = vld [vmem:[#allocation2 + $0x238] sm:$0xff]  ;;  %v355_v52 = vld [vmem:[#allocation2 + $0x610] sm:$0xff] }
 0x1d0   :  { %3814 = vmatpush1.bf16.msra.mxu0 %v7032_v34  ;;  %3756 = vmatprep.subr.bf16.mxu1 %v7359_v1  ;;  %v7088_v34 = vcombine.low %v299_v53, %v303_v29  ;;  %v6971_v1 = vcombine.high %v180_v59, %v184_v37  ;;  %v359_v53 = vld [vmem:[#allocation2 + $0x630] sm:$0xff] }
 0x1d1   :  { %3815 = vmatprep.subr.bf16.mxu0 %v7041_v2  ;;  %v7097_v2 = vcombine.high %v307_v60, %v311_v61 }
 0x1d3   :  { %3757 = vmatpush1.bf16.msra.mxu1 %v7358_v7  ;;  %v6970_v7 = vcombine.low %v180_v59, %v184_v37  ;;  %v240_v59 = vld [vmem:[#allocation2 + $0x278] sm:$0xff]  ;;  %v363_v37 = vld [vmem:[#allocation2 + $0x650] sm:$0xff] }
 0x1d4   :  { %3816 = vmatpush1.bf16.msra.mxu0 %v7040_v8  ;;  %3758 = vmatprep.subr.bf16.mxu1 %v7367_v9  ;;  %v7096_v8 = vcombine.low %v307_v60, %v311_v61  ;;  %v6979_v9 = vcombine.high %v188_v3, %v192_v4  ;;  %v367_v60 = vld [vmem:[#allocation2 + $0x670] sm:$0xff] }
 0x1d5   :  { %3817 = vmatprep.subr.bf16.mxu0 %v7049_v11  ;;  %v7105_v11 = vcombine.high %v315_v5, %v319_v6 }
 0x1d7   :  { %3759 = vmatpush1.bf16.msra.mxu1 %v7366_v19  ;;  %v6978_v19 = vcombine.low %v188_v3, %v192_v4  ;;  %v248_v3 = vld [vmem:[#allocation2 + $0x2b8] sm:$0xff]  ;;  %v371_v4 = vld [vmem:[#allocation2 + $0x690] sm:$0xff] }
 0x1d8   :  { %3818 = vmatpush1.bf16.msra.mxu0 %v7048_v22  ;;  %3760 = vmatprep.subr.bf16.mxu1 %v7375_v24  ;;  %v7104_v22 = vcombine.low %v315_v5, %v319_v6  ;;  %v6987_v24 = vcombine.high %v196_v12, %v200_v13  ;;  %v375_v5 = vld [vmem:[#allocation2 + $0x6b0] sm:$0xff]  ;;  %v256_v12 = vld [vmem:[#allocation2 + $0x2f8] sm:$0xff] }
 0x1d9   :  { %3819 = vmatprep.subr.bf16.mxu0 %v7057_v25  ;;  %v204_v25 = vld [vmem:[#allocation2 + $0x158] sm:$0xff]  ;;  %v379_v13 = vld [vmem:[#allocation2 + $0x6d0] sm:$0xff] }
 0x1da   :  { %v6994_v40 = vcombine.low %v204_v25, %v208_v27 }
 0x1db   :  { %3761 = vmatpush1.bf16.msra.mxu1 %v7374_v32  ;;  %v7112_v32 = vcombine.low %v323_v15, %v327_v16 }
 0x1dc   :  { %3820 = vmatpush1.bf16.msra.mxu0 %v7056_v33  ;;  %3762 = vmatprep.subr.bf16.mxu1 %v7383_v35  ;;  %v6995_v33 = vcombine.high %v204_v25, %v208_v27  ;;  %v7121_v35 = vcombine.high %v331_v28, %v335_v30  ;;  %v264_v25 = vld [vmem:[#allocation2 + $0x338] sm:$0xff]  ;;  %v387_v27 = vld [vmem:[#allocation2 + $0x710] sm:$0xff] }
 0x1dd   :  { %3821 = vmatprep.subr.bf16.mxu0 %v7065_v36  ;;  %v212_v36 = vld [vmem:[#allocation2 + $0x198] sm:$0xff] }
 0x1de   :  { %v7002_v48 = vcombine.low %v212_v36, %v216_v10 }
 0x1df   :  { %3763 = vmatpush1.bf16.msra.mxu1 %v7382_v41  ;;  %v7120_v41 = vcombine.low %v331_v28, %v335_v30  ;;  %v391_v28 = vld [vmem:[#allocation2 + $0x730] sm:$0xff] }
 0x1e0   :  { %3822 = vmatpush1.bf16.msra.mxu0 %v7064_v43  ;;  %3764 = vmatprep.subr.bf16.mxu1 %v7391_v44  ;;  %v7003_v43 = vcombine.high %v212_v36, %v216_v10  ;;  %v7129_v44 = vcombine.high %v339_v38, %v343_v39  ;;  %v272_v36 = vld [vmem:[#allocation2 + $0x378] sm:$0xff]  ;;  %v395_v10 = vld [vmem:[#allocation2 + $0x750] sm:$0xff] }
 0x1e1   :  { %3823 = vmatprep.subr.bf16.mxu0 %v7073_v18  ;;  %v220_v18 = vld [vmem:[#allocation2 + $0x1d8] sm:$0xff] }
 0x1e2   :  { %v7010_v29 = vcombine.low %v220_v18, %v224_v45 }
 0x1e3   :  { %3765 = vmatpush1.bf16.msra.mxu1 %v7390_v21  ;;  %v7128_v21 = vcombine.low %v339_v38, %v343_v39  ;;  %v399_v38 = vld [vmem:[#allocation2 + $0x770] sm:$0xff] }
 0x1e4   :  { %3824 = vmatpush1.bf16.msra.mxu0 %v7072_v49  ;;  %3965 = vmatprep.subr.bf16.mxu1 %v6955_v26  ;;  %v7011_v49 = vcombine.high %v220_v18, %v224_v45  ;;  %v7137_v26 = vcombine.high %v347_v46, %v351_v47  ;;  %v280_v18 = vld [vmem:[#allocation2 + $0x3b8] sm:$0xff]  ;;  %v403_v45 = vld [vmem:[#allocation2 + $0x790] sm:$0xff] }
 0x1e5   :  { %3836 = vmatprep.subr.bf16.mxu0 %v7081_v50  ;;  %v228_v50 = vld [vmem:[#allocation2 + $0x218] sm:$0xff] }
 0x1e6   :  { %3783 = vmatmul.mubr.bf16.vlgmr.msra.gmra.mrb[4].mxu1 %v8873_v42  ;;  %v8894_v42 = vld [vmem:[%s9006_s0 + $0xc] ss:$28 sps:$4 sm:$0xff]   ;;  %v7018_v61 = vcombine.low %v228_v50, %v232_v51 }
 0x1e7   :  { %3826 = vmatmul.mubr.bf16.vlgmr.msra.gmra.mrb[0].mxu0 %v8888_v62  ;;  %3966 = vmatpush1.bf16.msra.mxu1 %v6954_v55  ;;  %v7136_v55 = vcombine.low %v347_v46, %v351_v47  ;;  %v407_v46 = vld [vmem:[#allocation2 + $0x7b0] sm:$0xff] }
 0x1e8   :  { %3837 = vmatpush1.bf16.msra.mxu0 %v7080_v56  ;;  %3967 = vmatprep.subr.bf16.mxu1 %v6963_v57  ;;  %v7019_v56 = vcombine.high %v228_v50, %v232_v51  ;;  %v7145_v57 = vcombine.high %v355_v52, %v359_v53  ;;  %v288_v50 = vld [vmem:[#allocation2 + $0x3f8] sm:$0xff]  ;;  %v411_v51 = vld [vmem:[#allocation2 + $0x7d0] sm:$0xff] }
 0x1e9   :  { %3838 = vmatprep.subr.bf16.mxu0 %v7089_v58  ;;  %3868 = vmatprep.mubr.bf16.mxu0 %v8894_v42  ;;  %v236_v58 = vld [vmem:[#allocation2 + $0x258] sm:$0xff] }
 0x1ea   :  { %3997 = vmatprep.mubr.bf16.mxu1 %v8879_v54  ;;  %v7113_v54 = vcombine.high %v323_v15, %v327_v16  ;;  %v7026_v6 = vcombine.low %v236_v58, %v240_v59  ;;  %v383_v15 = vld [vmem:[#allocation2 + $0x6f0] sm:$0xff] }
 0x1eb   :  { %3968 = vmatpush1.bf16.msra.mxu1 %v6962_v63  ;;  %v7144_v63 = vcombine.low %v355_v52, %v359_v53  ;;  %v415_v52 = vld [vmem:[#allocation2 + $0x7f0] sm:$0xff] }
 0x1ec   :  { %3839 = vmatpush1.bf16.msra.mxu0 %v7088_v34  ;;  %3969 = vmatprep.subr.bf16.mxu1 %v6971_v1  ;;  %v7027_v34 = vcombine.high %v236_v58, %v240_v59  ;;  %v7153_v1 = vcombine.high %v363_v37, %v367_v60  ;;  %v296_v58 = vld [vmem:[#allocation2 + $0x438] sm:$0xff]  ;;  %v419_v59 = vld [vmem:[#allocation2 + $0x810] sm:$0xff] }
 0x1ed   :  { %3840 = vmatprep.subr.bf16.mxu0 %v7097_v2  ;;  %v244_v2 = vld [vmem:[#allocation2 + $0x298] sm:$0xff] }
 0x1ee   :  { %v7034_v16 = vcombine.low %v244_v2, %v248_v3 }
 0x1ef   :  { %3970 = vmatpush1.bf16.msra.mxu1 %v6970_v7  ;;  %v7152_v7 = vcombine.low %v363_v37, %v367_v60  ;;  %v423_v37 = vld [vmem:[#allocation2 + $0x830] sm:$0xff] }
 0x1f0   :  { %3841 = vmatpush1.bf16.msra.mxu0 %v7096_v8  ;;  %3971 = vmatprep.subr.bf16.mxu1 %v6979_v9  ;;  %v7035_v8 = vcombine.high %v244_v2, %v248_v3  ;;  %v7161_v9 = vcombine.high %v371_v4, %v375_v5  ;;  %v304_v2 = vld [vmem:[#allocation2 + $0x478] sm:$0xff]  ;;  %v427_v3 = vld [vmem:[#allocation2 + $0x850] sm:$0xff] }
 0x1f1   :  { %3842 = vmatprep.subr.bf16.mxu0 %v7105_v11  ;;  %v252_v11 = vld [vmem:[#allocation2 + $0x2d8] sm:$0xff] }
 0x1f2   :  { %v7042_v30 = vcombine.low %v252_v11, %v256_v12 }
 0x1f3   :  { %3972 = vmatpush1.bf16.msra.mxu1 %v6978_v19  ;;  %v7160_v19 = vcombine.low %v371_v4, %v375_v5  ;;  %v431_v4 = vld [vmem:[#allocation2 + $0x870] sm:$0xff] }
 0x1f4   :  { %3843 = vmatpush1.bf16.msra.mxu0 %v7104_v22  ;;  %3973 = vmatprep.subr.bf16.mxu1 %v6987_v24  ;;  %v7043_v22 = vcombine.high %v252_v11, %v256_v12  ;;  %v7169_v24 = vcombine.high %v379_v13, %v383_v15  ;;  %v312_v11 = vld [vmem:[#allocation2 + $0x4b8] sm:$0xff]  ;;  %v435_v12 = vld [vmem:[#allocation2 + $0x890] sm:$0xff] }
 0x1f5   :  { %3844 = vmatprep.subr.bf16.mxu0 %v7113_v54  ;;  %v260_v54 = vld [vmem:[#allocation2 + $0x318] sm:$0xff] }
 0x1f6   :  { %v7050_v39 = vcombine.low %v260_v54, %v264_v25 }
 0x1f7   :  { %3974 = vmatpush1.bf16.msra.mxu1 %v6986_v31  ;;  %v7168_v31 = vcombine.low %v379_v13, %v383_v15  ;;  %v439_v13 = vld [vmem:[#allocation2 + $0x8b0] sm:$0xff]  ;;  %v8902_v15 = vld [vmem:[%s9006_s0 + $0x8] ss:$28 sps:$4 sm:$0xff]  }
 0x1f8   :  { %3845 = vmatpush1.bf16.msra.mxu0 %v7112_v32  ;;  %3975 = vmatprep.subr.bf16.mxu1 %v6995_v33  ;;  %v7051_v32 = vcombine.high %v260_v54, %v264_v25  ;;  %v7177_v33 = vcombine.high %v387_v27, %v391_v28  ;;  %v316_v54 = vld [vmem:[#allocation2 + $0x4d8] sm:$0xff] }
 0x1f9   :  { %3846 = vmatprep.subr.bf16.mxu0 %v7121_v35  ;;  %v268_v35 = vld [vmem:[#allocation2 + $0x358] sm:$0xff] }
 0x1fa   :  { %v7058_v47 = vcombine.low %v268_v35, %v272_v36  ;;  %v320_v25 = vld [vmem:[#allocation2 + $0x4f8] sm:$0xff] }
 0x1fb   :  { %3976 = vmatpush1.bf16.msra.mxu1 %v6994_v40  ;;  %v7176_v40 = vcombine.low %v387_v27, %v391_v28  ;;  %v443_v27 = vld [vmem:[#allocation2 + $0x8d0] sm:$0xff] }
 0x1fc   :  { %3847 = vmatpush1.bf16.msra.mxu0 %v7120_v41  ;;  %3977 = vmatprep.subr.bf16.mxu1 %v7003_v43  ;;  %v7059_v41 = vcombine.high %v268_v35, %v272_v36  ;;  %v7185_v43 = vcombine.high %v395_v10, %v399_v38  ;;  %v447_v28 = vld [vmem:[#allocation2 + $0x8f0] sm:$0xff]  ;;  %v324_v35 = vld [vmem:[#allocation2 + $0x518] sm:$0xff] }
 0x1fd   :  { %3848 = vmatprep.subr.bf16.mxu0 %v7129_v44  ;;  %v276_v44 = vld [vmem:[#allocation2 + $0x398] sm:$0xff] }
 0x1fe   :  { %v7066_v53 = vcombine.low %v276_v44, %v280_v18  ;;  %v328_v36 = vld [vmem:[#allocation2 + $0x538] sm:$0xff] }
 0x1ff   :  { %3978 = vmatpush1.bf16.msra.mxu1 %v7002_v48  ;;  %v7184_v48 = vcombine.low %v395_v10, %v399_v38  ;;  %v451_v10 = vld [vmem:[#allocation2 + $0x910] sm:$0xff] }
 0x200   :  { %3849 = vmatpush1.bf16.msra.mxu0 %v7128_v21  ;;  %3979 = vmatprep.subr.bf16.mxu1 %v7011_v49  ;;  %v7067_v21 = vcombine.high %v276_v44, %v280_v18  ;;  %v7193_v49 = vcombine.high %v403_v45, %v407_v46  ;;  %v455_v38 = vld [vmem:[#allocation2 + $0x930] sm:$0xff]  ;;  %v336_v44 = vld [vmem:[#allocation2 + $0x578] sm:$0xff] }
 0x201   :  { %3850 = vmatprep.subr.bf16.mxu0 %v7137_v26  ;;  %v284_v26 = vld [vmem:[#allocation2 + $0x3d8] sm:$0xff]  ;;  %v459_v18 = vld [vmem:[#allocation2 + $0x950] sm:$0xff] }
 0x202   :  { %v7074_v60 = vcombine.low %v284_v26, %v288_v50 }
 0x203   :  { %3980 = vmatpush1.bf16.msra.mxu1 %v7010_v29  ;;  %v7192_v29 = vcombine.low %v403_v45, %v407_v46  ;;  %v463_v45 = vld [vmem:[#allocation2 + $0x970] sm:$0xff]  ;;  %v7114_v46 = vcombine.low %v324_v35, %v328_v36 }
 0x204   :  { %3851 = vmatpush1.bf16.msra.mxu0 %v7136_v55  ;;  %3981 = vmatprep.subr.bf16.mxu1 %v7019_v56  ;;  %v7075_v55 = vcombine.high %v284_v26, %v288_v50  ;;  %v7201_v56 = vcombine.high %v411_v51, %v415_v52  ;;  %v344_v26 = vld [vmem:[#allocation2 + $0x5b8] sm:$0xff]  ;;  %v467_v50 = vld [vmem:[#allocation2 + $0x990] sm:$0xff] }
 0x205   :  { %3852 = vmatprep.subr.bf16.mxu0 %v7145_v57  ;;  %v292_v57 = vld [vmem:[#allocation2 + $0x418] sm:$0xff] }
 0x206   :  { %v7082_v5 = vcombine.low %v292_v57, %v296_v58 }
 0x207   :  { %3982 = vmatpush1.bf16.msra.mxu1 %v7018_v61  ;;  %v7200_v61 = vcombine.low %v411_v51, %v415_v52  ;;  %v471_v51 = vld [vmem:[#allocation2 + $0x9b0] sm:$0xff] }
 0x208   :  { %3853 = vmatpush1.bf16.msra.mxu0 %v7144_v63  ;;  %3983 = vmatprep.subr.bf16.mxu1 %v7027_v34  ;;  %v7083_v63 = vcombine.high %v292_v57, %v296_v58  ;;  %v7209_v34 = vcombine.high %v419_v59, %v423_v37  ;;  %v352_v57 = vld [vmem:[#allocation2 + $0x5f8] sm:$0xff]  ;;  %v475_v58 = vld [vmem:[#allocation2 + $0x9d0] sm:$0xff] }
 0x209   :  { %3854 = vmatprep.subr.bf16.mxu0 %v7153_v1  ;;  %v300_v1 = vld [vmem:[#allocation2 + $0x458] sm:$0xff] }
 0x20b   :  { %3984 = vmatpush1.bf16.msra.mxu1 %v7026_v6  ;;  %v7208_v6 = vcombine.low %v419_v59, %v423_v37  ;;  %v479_v59 = vld [vmem:[#allocation2 + $0x9f0] sm:$0xff] }
 0x20c   :  { %3855 = vmatpush1.bf16.msra.mxu0 %v7152_v7  ;;  %3985 = vmatprep.subr.bf16.mxu1 %v7035_v8  ;;  %v7091_v7 = vcombine.high %v300_v1, %v304_v2  ;;  %v7217_v8 = vcombine.high %v427_v3, %v431_v4 }
 0x20d   :  { %3856 = vmatprep.subr.bf16.mxu0 %v7161_v9  ;;  %v308_v9 = vld [vmem:[#allocation2 + $0x498] sm:$0xff] }
 0x20f   :  { %3986 = vmatpush1.bf16.msra.mxu1 %v7034_v16  ;;  %v7090_v16 = vcombine.low %v300_v1, %v304_v2  ;;  %v360_v1 = vld [vmem:[#allocation2 + $0x638] sm:$0xff]  ;;  %v483_v2 = vld [vmem:[#allocation2 + $0xa10] sm:$0xff] }
 0x210   :  { %3857 = vmatpush1.bf16.msra.mxu0 %v7160_v19  ;;  %3987 = vmatprep.subr.bf16.mxu1 %v7043_v22  ;;  %v7216_v19 = vcombine.low %v427_v3, %v431_v4  ;;  %v7099_v22 = vcombine.high %v308_v9, %v312_v11  ;;  %v487_v3 = vld [vmem:[#allocation2 + $0xa30] sm:$0xff] }
 0x211   :  { %3858 = vmatprep.subr.bf16.mxu0 %v7169_v24  ;;  %v7225_v24 = vcombine.high %v435_v12, %v439_v13 }
 0x213   :  { %3988 = vmatpush1.bf16.msra.mxu1 %v7042_v30  ;;  %v7098_v30 = vcombine.low %v308_v9, %v312_v11  ;;  %v368_v9 = vld [vmem:[#allocation2 + $0x678] sm:$0xff]  ;;  %v491_v11 = vld [vmem:[#allocation2 + $0xa50] sm:$0xff] }
 0x214   :  { %3859 = vmatpush1.bf16.msra.mxu0 %v7168_v31  ;;  %3989 = vmatprep.subr.bf16.mxu1 %v7051_v32  ;;  %v7224_v31 = vcombine.low %v435_v12, %v439_v13  ;;  %v7107_v32 = vcombine.high %v316_v54, %v320_v25  ;;  %v495_v12 = vld [vmem:[#allocation2 + $0xa70] sm:$0xff] }
 0x215   :  { %3860 = vmatprep.subr.bf16.mxu0 %v7177_v33  ;;  %v7233_v33 = vcombine.high %v443_v27, %v447_v28 }
 0x217   :  { %3990 = vmatpush1.bf16.msra.mxu1 %v7050_v39  ;;  %v7106_v39 = vcombine.low %v316_v54, %v320_v25  ;;  %v376_v54 = vld [vmem:[#allocation2 + $0x6b8] sm:$0xff]  ;;  %v499_v25 = vld [vmem:[#allocation2 + $0xa90] sm:$0xff] }
 0x218   :  { %3861 = vmatpush1.bf16.msra.mxu0 %v7176_v40  ;;  %3991 = vmatprep.subr.bf16.mxu1 %v7059_v41  ;;  %v7232_v40 = vcombine.low %v443_v27, %v447_v28  ;;  %v7115_v41 = vcombine.high %v324_v35, %v328_v36  ;;  %v503_v27 = vld [vmem:[#allocation2 + $0xab0] sm:$0xff]  ;;  %v384_v35 = vld [vmem:[#allocation2 + $0x6f8] sm:$0xff] }
 0x219   :  { %3862 = vmatprep.subr.bf16.mxu0 %v7185_v43  ;;  %v332_v43 = vld [vmem:[#allocation2 + $0x558] sm:$0xff]  ;;  %v507_v36 = vld [vmem:[#allocation2 + $0xad0] sm:$0xff] }
 0x21a   :  { %v7122_v52 = vcombine.low %v332_v43, %v336_v44 }
 0x21b   :  { %3992 = vmatpush1.bf16.msra.mxu1 %v7058_v47  ;;  %v7240_v47 = vcombine.low %v451_v10, %v455_v38 }
 0x21c   :  { %3863 = vmatpush1.bf16.msra.mxu0 %v7184_v48  ;;  %3993 = vmatprep.subr.bf16.mxu1 %v7067_v21  ;;  %v7123_v48 = vcombine.high %v332_v43, %v336_v44  ;;  %v7249_v21 = vcombine.high %v459_v18, %v463_v45  ;;  %v392_v43 = vld [vmem:[#allocation2 + $0x738] sm:$0xff]  ;;  %v515_v44 = vld [vmem:[#allocation2 + $0xb10] sm:$0xff] }
 0x21d   :  { %3864 = vmatprep.subr.bf16.mxu0 %v7193_v49  ;;  %v340_v49 = vld [vmem:[#allocation2 + $0x598] sm:$0xff] }
 0x21e   :  { %v7130_v37 = vcombine.low %v340_v49, %v344_v26 }
 0x21f   :  { %3994 = vmatpush1.bf16.msra.mxu1 %v7066_v53  ;;  %v7248_v53 = vcombine.low %v459_v18, %v463_v45  ;;  %v519_v18 = vld [vmem:[#allocation2 + $0xb30] sm:$0xff] }
 0x220   :  { %3865 = vmatpush1.bf16.msra.mxu0 %v7192_v29  ;;  %3995 = vmatprep.subr.bf16.mxu1 %v7075_v55  ;;  %v7131_v29 = vcombine.high %v340_v49, %v344_v26  ;;  %v7257_v55 = vcombine.high %v467_v50, %v471_v51  ;;  %v400_v49 = vld [vmem:[#allocation2 + $0x778] sm:$0xff]  ;;  %v523_v26 = vld [vmem:[#allocation2 + $0xb50] sm:$0xff] }
 0x221   :  { %3866 = vmatprep.subr.bf16.mxu0 %v7201_v56  ;;  %v348_v56 = vld [vmem:[#allocation2 + $0x5d8] sm:$0xff] }
 0x222   :  { %v7138_v4 = vcombine.low %v348_v56, %v352_v57 }
 0x223   :  { %3996 = vmatpush1.bf16.msra.mxu1 %v7074_v60  ;;  %v7256_v60 = vcombine.low %v467_v50, %v471_v51  ;;  %v527_v50 = vld [vmem:[#allocation2 + $0xb70] sm:$0xff] }
 0x224   :  { %3867 = vmatpush1.bf16.msra.mxu0 %v7200_v61  ;;  %4008 = vmatprep.subr.bf16.mxu1 %v7083_v63  ;;  %v7139_v61 = vcombine.high %v348_v56, %v352_v57  ;;  %v7265_v63 = vcombine.high %v475_v58, %v479_v59  ;;  %v408_v56 = vld [vmem:[#allocation2 + $0x7b8] sm:$0xff]  ;;  %v531_v57 = vld [vmem:[#allocation2 + $0xb90] sm:$0xff] }
 0x225   :  { %3879 = vmatprep.subr.bf16.mxu0 %v7209_v34  ;;  %v356_v34 = vld [vmem:[#allocation2 + $0x618] sm:$0xff] }
 0x226   :  { %3998 = vmatmul.mubr.bf16.vlgmr.msra.gmra.mrb[8].mxu1 %v8888_v62  ;;  %v8908_v62 = vld [vmem:[%s9006_s0 + $0x14] ss:$28 sps:$4 sm:$0xff]   ;;  %v7146_v13 = vcombine.low %v356_v34, %v360_v1 }
 0x227   :  { %3869 = vmatmul.mubr.bf16.vlgmr.msra.gmra.mrb[0].mxu0 %v8902_v15  ;;  %4009 = vmatpush1.bf16.msra.mxu1 %v7082_v5  ;;  %v7264_v5 = vcombine.low %v475_v58, %v479_v59  ;;  %v535_v58 = vld [vmem:[#allocation2 + $0xbb0] sm:$0xff] }
 0x228   :  { %3880 = vmatpush1.bf16.msra.mxu0 %v7208_v6  ;;  %4010 = vmatprep.subr.bf16.mxu1 %v7091_v7  ;;  %v7147_v6 = vcombine.high %v356_v34, %v360_v1  ;;  %v7273_v7 = vcombine.high %v483_v2, %v487_v3  ;;  %v416_v34 = vld [vmem:[#allocation2 + $0x7f8] sm:$0xff]  ;;  %v539_v1 = vld [vmem:[#allocation2 + $0xbd0] sm:$0xff] }
 0x229   :  { %3881 = vmatprep.subr.bf16.mxu0 %v7217_v8  ;;  %3911 = vmatprep.mubr.bf16.mxu0 %v8908_v62  ;;  %v364_v8 = vld [vmem:[#allocation2 + $0x658] sm:$0xff] }
 0x22a   :  { %4040 = vmatprep.mubr.bf16.mxu1 %v8894_v42  ;;  %v7241_v42 = vcombine.high %v451_v10, %v455_v38  ;;  %v7154_v28 = vcombine.low %v364_v8, %v368_v9  ;;  %v511_v10 = vld [vmem:[#allocation2 + $0xaf0] sm:$0xff] }
 0x22b   :  { %4011 = vmatpush1.bf16.msra.mxu1 %v7090_v16  ;;  %v7272_v16 = vcombine.low %v483_v2, %v487_v3  ;;  %v543_v2 = vld [vmem:[#allocation2 + $0xbf0] sm:$0xff] }
 0x22c   :  { %3882 = vmatpush1.bf16.msra.mxu0 %v7216_v19  ;;  %4012 = vmatprep.subr.bf16.mxu1 %v7099_v22  ;;  %v7155_v19 = vcombine.high %v364_v8, %v368_v9  ;;  %v7281_v22 = vcombine.high %v491_v11, %v495_v12  ;;  %v424_v8 = vld [vmem:[#allocation2 + $0x838] sm:$0xff]  ;;  %v547_v9 = vld [vmem:[#allocation2 + $0xc10] sm:$0xff] }
 0x22d   :  { %3883 = vmatprep.subr.bf16.mxu0 %v7225_v24  ;;  %v372_v24 = vld [vmem:[#allocation2 + $0x698] sm:$0xff] }
 0x22e   :  { %v7162_v38 = vcombine.low %v372_v24, %v376_v54 }
 0x22f   :  { %4013 = vmatpush1.bf16.msra.mxu1 %v7098_v30  ;;  %v7280_v30 = vcombine.low %v491_v11, %v495_v12  ;;  %v551_v11 = vld [vmem:[#allocation2 + $0xc30] sm:$0xff] }
 0x230   :  { %3884 = vmatpush1.bf16.msra.mxu0 %v7224_v31  ;;  %4014 = vmatprep.subr.bf16.mxu1 %v7107_v32  ;;  %v7163_v31 = vcombine.high %v372_v24, %v376_v54  ;;  %v7289_v32 = vcombine.high %v499_v25, %v503_v27  ;;  %v432_v24 = vld [vmem:[#allocation2 + $0x878] sm:$0xff]  ;;  %v555_v54 = vld [vmem:[#allocation2 + $0xc50] sm:$0xff] }
 0x231   :  { %3885 = vmatprep.subr.bf16.mxu0 %v7233_v33  ;;  %v380_v33 = vld [vmem:[#allocation2 + $0x6d8] sm:$0xff] }
 0x232   :  { %v7170_v45 = vcombine.low %v380_v33, %v384_v35 }
 0x233   :  { %4015 = vmatpush1.bf16.msra.mxu1 %v7106_v39  ;;  %v7288_v39 = vcombine.low %v499_v25, %v503_v27  ;;  %v559_v25 = vld [vmem:[#allocation2 + $0xc70] sm:$0xff] }
 0x234   :  { %3886 = vmatpush1.bf16.msra.mxu0 %v7232_v40  ;;  %4016 = vmatprep.subr.bf16.mxu1 %v7115_v41  ;;  %v7171_v40 = vcombine.high %v380_v33, %v384_v35  ;;  %v7297_v41 = vcombine.high %v507_v36, %v511_v10  ;;  %v440_v33 = vld [vmem:[#allocation2 + $0x8b8] sm:$0xff]  ;;  %v563_v35 = vld [vmem:[#allocation2 + $0xc90] sm:$0xff] }
 0x235   :  { %3887 = vmatprep.subr.bf16.mxu0 %v7241_v42  ;;  %v388_v42 = vld [vmem:[#allocation2 + $0x718] sm:$0xff] }
 0x236   :  { %v7178_v51 = vcombine.low %v388_v42, %v392_v43 }
 0x237   :  { %4017 = vmatpush1.bf16.msra.mxu1 %v7114_v46  ;;  %v7296_v46 = vcombine.low %v507_v36, %v511_v10  ;;  %v567_v36 = vld [vmem:[#allocation2 + $0xcb0] sm:$0xff] }
 0x238   :  { %3888 = vmatpush1.bf16.msra.mxu0 %v7240_v47  ;;  %4018 = vmatprep.subr.bf16.mxu1 %v7123_v48  ;;  %v7179_v47 = vcombine.high %v388_v42, %v392_v43  ;;  %v7305_v48 = vcombine.high %v515_v44, %v519_v18  ;;  %v8916_v10 = vld [vmem:[%s9006_s0 + $0x10] ss:$28 sps:$4 sm:$0xff]   ;;  %v444_v42 = vld [vmem:[#allocation2 + $0x8d8] sm:$0xff] }
 0x239   :  { %3889 = vmatprep.subr.bf16.mxu0 %v7249_v21  ;;  %v396_v21 = vld [vmem:[#allocation2 + $0x758] sm:$0xff] }
 0x23a   :  { %v7186_v59 = vcombine.low %v396_v21, %v400_v49  ;;  %v448_v43 = vld [vmem:[#allocation2 + $0x8f8] sm:$0xff] }
 0x23b   :  { %4019 = vmatpush1.bf16.msra.mxu1 %v7122_v52  ;;  %v7304_v52 = vcombine.low %v515_v44, %v519_v18  ;;  %v575_v44 = vld [vmem:[#allocation2 + $0xcf0] sm:$0xff] }
 0x23c   :  { %3890 = vmatpush1.bf16.msra.mxu0 %v7248_v53  ;;  %4020 = vmatprep.subr.bf16.mxu1 %v7131_v29  ;;  %v7187_v53 = vcombine.high %v396_v21, %v400_v49  ;;  %v7313_v29 = vcombine.high %v523_v26, %v527_v50  ;;  %v456_v21 = vld [vmem:[#allocation2 + $0x938] sm:$0xff]  ;;  %v4139_v49 = vlaneseq }
 0x23d   :  { %3891 = vmatprep.subr.bf16.mxu0 %v7257_v55  ;;  %v404_v55 = vld [vmem:[#allocation2 + $0x798] sm:$0xff] }
 0x23e   :  { %v7194_v3 = vcombine.low %v404_v55, %v408_v56 }
 0x23f   :  { %4021 = vmatpush1.bf16.msra.mxu1 %v7130_v37  ;;  %v7312_v37 = vcombine.low %v523_v26, %v527_v50  ;;  %v579_v26 = vld [vmem:[#allocation2 + $0xd10] sm:$0xff] }
 0x240   :  { %3892 = vmatpush1.bf16.msra.mxu0 %v7256_v60  ;;  %4022 = vmatprep.subr.bf16.mxu1 %v7139_v61  ;;  %v7195_v60 = vcombine.high %v404_v55, %v408_v56  ;;  %v7321_v61 = vcombine.high %v531_v57, %v535_v58  ;;  %v583_v50 = vld [vmem:[#allocation2 + $0xd30] sm:$0xff]  ;;  %v460_v55 = vld [vmem:[#allocation2 + $0x958] sm:$0xff] }
 0x241   :  { %3893 = vmatprep.subr.bf16.mxu0 %v7265_v63  ;;  %v412_v63 = vld [vmem:[#allocation2 + $0x7d8] sm:$0xff] }
 0x242   :  { %v7202_v12 = vcombine.low %v412_v63, %v416_v34  ;;  %v464_v56 = vld [vmem:[#allocation2 + $0x978] sm:$0xff] }
 0x243   :  { %4023 = vmatpush1.bf16.msra.mxu1 %v7138_v4  ;;  %v7320_v4 = vcombine.low %v531_v57, %v535_v58  ;;  %v587_v57 = vld [vmem:[#allocation2 + $0xd50] sm:$0xff] }
 0x244   :  { %3894 = vmatpush1.bf16.msra.mxu0 %v7264_v5  ;;  %4024 = vmatprep.subr.bf16.mxu1 %v7147_v6  ;;  %v7203_v5 = vcombine.high %v412_v63, %v416_v34  ;;  %v7329_v6 = vcombine.high %v539_v1, %v543_v2  ;;  %v591_v58 = vld [vmem:[#allocation2 + $0xd70] sm:$0xff]  ;;  %v468_v34 = vld [vmem:[#allocation2 + $0x998] sm:$0xff] }
 0x245   :  { %3895 = vmatprep.subr.bf16.mxu0 %v7273_v7  ;;  %v420_v7 = vld [vmem:[#allocation2 + $0x818] sm:$0xff]  ;;  %v7377_v63 = vcombine.high %v587_v57, %v591_v58 }
 0x246   :  { %v7210_v27 = vcombine.low %v420_v7, %v424_v8 }
 0x247   :  { %4025 = vmatpush1.bf16.msra.mxu1 %v7146_v13  ;;  %v7328_v13 = vcombine.low %v539_v1, %v543_v2  ;;  %v472_v1 = vld [vmem:[#allocation2 + $0x9b8] sm:$0xff]  ;;  %v8926_v2 = vld [vmem:[#allocation6] sm:$0xff] }
 0x248   :  { %3896 = vmatpush1.bf16.msra.mxu0 %v7272_v16  ;;  %4026 = vmatprep.subr.bf16.mxu1 %v7155_v19  ;;  %v7211_v16 = vcombine.high %v420_v7, %v424_v8  ;;  %v7337_v19 = vcombine.high %v547_v9, %v551_v11  ;;  %v7376_v7 = vcombine.low %v587_v57, %v591_v58  ;;  %v500_v57 = vld [vmem:[#allocation2 + $0xa98] sm:$0xff] }
 0x249   :  { %3897 = vmatprep.subr.bf16.mxu0 %v7281_v22  ;;  %v428_v22 = vld [vmem:[#allocation2 + $0x858] sm:$0xff]  ;;  %v7259_v8 = vcombine.high %v468_v34, %v472_v1 }
 0x24a   :  { %v504_v58 = vld [vmem:[#allocation2 + $0xab8] sm:$0xff] }
 0x24b   :  { %4027 = vmatpush1.bf16.msra.mxu1 %v7154_v28  ;;  %v7336_v28 = vcombine.low %v547_v9, %v551_v11 }
 0x24c   :  { %3898 = vmatpush1.bf16.msra.mxu0 %v7280_v30  ;;  %4028 = vmatprep.subr.bf16.mxu1 %v7163_v31  ;;  %v7219_v30 = vcombine.high %v428_v22, %v432_v24  ;;  %v7345_v31 = vcombine.high %v555_v54, %v559_v25 }
 0x24d   :  { %3899 = vmatprep.subr.bf16.mxu0 %v7289_v32  ;;  %v436_v32 = vld [vmem:[#allocation2 + $0x898] sm:$0xff] }
 0x24e   :  { %v7226_v18 = vcombine.low %v436_v32, %v440_v33 }
 0x24f   :  { %4029 = vmatpush1.bf16.msra.mxu1 %v7162_v38  ;;  %v7218_v38 = vcombine.low %v428_v22, %v432_v24  ;;  %v603_v22 = vld [vmem:[#allocation2 + $0xdd0] sm:$0xff] }
 0x250   :  { %3900 = vmatpush1.bf16.msra.mxu0 %v7288_v39  ;;  %4030 = vmatprep.subr.bf16.mxu1 %v7171_v40  ;;  %v7344_v39 = vcombine.low %v555_v54, %v559_v25  ;;  %v7227_v40 = vcombine.high %v436_v32, %v440_v33  ;;  %v607_v24 = vld [vmem:[#allocation2 + $0xdf0] sm:$0xff] }
 0x251   :  { %3901 = vmatprep.subr.bf16.mxu0 %v7297_v41  ;;  %v7353_v41 = vcombine.high %v563_v35, %v567_v36 }
 0x253   :  { %4031 = vmatpush1.bf16.msra.mxu1 %v7170_v45  ;;  %v7352_v45 = vcombine.low %v563_v35, %v567_v36 }
 0x254   :  { %3902 = vmatpush1.bf16.msra.mxu0 %v7296_v46  ;;  %4032 = vmatprep.subr.bf16.mxu1 %v7179_v47  ;;  %v7235_v46 = vcombine.high %v444_v42, %v448_v43 }
 0x255   :  { %3903 = vmatprep.subr.bf16.mxu0 %v7305_v48  ;;  %v452_v48 = vld [vmem:[#allocation2 + $0x918] sm:$0xff] }
 0x257   :  { %4033 = vmatpush1.bf16.msra.mxu1 %v7178_v51  ;;  %v7234_v51 = vcombine.low %v444_v42, %v448_v43 }
 0x258   :  { %3904 = vmatpush1.bf16.msra.mxu0 %v7304_v52  ;;  %4034 = vmatprep.subr.bf16.mxu1 %v7187_v53  ;;  %v7243_v53 = vcombine.high %v452_v48, %v456_v21 }
 0x259   :  { %3905 = vmatprep.subr.bf16.mxu0 %v7313_v29  ;;  %v8921_v29 = vshrl.u32 %v4139_v49, 7 }
 0x25b   :  { %4035 = vmatpush1.bf16.msra.mxu1 %v7186_v59  ;;  %v7242_v59 = vcombine.low %v452_v48, %v456_v21  ;;  %v492_v48 = vld [vmem:[#allocation2 + $0xa58] sm:$0xff] }
 0x25c   :  { %3906 = vmatpush1.bf16.msra.mxu0 %v7312_v37  ;;  %4036 = vmatprep.subr.bf16.mxu1 %v7195_v60  ;;  %v7368_v37 = vcombine.low %v579_v26, %v583_v50  ;;  %v7251_v60 = vcombine.high %v460_v55, %v464_v56 }
 0x25d   :  { %3907 = vmatprep.subr.bf16.mxu0 %v7321_v61  ;;  %v8924_v61 = vsub.s32 0, %v8921_v29 }
 0x25f   :  { %4037 = vmatpush1.bf16.msra.mxu1 %v7194_v3  ;;  %v8929_v3 = vsub.s32 1, %v8921_v29  ;;  %v4142_v9 = vrot.slane %v8926_v2, %v8924_v61 }
 0x260   :  { %3908 = vmatpush1.bf16.msra.mxu0 %v7320_v4  ;;  %4038 = vmatprep.subr.bf16.mxu1 %v7203_v5  ;;  %v595_v4 = vld [vmem:[#allocation2 + $0xd90] sm:$0xff] }
 0x261   :  { %3909 = vmatprep.subr.bf16.mxu0 %v7329_v6  ;;  %v599_v5 = vld [vmem:[#allocation2 + $0xdb0] sm:$0xff]  ;;  %v7250_v6 = vcombine.low %v460_v55, %v464_v56  ;;  %v7893_v56 = vld [vmem:[#allocation7 + $0x24] ss:$16 sps:$4 sm:$0xff]  }
 0x262   :  { %v7385_v11 = vcombine.high %v595_v4, %v599_v5 }
 0x263   :  { %4039 = vmatpush1.bf16.msra.mxu1 %v7202_v12  ;;  %v476_v12 = vld [vmem:[#allocation2 + $0x9d8] sm:$0xff] }
 0x264   :  { %3910 = vmatpush1.bf16.msra.mxu0 %v7328_v13  ;;  %4051 = vmatprep.subr.bf16.mxu1 %v7211_v16  ;;  %v480_v13 = vld [vmem:[#allocation2 + $0x9f8] sm:$0xff] }
 0x265   :  { %3922 = vmatprep.subr.bf16.mxu0 %v7337_v19  ;;  %v4146_v19 = vrot.slane %v8926_v2, %v8929_v3  ;;  %v7267_v32 = vcombine.high %v476_v12, %v480_v13 }
 0x266   :  { %4041 = vmatmul.mubr.bf16.vlgmr.msra.gmra.mrb[8].mxu1 %v8902_v15  ;;  %v571_v15 = vld [vmem:[#allocation2 + $0xcd0] sm:$0xff] }
 0x267   :  { %3912 = vmatmul.mubr.bf16.vlgmr.msra.gmra.mrb[0].mxu0 %v8916_v10  ;;  %4052 = vmatpush1.bf16.msra.mxu1 %v7210_v27  ;;  %v7361_v47 = vcombine.high %v571_v15, %v575_v44  ;;  %v7360_v52 = vcombine.low %v571_v15, %v575_v44  ;;  %v7258_v27 = vcombine.low %v468_v34, %v472_v1  ;;  %v7896_v34 = vld [vmem:[#allocation7 + $0x44] ss:$16 sps:$4 sm:$0xff]  }
 0x268   :  { %3923 = vmatpush1.bf16.msra.mxu0 %v7336_v28  ;;  %4053 = vmatprep.subr.bf16.mxu1 %v7219_v30  ;;  %v7266_v15 = vcombine.low %v476_v12, %v480_v13  ;;  %v508_v1 = vld [vmem:[#allocation2 + $0xad8] sm:$0xff] }
 0x269   :  { %3924 = vmatprep.subr.bf16.mxu0 %v7345_v31  ;;  %3954 = vmatprep.mubr.bf16.mxu0 %v8625_v0  ;;  %v7384_v31 = vcombine.low %v595_v4, %v599_v5  ;;  %v512_v4 = vld [vmem:[#allocation2 + $0xaf8] sm:$0xff]  ;;  %v7290_v5 = vcombine.low %v500_v57, %v504_v58 }
 0x26a   :  { %4083 = vmatprep.mubr.bf16.mxu1 %v8908_v62  ;;  %v7369_v62 = vcombine.high %v579_v26, %v583_v50  ;;  %v7888_v50 = vld [vmem:[#allocation7] ss:$16 sps:$4 sm:$0xff]   ;;  %v7298_v12 = vcombine.low %v508_v1, %v512_v4 }
 0x26b   :  { %4054 = vmatpush1.bf16.msra.mxu1 %v7218_v38  ;;  %v7393_v38 = vcombine.high %v603_v22, %v607_v24  ;;  %v7897_v13 = vld [vmem:[#allocation7 + $0x60] ss:$16 sps:$4 sm:$0xff]  }
 0x26c   :  { %3925 = vmatpush1.bf16.msra.mxu0 %v7344_v39  ;;  %4055 = vmatprep.subr.bf16.mxu1 %v7227_v40  ;;  %v484_v39 = vld [vmem:[#allocation2 + $0xa18] sm:$0xff] }
 0x26d   :  { %3926 = vmatprep.subr.bf16.mxu0 %v7353_v41  ;;  %v488_v40 = vld [vmem:[#allocation2 + $0xa38] sm:$0xff] }
 0x26e   :  { %v7274_v26 = vcombine.low %v484_v39, %v488_v40 }
 0x26f   :  { %4056 = vmatpush1.bf16.msra.mxu1 %v7226_v18 }
 0x270   :  { %3927 = vmatpush1.bf16.msra.mxu0 %v7352_v45  ;;  %4057 = vmatprep.subr.bf16.mxu1 %v7235_v46  ;;  %v7275_v45 = vcombine.high %v484_v39, %v488_v40  ;;  %v7890_v46 = vld [vmem:[#allocation7 + $0x4] ss:$16 sps:$4 sm:$0xff]  }
 0x271   :  { %3928 = vmatprep.subr.bf16.mxu0 %v7361_v47  ;;  %v544_v39 = vld [vmem:[#allocation2 + $0xbf8] sm:$0xff] }
 0x273   :  { %4058 = vmatpush1.bf16.msra.mxu1 %v7234_v51 }
 0x274   :  { %3929 = vmatpush1.bf16.msra.mxu0 %v7360_v52  ;;  %4059 = vmatprep.subr.bf16.mxu1 %v7243_v53 }
 0x275   :  { %3930 = vmatprep.subr.bf16.mxu0 %v7369_v62 }
 0x277   :  { %4060 = vmatpush1.bf16.msra.mxu1 %v7242_v59  ;;  %v8947_v59 = vld [vmem:[%s9006_s0 + $0x18] ss:$28 sps:$4 sm:$0xff]  }
 0x278   :  { %3931 = vmatpush1.bf16.msra.mxu0 %v7368_v37  ;;  %4061 = vmatprep.subr.bf16.mxu1 %v7251_v60  ;;  %v7891_v60 = vld [vmem:[#allocation7 + $0x20] ss:$16 sps:$4 sm:$0xff]  }
 0x279   :  { %3932 = vmatprep.subr.bf16.mxu0 %v7377_v63  ;;  %v7291_v63 = vcombine.high %v500_v57, %v504_v58  ;;  %v576_v57 = vld [vmem:[#allocation2 + $0xcf8] sm:$0xff] }
 0x27a   :  { %v3612_v16 = vpop.f32.mrb[4].mxu0 }
 0x27b   :  { %v7755_v54 = vadd.f32 %v3612_v16, %v8862_v14  ;;  %v3614_v25 = vpop.f32.mrb[5].mxu0  ;;  %4062 = vmatpush1.bf16.msra.mxu1 %v7250_v6  ;;  %v7894_v6 = vld [vmem:[#allocation7 + $0x40] ss:$16 sps:$4 sm:$0xff]  }
 0x27c   :  { %v7756_v28 = vadd.f32 %v3614_v25, %v8864_v17  ;;  %v3616_v30 = vpop.f32.mrb[6].mxu0  ;;  %3933 = vmatpush1.bf16.msra.mxu0 %v7376_v7  ;;  %4063 = vmatprep.subr.bf16.mxu1 %v7259_v8  ;;  %v7392_v17 = vcombine.low %v603_v22, %v607_v24  ;;  %v7299_v7 = vcombine.high %v508_v1, %v512_v4  ;;  %v7899_v8 = vld [vmem:[#allocation7 + $0x64] ss:$16 sps:$4 sm:$0xff]   ;;  %v7900_v25 = vld [vmem:[#allocation7 + $0x80] ss:$16 sps:$4 sm:$0xff]  }
 0x27d   :  { %v4179_v33 = vadd.f32 %v7755_v54, %v4142_v9  ;;  %v7757_v35 = vadd.f32 %v3616_v30, %v8866_v20  ;;  %v3618_v36 = vpop.f32.mrb[7].mxu0  ;;  %3934 = vmatprep.subr.bf16.mxu0 %v7385_v11  ;;  %v520_v11 = vld [vmem:[#allocation2 + $0xb38] sm:$0xff] }
 0x27e   :  { %v4180_v41 = vadd.f32 %v7756_v28, %v4146_v19  ;;  %v7758_v14 = vadd.f32 %v3618_v36, %v8868_v23  ;;  %v496_v23 = vld [vmem:[#allocation2 + $0xa78] sm:$0xff] }
 0x27f   :  { %v4211_v42 = vmul.f32 0.2, %v4179_v33  ;;  %v4187_v43 = vadd.f32 %v7757_v35, %v4142_v9  ;;  %4064 = vmatpush1.bf16.msra.mxu1 %v7258_v27  ;;  %vm4195_vm0 = vcmp.gt.f32.partialorder %v4179_v33, 0.0  ;;  %v7283_v55 = vcombine.high %v492_v48, %v496_v23  ;;  %v516_v9 = vld [vmem:[#allocation2 + $0xb18] sm:$0xff] }
 0x280   :  { %v4212_v44 = vmul.f32 0.2, %v4180_v41  ;;  %v4188_v18 = vadd.f32 %v7758_v14, %v4146_v19  ;;  %3935 = vmatpush1.bf16.msra.mxu0 %v7384_v31  ;;  %4065 = vmatprep.subr.bf16.mxu1 %v7267_v32  ;;  %vm4196_vm1 = vcmp.gt.f32.partialorder %v4180_v41, 0.0  ;;  %v7282_v37 = vcombine.low %v492_v48, %v496_v23  ;;  %v7902_v19 = vld [vmem:[#allocation7 + $0x84] ss:$16 sps:$4 sm:$0xff]  }
 0x281   :  { %vm4203_vm2 = vcmp.gt.f32.partialorder %v4187_v43, 0.0  ;;  %v4219_v20 = vmul.f32 0.2, %v4187_v43  ;;  %3936 = vmatprep.subr.bf16.mxu0 %v7393_v38  ;;  %v4227_v21 = vsel %vm4195_vm0, %v4179_v33, %v4211_v42  ;;  %v7307_v16 = vcombine.high %v516_v9, %v520_v11  ;;  %v524_v22 = vld [vmem:[#allocation2 + $0xb58] sm:$0xff] }
 0x282   :  { %vm4204_vm3 = vcmp.gt.f32.partialorder %v4188_v18, 0.0  ;;  %v4220_v47 = vmul.f32 0.2, %v4188_v18  ;;  %v4228_v51 = vsel %vm4196_vm1, %v4180_v41, %v4212_v44  ;;  %v528_v24 = vld [vmem:[#allocation2 + $0xb78] sm:$0xff]  ;;  %v7306_v54 = vcombine.low %v516_v9, %v520_v11 }
 0x283   :  { %v4235_v49 = vsel %vm4203_vm2, %v4187_v43, %v4219_v20  ;;  %4066 = vmatpush1.bf16.msra.mxu1 %v7266_v15  ;;  %v7315_v27 = vcombine.high %v524_v22, %v528_v24  ;;  %v7905_v28 = vld [vmem:[#allocation7 + $0xa4] ss:$16 sps:$4 sm:$0xff]   ;;  %v7314_v32 = vcombine.low %v524_v22, %v528_v24  ;;  %v7903_v33 = vld [vmem:[#allocation7 + $0xa0] ss:$16 sps:$4 sm:$0xff]   ;;  %v4153_v11 = vsub.s32 3, %v8921_v29 }
 0x284   :  { %3937 = vmatpush1.bf16.msra.mxu0 %v7392_v17  ;;  %4067 = vmatprep.subr.bf16.mxu1 %v7275_v45  ;;  %v4236_v52 = vsel %vm4204_vm3, %v4188_v18, %v4220_v47  ;;  %v8940_v53 = vpack.c.bf16 %v4235_v49, %v4227_v21  ;;  %v532_v30 = vld [vmem:[#allocation2 + $0xb98] sm:$0xff] }
 0x285   :  { %5809 = vmatprep.subr.bf16.mxu0 %v7890_v46  ;;  %v8942_v62 = vpack.c.bf16 %v4236_v52, %v4228_v51  ;;  %v536_v31 = vld [vmem:[#allocation2 + $0xbb8] sm:$0xff] }
 0x286   :  { %v7323_v35 = vcombine.high %v532_v30, %v536_v31  ;;  %v7908_v36 = vld [vmem:[#allocation7 + $0xc4] ss:$16 sps:$4 sm:$0xff]   ;;  %v7322_v40 = vcombine.low %v532_v30, %v536_v31  ;;  %v7906_v41 = vld [vmem:[#allocation7 + $0xc0] ss:$16 sps:$4 sm:$0xff]  }
 0x287   :  { %3955 = vmatmul.mubr.bf16.vlgmr.msra.gmra.mrb[0].mxu0 %v8947_v59  ;;  %4068 = vmatpush1.bf16.msra.mxu1 %v7274_v26  ;;  %v540_v38 = vld [vmem:[#allocation2 + $0xbd8] sm:$0xff] }
 0x288   :  { %5810 = vmatpush1.bf16.msra.mxu0 %v7888_v50  ;;  %5841 = vmatprep.mubr.bf16.mxu0 %v8942_v62  ;;  %v7331_v14 = vcombine.high %v540_v38, %v544_v39  ;;  %v7911_v42 = vld [vmem:[#allocation7 + $0xe4] ss:$16 sps:$4 sm:$0xff]   ;;  %v7330_v15 = vcombine.low %v540_v38, %v544_v39  ;;  %v7909_v44 = vld [vmem:[#allocation7 + $0xe0] ss:$16 sps:$4 sm:$0xff]  }
 0x289   :  { %4069 = vmatprep.subr.bf16.mxu1 %v7283_v55  ;;  %5811 = vmatprep.subr.bf16.mxu0 %v7893_v56  ;;  %v548_v43 = vld [vmem:[#allocation2 + $0xc18] sm:$0xff] }
 0x28a   :  { %v552_v17 = vld [vmem:[#allocation2 + $0xc38] sm:$0xff] }
 0x28b   :  { %4070 = vmatpush1.bf16.msra.mxu1 %v7282_v37  ;;  %v7339_v18 = vcombine.high %v548_v43, %v552_v17  ;;  %v7914_v45 = vld [vmem:[#allocation7 + $0x104] ss:$16 sps:$4 sm:$0xff]   ;;  %v7338_v47 = vcombine.low %v548_v43, %v552_v17  ;;  %v7912_v48 = vld [vmem:[#allocation7 + $0x100] ss:$16 sps:$4 sm:$0xff]  }
 0x28c   :  { %5812 = vmatpush1.bf16.msra.mxu0 %v7891_v60  ;;  %4071 = vmatprep.subr.bf16.mxu1 %v7291_v63  ;;  %v556_v20 = vld [vmem:[#allocation2 + $0xc58] sm:$0xff] }
 0x28d   :  { %5813 = vmatprep.subr.bf16.mxu0 %v7896_v34  ;;  %v560_v46 = vld [vmem:[#allocation2 + $0xc78] sm:$0xff] }
 0x28e   :  { %v7347_v23 = vcombine.high %v556_v20, %v560_v46  ;;  %v7917_v21 = vld [vmem:[#allocation7 + $0x124] ss:$16 sps:$4 sm:$0xff]   ;;  %v7346_v50 = vcombine.low %v556_v20, %v560_v46  ;;  %v7915_v51 = vld [vmem:[#allocation7 + $0x120] ss:$16 sps:$4 sm:$0xff]  }
 0x28f   :  { %4072 = vmatpush1.bf16.msra.mxu1 %v7290_v5  ;;  %v564_v49 = vld [vmem:[#allocation2 + $0xc98] sm:$0xff] }
 0x290   :  { %5814 = vmatpush1.bf16.msra.mxu0 %v7894_v6  ;;  %4073 = vmatprep.subr.bf16.mxu1 %v7299_v7  ;;  %v568_v26 = vld [vmem:[#allocation2 + $0xcb8] sm:$0xff] }
 0x291   :  { %5815 = vmatprep.subr.bf16.mxu0 %v7899_v8  ;;  %v7355_v52 = vcombine.high %v564_v49, %v568_v26  ;;  %v7920_v55 = vld [vmem:[#allocation7 + $0x144] ss:$16 sps:$4 sm:$0xff]   ;;  %v7354_v58 = vcombine.low %v564_v49, %v568_v26  ;;  %v7918_v37 = vld [vmem:[#allocation7 + $0x140] ss:$16 sps:$4 sm:$0xff]   ;;  %v4149_v8 = vsub.s32 2, %v8921_v29 }
 0x292   :  { %v572_v56 = vld [vmem:[#allocation2 + $0xcd8] sm:$0xff] }
 0x293   :  { %4074 = vmatpush1.bf16.msra.mxu1 %v7298_v12  ;;  %v7363_v60 = vcombine.high %v572_v56, %v576_v57  ;;  %v580_v63 = vld [vmem:[#allocation2 + $0xd18] sm:$0xff]  ;;  %v4150_v24 = vrot.slane %v8926_v2, %v4149_v8 }
 0x294   :  { %5816 = vmatpush1.bf16.msra.mxu0 %v7897_v13  ;;  %4075 = vmatprep.subr.bf16.mxu1 %v7307_v16  ;;  %v584_v34 = vld [vmem:[#allocation2 + $0xd38] sm:$0xff] }
 0x295   :  { %5817 = vmatprep.subr.bf16.mxu0 %v7902_v19  ;;  %v7921_v1 = vld [vmem:[#allocation7 + $0x160] ss:$16 sps:$4 sm:$0xff]   ;;  %v7371_v4 = vcombine.high %v580_v63, %v584_v34  ;;  %v7926_v5 = vld [vmem:[#allocation7 + $0x184] ss:$16 sps:$4 sm:$0xff]   ;;  %v7370_v9 = vcombine.low %v580_v63, %v584_v34  ;;  %v7951_v63 = vld [vmem:[#allocation7 + $0x48] ss:$16 sps:$4 sm:$0xff]  }
 0x296   :  { %v588_v6 = vld [vmem:[#allocation2 + $0xd58] sm:$0xff] }
 0x297   :  { %4076 = vmatpush1.bf16.msra.mxu1 %v7306_v54  ;;  %v592_v7 = vld [vmem:[#allocation2 + $0xd78] sm:$0xff]  ;;  %v4154_v54 = vrot.slane %v8926_v2, %v4153_v11 }
 0x298   :  { %5818 = vmatpush1.bf16.msra.mxu0 %v7900_v25  ;;  %4077 = vmatprep.subr.bf16.mxu1 %v7315_v27  ;;  %v7924_v12 = vld [vmem:[#allocation7 + $0x180] ss:$16 sps:$4 sm:$0xff]   ;;  %v7379_v13 = vcombine.high %v588_v6, %v592_v7  ;;  %v7929_v16 = vld [vmem:[#allocation7 + $0x1a4] ss:$16 sps:$4 sm:$0xff]   ;;  %v7378_v25 = vcombine.low %v588_v6, %v592_v7 }
 0x299   :  { %5819 = vmatprep.subr.bf16.mxu0 %v7905_v28  ;;  %v596_v19 = vld [vmem:[#allocation2 + $0xd98] sm:$0xff] }
 0x29a   :  { %v600_v22 = vld [vmem:[#allocation2 + $0xdb8] sm:$0xff] }
 0x29b   :  { %4078 = vmatpush1.bf16.msra.mxu1 %v7314_v32  ;;  %v7927_v27 = vld [vmem:[#allocation7 + $0x1a0] ss:$16 sps:$4 sm:$0xff]   ;;  %v7387_v28 = vcombine.high %v596_v19, %v600_v22  ;;  %v7932_v31 = vld [vmem:[#allocation7 + $0x1c4] ss:$16 sps:$4 sm:$0xff]  }
 0x29c   :  { %5820 = vmatpush1.bf16.msra.mxu0 %v7903_v33  ;;  %4079 = vmatprep.subr.bf16.mxu1 %v7323_v35  ;;  %v604_v32 = vld [vmem:[#allocation2 + $0xdd8] sm:$0xff] }
 0x29d   :  { %5821 = vmatprep.subr.bf16.mxu0 %v7908_v36  ;;  %v608_v33 = vld [vmem:[#allocation2 + $0xdf8] sm:$0xff] }
 0x29e   :  { %v7395_v43 = vcombine.high %v604_v32, %v608_v33  ;;  %v7394_v20 = vcombine.low %v604_v32, %v608_v33  ;;  %v7938_v49 = vld [vmem:[#allocation7 + $0x204] ss:$16 sps:$4 sm:$0xff]   ;;  %v7948_v34 = vld [vmem:[#allocation7 + $0x240] ss:$16 sps:$4 sm:$0xff]   ;;  %v7987_v33 = vld [vmem:[#allocation7 + $0x108] ss:$16 sps:$4 sm:$0xff]  }
 0x29f   :  { %4080 = vmatpush1.bf16.msra.mxu1 %v7322_v40  ;;  %v7386_v40 = vcombine.low %v596_v19, %v600_v22  ;;  %v7962_v6 = vld [vmem:[#allocation7 + $0x284] ss:$16 sps:$4 sm:$0xff]   ;;  %v7960_v7 = vld [vmem:[#allocation7 + $0x280] ss:$16 sps:$4 sm:$0xff]   ;;  %v7977_v19 = vld [vmem:[#allocation7 + $0xcc] ss:$16 sps:$4 sm:$0xff]  }
 0x2a0   :  { %5822 = vmatpush1.bf16.msra.mxu0 %v7906_v41  ;;  %4081 = vmatprep.subr.bf16.mxu1 %v7331_v14  ;;  %v7974_v22 = vld [vmem:[#allocation7 + $0x2c4] ss:$16 sps:$4 sm:$0xff]  }
 0x2a1   :  { %5823 = vmatprep.subr.bf16.mxu0 %v7911_v42  ;;  %v7930_v42 = vld [vmem:[#allocation7 + $0x1c0] ss:$16 sps:$4 sm:$0xff]   ;;  %v7986_v32 = vld [vmem:[#allocation7 + $0x304] ss:$16 sps:$4 sm:$0xff]  }
 0x2a3   :  { %4082 = vmatpush1.bf16.msra.mxu1 %v7330_v15 }
 0x2a4   :  { %5824 = vmatpush1.bf16.msra.mxu0 %v7909_v44  ;;  %4094 = vmatprep.subr.bf16.mxu1 %v7339_v18  ;;  %v7935_v44 = vld [vmem:[#allocation7 + $0x1e4] ss:$16 sps:$4 sm:$0xff]  }
 0x2a5   :  { %5825 = vmatprep.subr.bf16.mxu0 %v7914_v45 }
 0x2a6   :  { %4084 = vmatmul.mubr.bf16.vlgmr.msra.gmra.mrb[8].mxu1 %v8916_v10  ;;  %v7923_v10 = vld [vmem:[#allocation7 + $0x164] ss:$16 sps:$4 sm:$0xff]  }
 0x2a7   :  { %4095 = vmatpush1.bf16.msra.mxu1 %v7338_v47  ;;  %4126 = vmatprep.mubr.bf16.mxu1 %v8625_v0  ;;  %v7362_v0 = vcombine.low %v572_v56, %v576_v57  ;;  %v7944_v56 = vld [vmem:[#allocation7 + $0x224] ss:$16 sps:$4 sm:$0xff]   ;;  %v7947_v57 = vld [vmem:[#allocation7 + $0x2c] ss:$16 sps:$4 sm:$0xff]  }
 0x2a8   :  { %5826 = vmatpush1.bf16.msra.mxu0 %v7912_v48  ;;  %4096 = vmatprep.subr.bf16.mxu1 %v7347_v23  ;;  %v7933_v48 = vld [vmem:[#allocation7 + $0x1e0] ss:$16 sps:$4 sm:$0xff]   ;;  %v7941_v23 = vld [vmem:[#allocation7 + $0xc] ss:$16 sps:$4 sm:$0xff]  }
 0x2a9   :  { %5827 = vmatprep.subr.bf16.mxu0 %v7917_v21 }
 0x2ab   :  { %4097 = vmatpush1.bf16.msra.mxu1 %v7346_v50 }
 0x2ac   :  { %5828 = vmatpush1.bf16.msra.mxu0 %v7915_v51  ;;  %4098 = vmatprep.subr.bf16.mxu1 %v7355_v52  ;;  %v7939_v52 = vld [vmem:[#allocation7 + $0x8] ss:$16 sps:$4 sm:$0xff]  }
 0x2ad   :  { %5829 = vmatprep.subr.bf16.mxu0 %v7920_v55  ;;  %v7936_v55 = vld [vmem:[#allocation7 + $0x200] ss:$16 sps:$4 sm:$0xff]  }
 0x2af   :  { %4099 = vmatpush1.bf16.msra.mxu1 %v7354_v58  ;;  %v7945_v58 = vld [vmem:[#allocation7 + $0x28] ss:$16 sps:$4 sm:$0xff]  }
 0x2b0   :  { %5830 = vmatpush1.bf16.msra.mxu0 %v7918_v37  ;;  %4100 = vmatprep.subr.bf16.mxu1 %v7363_v60  ;;  %v7942_v37 = vld [vmem:[#allocation7 + $0x220] ss:$16 sps:$4 sm:$0xff]   ;;  %v7953_v60 = vld [vmem:[#allocation7 + $0x4c] ss:$16 sps:$4 sm:$0xff]  }
 0x2b1   :  { %5831 = vmatprep.subr.bf16.mxu0 %v7923_v10  ;;  %v7950_v10 = vld [vmem:[#allocation7 + $0x244] ss:$16 sps:$4 sm:$0xff]  }
 0x2b3   :  { %4101 = vmatpush1.bf16.msra.mxu1 %v7362_v0  ;;  %v7956_v0 = vld [vmem:[#allocation7 + $0x264] ss:$16 sps:$4 sm:$0xff]  }
 0x2b4   :  { %5832 = vmatpush1.bf16.msra.mxu0 %v7921_v1  ;;  %4102 = vmatprep.subr.bf16.mxu1 %v7371_v4  ;;  %v7957_v1 = vld [vmem:[#allocation7 + $0x68] ss:$16 sps:$4 sm:$0xff]   ;;  %v7954_v4 = vld [vmem:[#allocation7 + $0x260] ss:$16 sps:$4 sm:$0xff]  }
 0x2b5   :  { %5833 = vmatprep.subr.bf16.mxu0 %v7926_v5  ;;  %v7965_v5 = vld [vmem:[#allocation7 + $0x8c] ss:$16 sps:$4 sm:$0xff]  }
 0x2b7   :  { %4103 = vmatpush1.bf16.msra.mxu1 %v7370_v9  ;;  %v7971_v9 = vld [vmem:[#allocation7 + $0xac] ss:$16 sps:$4 sm:$0xff]  }
 0x2b8   :  { %5834 = vmatpush1.bf16.msra.mxu0 %v7924_v12  ;;  %4104 = vmatprep.subr.bf16.mxu1 %v7379_v13  ;;  %v7968_v12 = vld [vmem:[#allocation7 + $0x2a4] ss:$16 sps:$4 sm:$0xff]   ;;  %v7969_v13 = vld [vmem:[#allocation7 + $0xa8] ss:$16 sps:$4 sm:$0xff]  }
 0x2b9   :  { %v3784_v30 = vpop.f32.mrb[4].mxu1  ;;  %5835 = vmatprep.subr.bf16.mxu0 %v7929_v16  ;;  %v7966_v16 = vld [vmem:[#allocation7 + $0x2a0] ss:$16 sps:$4 sm:$0xff]  }
 0x2ba   :  { %v4181_v35 = vadd.f32 %v4150_v24, %v3784_v30  ;;  %v3786_v36 = vpop.f32.mrb[5].mxu1  ;;  %v7978_v30 = vld [vmem:[#allocation7 + $0x2e0] ss:$16 sps:$4 sm:$0xff]  }
 0x2bb   :  { %v4182_v38 = vadd.f32 %v4154_v54, %v3786_v36  ;;  %v3788_v39 = vpop.f32.mrb[6].mxu1  ;;  %4105 = vmatpush1.bf16.msra.mxu1 %v7378_v25  ;;  %v7983_v25 = vld [vmem:[#allocation7 + $0xec] ss:$16 sps:$4 sm:$0xff]  }
 0x2bc   :  { %v4213_v41 = vmul.f32 0.2, %v4181_v35  ;;  %v4189_v14 = vadd.f32 %v4150_v24, %v3788_v39  ;;  %5836 = vmatpush1.bf16.msra.mxu0 %v7927_v27  ;;  %v3790_v2 = vpop.f32.mrb[7].mxu1  ;;  %4106 = vmatprep.subr.bf16.mxu1 %v7387_v28  ;;  %vm4197_vm4 = vcmp.gt.f32.partialorder %v4181_v35, 0.0  ;;  %v7975_v24 = vld [vmem:[#allocation7 + $0xc8] ss:$16 sps:$4 sm:$0xff]  }
 0x2bd   :  { %v4214_v17 = vmul.f32 0.2, %v4182_v38  ;;  %v4190_v15 = vadd.f32 %v4154_v54, %v3790_v2  ;;  %5837 = vmatprep.subr.bf16.mxu0 %v7932_v31  ;;  %vm4198_vm5 = vcmp.gt.f32.partialorder %v4182_v38, 0.0  ;;  %v7972_v54 = vld [vmem:[#allocation7 + $0x2c0] ss:$16 sps:$4 sm:$0xff]  }
 0x2be   :  { %vm4205_vm6 = vcmp.gt.f32.partialorder %v4189_v14, 0.0  ;;  %v4221_v18 = vmul.f32 0.2, %v4189_v14  ;;  %v4229_v46 = vsel %vm4197_vm4, %v4181_v35, %v4213_v41  ;;  %v7980_v27 = vld [vmem:[#allocation7 + $0x2e4] ss:$16 sps:$4 sm:$0xff]  }
 0x2bf   :  { %vm4206_vm7 = vcmp.gt.f32.partialorder %v4190_v15, 0.0  ;;  %v4222_v45 = vmul.f32 0.2, %v4190_v15  ;;  %4107 = vmatpush1.bf16.msra.mxu1 %v7386_v40  ;;  %v4230_v26 = vsel %vm4198_vm5, %v4182_v38, %v4214_v17  ;;  %v7981_v28 = vld [vmem:[#allocation7 + $0xe8] ss:$16 sps:$4 sm:$0xff]  }
 0x2c0   :  { %v4237_v47 = vsel %vm4205_vm6, %v4189_v14, %v4221_v18  ;;  %5838 = vmatpush1.bf16.msra.mxu0 %v7930_v42  ;;  %4108 = vmatprep.subr.bf16.mxu1 %v7395_v43  ;;  %v7989_v31 = vld [vmem:[#allocation7 + $0x10c] ss:$16 sps:$4 sm:$0xff]   ;;  %v7984_v35 = vld [vmem:[#allocation7 + $0x300] ss:$16 sps:$4 sm:$0xff]   ;;  %v7992_v38 = vld [vmem:[#allocation7 + $0x324] ss:$16 sps:$4 sm:$0xff]  }
 0x2c1   :  { %v8961_v21 = vpack.c.bf16 %v4237_v47, %v4229_v46  ;;  %5839 = vmatprep.subr.bf16.mxu0 %v7935_v44  ;;  %v4238_v50 = vsel %vm4206_vm7, %v4190_v15, %v4222_v45  ;;  %v7995_v36 = vld [vmem:[#allocation7 + $0x12c] ss:$16 sps:$4 sm:$0xff]   ;;  %v7993_v39 = vld [vmem:[#allocation7 + $0x128] ss:$16 sps:$4 sm:$0xff]   ;;  %v7990_v40 = vld [vmem:[#allocation7 + $0x320] ss:$16 sps:$4 sm:$0xff]  }
 0x2c2   :  { %v8964_v51 = vpack.c.bf16 %v4238_v50, %v4230_v26  ;;  %v8001_v41 = vld [vmem:[#allocation7 + $0x14c] ss:$16 sps:$4 sm:$0xff]   ;;  %v7998_v14 = vld [vmem:[#allocation7 + $0x344] ss:$16 sps:$4 sm:$0xff]   ;;  %v7999_v2 = vld [vmem:[#allocation7 + $0x148] ss:$16 sps:$4 sm:$0xff]  }
 0x2c3   :  { %4109 = vmatpush1.bf16.msra.mxu1 %v7394_v20  ;;  %v7996_v42 = vld [vmem:[#allocation7 + $0x340] ss:$16 sps:$4 sm:$0xff]   ;;  %v8007_v43 = vld [vmem:[#allocation7 + $0x16c] ss:$16 sps:$4 sm:$0xff]   ;;  %v8004_v17 = vld [vmem:[#allocation7 + $0x364] ss:$16 sps:$4 sm:$0xff]  }
 0x2c4   :  { %5840 = vmatpush1.bf16.msra.mxu0 %v7933_v48  ;;  %5981 = vmatprep.subr.bf16.mxu1 %v7941_v23  ;;  %v8005_v15 = vld [vmem:[#allocation7 + $0x168] ss:$16 sps:$4 sm:$0xff]   ;;  %v8002_v44 = vld [vmem:[#allocation7 + $0x360] ss:$16 sps:$4 sm:$0xff]   ;;  %v8013_v18 = vld [vmem:[#allocation7 + $0x18c] ss:$16 sps:$4 sm:$0xff]  }
 0x2c5   :  { %5852 = vmatprep.subr.bf16.mxu0 %v7938_v49  ;;  %v8010_v45 = vld [vmem:[#allocation7 + $0x384] ss:$16 sps:$4 sm:$0xff]   ;;  %v8011_v20 = vld [vmem:[#allocation7 + $0x188] ss:$16 sps:$4 sm:$0xff]   ;;  %v8008_v46 = vld [vmem:[#allocation7 + $0x380] ss:$16 sps:$4 sm:$0xff]  }
 0x2c6   :  { %4127 = vmatmul.mubr.bf16.vlgmr.msra.gmra.mrb[8].mxu1 %v8947_v59  ;;  %v7959_v59 = vld [vmem:[#allocation7 + $0x6c] ss:$16 sps:$4 sm:$0xff]   ;;  %v8016_v48 = vld [vmem:[#allocation7 + $0x3a4] ss:$16 sps:$4 sm:$0xff]   ;;  %v8017_v23 = vld [vmem:[#allocation7 + $0x1a8] ss:$16 sps:$4 sm:$0xff]  }
 0x2c7   :  { %5842 = vmatmul.mubr.bf16.vlgmr.msra.gmra.mrb[8].mxu0 %v8940_v53  ;;  %5982 = vmatpush1.bf16.msra.mxu1 %v7939_v52  ;;  %v8019_v47 = vld [vmem:[#allocation7 + $0x1ac] ss:$16 sps:$4 sm:$0xff]   ;;  %v8014_v49 = vld [vmem:[#allocation7 + $0x3a0] ss:$16 sps:$4 sm:$0xff]   ;;  %v8022_v50 = vld [vmem:[#allocation7 + $0x3c4] ss:$16 sps:$4 sm:$0xff]  }
 0x2c8   :  { %5853 = vmatpush1.bf16.msra.mxu0 %v7936_v55  ;;  %5884 = vmatprep.mubr.bf16.mxu0 %v8964_v51  ;;  %v8025_v26 = vld [vmem:[#allocation7 + $0x1cc] ss:$16 sps:$4 sm:$0xff]   ;;  %v8023_v52 = vld [vmem:[#allocation7 + $0x1c8] ss:$16 sps:$4 sm:$0xff]   ;;  %v8020_v55 = vld [vmem:[#allocation7 + $0x3c0] ss:$16 sps:$4 sm:$0xff]  }
 0x2c9   :  { %6013 = vmatprep.mubr.bf16.mxu1 %v8942_v62  ;;  %5854 = vmatprep.subr.bf16.mxu0 %v7944_v56  ;;  %v7963_v62 = vld [vmem:[#allocation7 + $0x88] ss:$16 sps:$4 sm:$0xff]   ;;  %v8031_v56 = vld [vmem:[#allocation7 + $0x1ec] ss:$16 sps:$4 sm:$0xff]  }
 0x2ca   :  { %5983 = vmatprep.subr.bf16.mxu1 %v7947_v57  ;;  %v8028_v57 = vld [vmem:[#allocation7 + $0x3e4] ss:$16 sps:$4 sm:$0xff]  }
 0x2cb   :  { %5984 = vmatpush1.bf16.msra.mxu1 %v7945_v58  ;;  %v8029_v58 = vld [vmem:[#allocation7 + $0x1e8] ss:$16 sps:$4 sm:$0xff]  }
 0x2cc   :  { %5855 = vmatpush1.bf16.msra.mxu0 %v7942_v37  ;;  %5985 = vmatprep.subr.bf16.mxu1 %v7953_v60  ;;  %v8026_v37 = vld [vmem:[#allocation7 + $0x3e0] ss:$16 sps:$4 sm:$0xff]   ;;  %v8034_v60 = vld [vmem:[#allocation7 + $0x20c] ss:$16 sps:$4 sm:$0xff]  }
 0x2cd   :  { %5856 = vmatprep.subr.bf16.mxu0 %v7950_v10  ;;  %v8058_v10 = vld [vmem:[#allocation7 + $0x404] ss:$16 sps:$4 sm:$0xff]  }
 0x2cf   :  { %5986 = vmatpush1.bf16.msra.mxu1 %v7951_v63  ;;  %v8032_v63 = vld [vmem:[#allocation7 + $0x208] ss:$16 sps:$4 sm:$0xff]  }
 0x2d0   :  { %5857 = vmatpush1.bf16.msra.mxu0 %v7948_v34  ;;  %5987 = vmatprep.subr.bf16.mxu1 %v7959_v59  ;;  %v8037_v34 = vld [vmem:[#allocation7 + $0x22c] ss:$16 sps:$4 sm:$0xff]   ;;  %v8056_v59 = vld [vmem:[#allocation7 + $0x400] ss:$16 sps:$4 sm:$0xff]  }
 0x2d1   :  { %5858 = vmatprep.subr.bf16.mxu0 %v7956_v0  ;;  %v8064_v0 = vld [vmem:[#allocation7 + $0x424] ss:$16 sps:$4 sm:$0xff]  }
 0x2d3   :  { %5988 = vmatpush1.bf16.msra.mxu1 %v7957_v1  ;;  %v8035_v1 = vld [vmem:[#allocation7 + $0x228] ss:$16 sps:$4 sm:$0xff]  }
 0x2d4   :  { %5859 = vmatpush1.bf16.msra.mxu0 %v7954_v4  ;;  %5989 = vmatprep.subr.bf16.mxu1 %v7965_v5  ;;  %v8040_v4 = vld [vmem:[#allocation7 + $0x24c] ss:$16 sps:$4 sm:$0xff]   ;;  %v8062_v5 = vld [vmem:[#allocation7 + $0x420] ss:$16 sps:$4 sm:$0xff]  }
 0x2d5   :  { %5860 = vmatprep.subr.bf16.mxu0 %v7962_v6  ;;  %v8070_v6 = vld [vmem:[#allocation7 + $0x444] ss:$16 sps:$4 sm:$0xff]  }
 0x2d7   :  { %5990 = vmatpush1.bf16.msra.mxu1 %v7963_v62  ;;  %v8038_v62 = vld [vmem:[#allocation7 + $0x248] ss:$16 sps:$4 sm:$0xff]  }
 0x2d8   :  { %5861 = vmatpush1.bf16.msra.mxu0 %v7960_v7  ;;  %5991 = vmatprep.subr.bf16.mxu1 %v7971_v9  ;;  %v8043_v7 = vld [vmem:[#allocation7 + $0x26c] ss:$16 sps:$4 sm:$0xff]   ;;  %v8068_v9 = vld [vmem:[#allocation7 + $0x440] ss:$16 sps:$4 sm:$0xff]  }
 0x2d9   :  { %5862 = vmatprep.subr.bf16.mxu0 %v7968_v12  ;;  %v8041_v12 = vld [vmem:[#allocation7 + $0x268] ss:$16 sps:$4 sm:$0xff]  }
 0x2db   :  { %5992 = vmatpush1.bf16.msra.mxu1 %v7969_v13  ;;  %v8046_v13 = vld [vmem:[#allocation7 + $0x28c] ss:$16 sps:$4 sm:$0xff]  }
 0x2dc   :  { %5863 = vmatpush1.bf16.msra.mxu0 %v7966_v16  ;;  %5993 = vmatprep.subr.bf16.mxu1 %v7977_v19  ;;  %v8082_v16 = vld [vmem:[#allocation7 + $0x484] ss:$16 sps:$4 sm:$0xff]   ;;  %v8044_v19 = vld [vmem:[#allocation7 + $0x288] ss:$16 sps:$4 sm:$0xff]  }
 0x2dd   :  { %5864 = vmatprep.subr.bf16.mxu0 %v7974_v22  ;;  %v8049_v22 = vld [vmem:[#allocation7 + $0x2ac] ss:$16 sps:$4 sm:$0xff]  }
 0x2df   :  { %5994 = vmatpush1.bf16.msra.mxu1 %v7975_v24  ;;  %v8080_v24 = vld [vmem:[#allocation7 + $0x480] ss:$16 sps:$4 sm:$0xff]  }
 0x2e0   :  { %5865 = vmatpush1.bf16.msra.mxu0 %v7972_v54  ;;  %5995 = vmatprep.subr.bf16.mxu1 %v7983_v25  ;;  %v8088_v54 = vld [vmem:[#allocation7 + $0x4a4] ss:$16 sps:$4 sm:$0xff]   ;;  %v8047_v25 = vld [vmem:[#allocation7 + $0x2a8] ss:$16 sps:$4 sm:$0xff]  }
 0x2e1   :  { %5866 = vmatprep.subr.bf16.mxu0 %v7980_v27  ;;  %v8052_v27 = vld [vmem:[#allocation7 + $0x2cc] ss:$16 sps:$4 sm:$0xff]  }
 0x2e3   :  { %5996 = vmatpush1.bf16.msra.mxu1 %v7981_v28  ;;  %v8086_v28 = vld [vmem:[#allocation7 + $0x4a0] ss:$16 sps:$4 sm:$0xff]  }
 0x2e4   :  { %5867 = vmatpush1.bf16.msra.mxu0 %v7978_v30  ;;  %5997 = vmatprep.subr.bf16.mxu1 %v7989_v31  ;;  %v8094_v30 = vld [vmem:[#allocation7 + $0x4c4] ss:$16 sps:$4 sm:$0xff]   ;;  %v8050_v31 = vld [vmem:[#allocation7 + $0x2c8] ss:$16 sps:$4 sm:$0xff]  }
 0x2e5   :  { %5868 = vmatprep.subr.bf16.mxu0 %v7986_v32  ;;  %v8055_v32 = vld [vmem:[#allocation7 + $0x2ec] ss:$16 sps:$4 sm:$0xff]  }
 0x2e7   :  { %5998 = vmatpush1.bf16.msra.mxu1 %v7987_v33  ;;  %v8092_v33 = vld [vmem:[#allocation7 + $0x4c0] ss:$16 sps:$4 sm:$0xff]  }
 0x2e8   :  { %5869 = vmatpush1.bf16.msra.mxu0 %v7984_v35  ;;  %5999 = vmatprep.subr.bf16.mxu1 %v7995_v36  ;;  %v8100_v35 = vld [vmem:[#allocation7 + $0x4e4] ss:$16 sps:$4 sm:$0xff]   ;;  %v8053_v36 = vld [vmem:[#allocation7 + $0x2e8] ss:$16 sps:$4 sm:$0xff]  }
 0x2e9   :  { %5870 = vmatprep.subr.bf16.mxu0 %v7992_v38  ;;  %v8061_v38 = vld [vmem:[#allocation7 + $0x30c] ss:$16 sps:$4 sm:$0xff]  }
 0x2eb   :  { %6000 = vmatpush1.bf16.msra.mxu1 %v7993_v39  ;;  %v8098_v39 = vld [vmem:[#allocation7 + $0x4e0] ss:$16 sps:$4 sm:$0xff]  }
 0x2ec   :  { %5871 = vmatpush1.bf16.msra.mxu0 %v7990_v40  ;;  %6001 = vmatprep.subr.bf16.mxu1 %v8001_v41  ;;  %v8106_v40 = vld [vmem:[#allocation7 + $0x504] ss:$16 sps:$4 sm:$0xff]   ;;  %v8059_v41 = vld [vmem:[#allocation7 + $0x308] ss:$16 sps:$4 sm:$0xff]  }
 0x2ed   :  { %5872 = vmatprep.subr.bf16.mxu0 %v7998_v14  ;;  %v8067_v14 = vld [vmem:[#allocation7 + $0x32c] ss:$16 sps:$4 sm:$0xff]  }
 0x2ef   :  { %6002 = vmatpush1.bf16.msra.mxu1 %v7999_v2  ;;  %v8104_v2 = vld [vmem:[#allocation7 + $0x500] ss:$16 sps:$4 sm:$0xff]  }
 0x2f0   :  { %5873 = vmatpush1.bf16.msra.mxu0 %v7996_v42  ;;  %6003 = vmatprep.subr.bf16.mxu1 %v8007_v43  ;;  %v8112_v42 = vld [vmem:[#allocation7 + $0x524] ss:$16 sps:$4 sm:$0xff]   ;;  %v8065_v43 = vld [vmem:[#allocation7 + $0x328] ss:$16 sps:$4 sm:$0xff]  }
 0x2f1   :  { %5874 = vmatprep.subr.bf16.mxu0 %v8004_v17  ;;  %v8073_v17 = vld [vmem:[#allocation7 + $0x34c] ss:$16 sps:$4 sm:$0xff]  }
 0x2f3   :  { %6004 = vmatpush1.bf16.msra.mxu1 %v8005_v15  ;;  %v8110_v15 = vld [vmem:[#allocation7 + $0x520] ss:$16 sps:$4 sm:$0xff]  }
 0x2f4   :  { %5875 = vmatpush1.bf16.msra.mxu0 %v8002_v44  ;;  %6005 = vmatprep.subr.bf16.mxu1 %v8013_v18  ;;  %v8118_v44 = vld [vmem:[#allocation7 + $0x544] ss:$16 sps:$4 sm:$0xff]   ;;  %v8071_v18 = vld [vmem:[#allocation7 + $0x348] ss:$16 sps:$4 sm:$0xff]  }
 0x2f5   :  { %5876 = vmatprep.subr.bf16.mxu0 %v8010_v45  ;;  %v8079_v45 = vld [vmem:[#allocation7 + $0x36c] ss:$16 sps:$4 sm:$0xff]  }
 0x2f7   :  { %6006 = vmatpush1.bf16.msra.mxu1 %v8011_v20  ;;  %v8116_v20 = vld [vmem:[#allocation7 + $0x540] ss:$16 sps:$4 sm:$0xff]  }
 0x2f8   :  { %5877 = vmatpush1.bf16.msra.mxu0 %v8008_v46  ;;  %6007 = vmatprep.subr.bf16.mxu1 %v8019_v47  ;;  %v8124_v46 = vld [vmem:[#allocation7 + $0x564] ss:$16 sps:$4 sm:$0xff]   ;;  %v8077_v47 = vld [vmem:[#allocation7 + $0x368] ss:$16 sps:$4 sm:$0xff]  }
 0x2f9   :  { %5878 = vmatprep.subr.bf16.mxu0 %v8016_v48  ;;  %v8085_v48 = vld [vmem:[#allocation7 + $0x38c] ss:$16 sps:$4 sm:$0xff]  }
 0x2fb   :  { %6008 = vmatpush1.bf16.msra.mxu1 %v8017_v23  ;;  %v8122_v23 = vld [vmem:[#allocation7 + $0x560] ss:$16 sps:$4 sm:$0xff]  }
 0x2fc   :  { %5879 = vmatpush1.bf16.msra.mxu0 %v8014_v49  ;;  %6009 = vmatprep.subr.bf16.mxu1 %v8025_v26  ;;  %v8130_v49 = vld [vmem:[#allocation7 + $0x584] ss:$16 sps:$4 sm:$0xff]   ;;  %v8083_v26 = vld [vmem:[#allocation7 + $0x388] ss:$16 sps:$4 sm:$0xff]  }
 0x2fd   :  { %5880 = vmatprep.subr.bf16.mxu0 %v8022_v50  ;;  %v8091_v50 = vld [vmem:[#allocation7 + $0x3ac] ss:$16 sps:$4 sm:$0xff]  }
 0x2ff   :  { %6010 = vmatpush1.bf16.msra.mxu1 %v8023_v52  ;;  %v8128_v52 = vld [vmem:[#allocation7 + $0x580] ss:$16 sps:$4 sm:$0xff]  }
 0x300   :  { %5881 = vmatpush1.bf16.msra.mxu0 %v8020_v55  ;;  %6011 = vmatprep.subr.bf16.mxu1 %v8031_v56  ;;  %v8136_v55 = vld [vmem:[#allocation7 + $0x5a4] ss:$16 sps:$4 sm:$0xff]   ;;  %v8089_v56 = vld [vmem:[#allocation7 + $0x3a8] ss:$16 sps:$4 sm:$0xff]  }
 0x301   :  { %5882 = vmatprep.subr.bf16.mxu0 %v8028_v57  ;;  %v8097_v57 = vld [vmem:[#allocation7 + $0x3cc] ss:$16 sps:$4 sm:$0xff]  }
 0x303   :  { %6012 = vmatpush1.bf16.msra.mxu1 %v8029_v58  ;;  %v8134_v58 = vld [vmem:[#allocation7 + $0x5a0] ss:$16 sps:$4 sm:$0xff]  }
 0x304   :  { %5883 = vmatpush1.bf16.msra.mxu0 %v8026_v37  ;;  %6024 = vmatprep.subr.bf16.mxu1 %v8034_v60  ;;  %v8142_v37 = vld [vmem:[#allocation7 + $0x5c4] ss:$16 sps:$4 sm:$0xff]   ;;  %v8095_v60 = vld [vmem:[#allocation7 + $0x3c8] ss:$16 sps:$4 sm:$0xff]  }
 0x305   :  { %5895 = vmatprep.subr.bf16.mxu0 %v8058_v10  ;;  %v8103_v10 = vld [vmem:[#allocation7 + $0x3ec] ss:$16 sps:$4 sm:$0xff]  }
 0x306   :  { %6014 = vmatmul.mubr.bf16.vlgmr.msra.gmra.mrb[12].mxu1 %v8940_v53  ;;  %v8076_v53 = vld [vmem:[#allocation7 + $0x464] ss:$16 sps:$4 sm:$0xff]  }
 0x307   :  { %5885 = vmatmul.mubr.bf16.vlgmr.msra.gmra.mrb[8].mxu0 %v8961_v21  ;;  %6025 = vmatpush1.bf16.msra.mxu1 %v8032_v63  ;;  %v8140_v63 = vld [vmem:[#allocation7 + $0x5c0] ss:$16 sps:$4 sm:$0xff]  }
 0x308   :  { %6056 = vmatprep.mubr.bf16.mxu1 %v8964_v51  ;;  %6026 = vmatprep.subr.bf16.mxu1 %v8037_v34  ;;  %v8074_v51 = vld [vmem:[#allocation7 + $0x460] ss:$16 sps:$4 sm:$0xff]   ;;  %v8148_v34 = vld [vmem:[#allocation7 + $0x5e4] ss:$16 sps:$4 sm:$0xff]  }
 0x309   :  { %5896 = vmatpush1.bf16.msra.mxu0 %v8056_v59  ;;  %v8101_v59 = vld [vmem:[#allocation7 + $0x3e8] ss:$16 sps:$4 sm:$0xff]  }
 0x30a   :  { %5897 = vmatprep.subr.bf16.mxu0 %v8064_v0  ;;  %v8109_v0 = vld [vmem:[#allocation7 + $0x40c] ss:$16 sps:$4 sm:$0xff]  }
 0x30b   :  { %6027 = vmatpush1.bf16.msra.mxu1 %v8035_v1  ;;  %v8146_v1 = vld [vmem:[#allocation7 + $0x5e0] ss:$16 sps:$4 sm:$0xff]  }
 0x30c   :  { %6028 = vmatprep.subr.bf16.mxu1 %v8040_v4  ;;  %v8154_v4 = vld [vmem:[#allocation7 + $0x604] ss:$16 sps:$4 sm:$0xff]  }
 0x30d   :  { %5898 = vmatpush1.bf16.msra.mxu0 %v8062_v5  ;;  %v8107_v5 = vld [vmem:[#allocation7 + $0x408] ss:$16 sps:$4 sm:$0xff]  }
 0x30e   :  { %5899 = vmatprep.subr.bf16.mxu0 %v8070_v6  ;;  %v8115_v6 = vld [vmem:[#allocation7 + $0x42c] ss:$16 sps:$4 sm:$0xff]  }
 0x30f   :  { %6029 = vmatpush1.bf16.msra.mxu1 %v8038_v62  ;;  %v8113_v62 = vld [vmem:[#allocation7 + $0x428] ss:$16 sps:$4 sm:$0xff]  }
 0x310   :  { %6030 = vmatprep.subr.bf16.mxu1 %v8043_v7  ;;  %v8121_v7 = vld [vmem:[#allocation7 + $0x44c] ss:$16 sps:$4 sm:$0xff]  }
 0x311   :  { %5900 = vmatpush1.bf16.msra.mxu0 %v8068_v9  ;;  %v8119_v9 = vld [vmem:[#allocation7 + $0x448] ss:$16 sps:$4 sm:$0xff]  }
 0x312   :  { %5901 = vmatprep.subr.bf16.mxu0 %v8076_v53  ;;  %v8127_v53 = vld [vmem:[#allocation7 + $0x46c] ss:$16 sps:$4 sm:$0xff]  }
 0x313   :  { %6031 = vmatpush1.bf16.msra.mxu1 %v8041_v12  ;;  %v8125_v12 = vld [vmem:[#allocation7 + $0x468] ss:$16 sps:$4 sm:$0xff]  }
 0x314   :  { %6032 = vmatprep.subr.bf16.mxu1 %v8046_v13  ;;  %v8133_v13 = vld [vmem:[#allocation7 + $0x48c] ss:$16 sps:$4 sm:$0xff]  }
 0x315   :  { %5902 = vmatpush1.bf16.msra.mxu0 %v8074_v51  ;;  %v8131_v51 = vld [vmem:[#allocation7 + $0x488] ss:$16 sps:$4 sm:$0xff]  }
 0x316   :  { %5903 = vmatprep.subr.bf16.mxu0 %v8082_v16  ;;  %v4157_v16 = vsub.s32 4, %v8921_v29 }
 0x317   :  { %6033 = vmatpush1.bf16.msra.mxu1 %v8044_v19  ;;  %v8139_v19 = vld [vmem:[#allocation7 + $0x4ac] ss:$16 sps:$4 sm:$0xff]  }
 0x318   :  { %6034 = vmatprep.subr.bf16.mxu1 %v8049_v22  ;;  %v8976_v22 = vld [vmem:[#allocation6] sm:$0xff] }
 0x319   :  { %5904 = vmatpush1.bf16.msra.mxu0 %v8080_v24  ;;  %v4158_v24 = vrot.slane %v8976_v22, %v4157_v16  ;;  %v8197_v16 = vld [vmem:[#allocation7 + $0x5e8] ss:$16 sps:$4 sm:$0xff]  }
 0x31a   :  { %5905 = vmatprep.subr.bf16.mxu0 %v8088_v54  ;;  %v8137_v54 = vld [vmem:[#allocation7 + $0x4a8] ss:$16 sps:$4 sm:$0xff]  }
 0x31b   :  { %6035 = vmatpush1.bf16.msra.mxu1 %v8047_v25 }
 0x31c   :  { %6036 = vmatprep.subr.bf16.mxu1 %v8052_v27  ;;  %v8145_v27 = vld [vmem:[#allocation7 + $0x4cc] ss:$16 sps:$4 sm:$0xff]  }
 0x31d   :  { %5906 = vmatpush1.bf16.msra.mxu0 %v8086_v28 }
 0x31e   :  { %5907 = vmatprep.subr.bf16.mxu0 %v8094_v30 }
 0x31f   :  { %6037 = vmatpush1.bf16.msra.mxu1 %v8050_v31 }
 0x320   :  { %6038 = vmatprep.subr.bf16.mxu1 %v8055_v32  ;;  %v8143_v32 = vld [vmem:[#allocation7 + $0x4c8] ss:$16 sps:$4 sm:$0xff]  }
 0x321   :  { %5908 = vmatpush1.bf16.msra.mxu0 %v8092_v33 }
 0x322   :  { %5909 = vmatprep.subr.bf16.mxu0 %v8100_v35 }
 0x323   :  { %6039 = vmatpush1.bf16.msra.mxu1 %v8053_v36  ;;  %v8151_v36 = vld [vmem:[#allocation7 + $0x4ec] ss:$16 sps:$4 sm:$0xff]  }
 0x324   :  { %6040 = vmatprep.subr.bf16.mxu1 %v8061_v38 }
 0x325   :  { %5910 = vmatpush1.bf16.msra.mxu0 %v8098_v39 }
 0x326   :  { %5911 = vmatprep.subr.bf16.mxu0 %v8106_v40 }
 0x327   :  { %6041 = vmatpush1.bf16.msra.mxu1 %v8059_v41 }
 0x328   :  { %6042 = vmatprep.subr.bf16.mxu1 %v8067_v14 }
 0x329   :  { %5912 = vmatpush1.bf16.msra.mxu0 %v8104_v2 }
 0x32a   :  { %5913 = vmatprep.subr.bf16.mxu0 %v8112_v42  ;;  %v8149_v42 = vld [vmem:[#allocation7 + $0x4e8] ss:$16 sps:$4 sm:$0xff]  }
 0x32b   :  { %6043 = vmatpush1.bf16.msra.mxu1 %v8065_v43 }
 0x32c   :  { %6044 = vmatprep.subr.bf16.mxu1 %v8073_v17  ;;  %v8157_v17 = vld [vmem:[#allocation7 + $0x50c] ss:$16 sps:$4 sm:$0xff]  }
 0x32d   :  { %5914 = vmatpush1.bf16.msra.mxu0 %v8110_v15 }
 0x32e   :  { %5915 = vmatprep.subr.bf16.mxu0 %v8118_v44 }
 0x32f   :  { %6045 = vmatpush1.bf16.msra.mxu1 %v8071_v18 }
 0x330   :  { %6046 = vmatprep.subr.bf16.mxu1 %v8079_v45 }
 0x331   :  { %5916 = vmatpush1.bf16.msra.mxu0 %v8116_v20 }
 0x332   :  { %5917 = vmatprep.subr.bf16.mxu0 %v8124_v46 }
 0x333   :  { %6047 = vmatpush1.bf16.msra.mxu1 %v8077_v47  ;;  %v8152_v47 = vld [vmem:[#allocation7 + $0x600] ss:$16 sps:$4 sm:$0xff]  }
 0x334   :  { %6048 = vmatprep.subr.bf16.mxu1 %v8085_v48  ;;  %v8155_v48 = vld [vmem:[#allocation7 + $0x508] ss:$16 sps:$4 sm:$0xff]  }
 0x335   :  { %5918 = vmatpush1.bf16.msra.mxu0 %v8122_v23  ;;  %v8160_v23 = vld [vmem:[#allocation7 + $0x624] ss:$16 sps:$4 sm:$0xff]  }
 0x336   :  { %5919 = vmatprep.subr.bf16.mxu0 %v8130_v49  ;;  %v8163_v49 = vld [vmem:[#allocation7 + $0x52c] ss:$16 sps:$4 sm:$0xff]  }
 0x337   :  { %6049 = vmatpush1.bf16.msra.mxu1 %v8083_v26  ;;  %v8158_v26 = vld [vmem:[#allocation7 + $0x620] ss:$16 sps:$4 sm:$0xff]  }
 0x338   :  { %6050 = vmatprep.subr.bf16.mxu1 %v8091_v50  ;;  %v8161_v50 = vld [vmem:[#allocation7 + $0x528] ss:$16 sps:$4 sm:$0xff]  }
 0x339   :  { %5920 = vmatpush1.bf16.msra.mxu0 %v8128_v52  ;;  %v8166_v52 = vld [vmem:[#allocation7 + $0x644] ss:$16 sps:$4 sm:$0xff]  }
 0x33a   :  { %5921 = vmatprep.subr.bf16.mxu0 %v8136_v55  ;;  %v8169_v55 = vld [vmem:[#allocation7 + $0x54c] ss:$16 sps:$4 sm:$0xff]  }
 0x33b   :  { %6051 = vmatpush1.bf16.msra.mxu1 %v8089_v56  ;;  %v8164_v56 = vld [vmem:[#allocation7 + $0x640] ss:$16 sps:$4 sm:$0xff]  }
 0x33c   :  { %6052 = vmatprep.subr.bf16.mxu1 %v8097_v57  ;;  %v8167_v57 = vld [vmem:[#allocation7 + $0x548] ss:$16 sps:$4 sm:$0xff]  }
 0x33d   :  { %5922 = vmatpush1.bf16.msra.mxu0 %v8134_v58  ;;  %v8172_v58 = vld [vmem:[#allocation7 + $0x664] ss:$16 sps:$4 sm:$0xff]  }
 0x33e   :  { %5923 = vmatprep.subr.bf16.mxu0 %v8142_v37  ;;  %v8175_v37 = vld [vmem:[#allocation7 + $0x56c] ss:$16 sps:$4 sm:$0xff]  }
 0x33f   :  { %6053 = vmatpush1.bf16.msra.mxu1 %v8095_v60  ;;  %v8170_v60 = vld [vmem:[#allocation7 + $0x660] ss:$16 sps:$4 sm:$0xff]  }
 0x340   :  { %6054 = vmatprep.subr.bf16.mxu1 %v8103_v10  ;;  %v8173_v10 = vld [vmem:[#allocation7 + $0x568] ss:$16 sps:$4 sm:$0xff]  }
 0x341   :  { %5924 = vmatpush1.bf16.msra.mxu0 %v8140_v63  ;;  %v8178_v63 = vld [vmem:[#allocation7 + $0x684] ss:$16 sps:$4 sm:$0xff]  }
 0x342   :  { %5925 = vmatprep.subr.bf16.mxu0 %v8148_v34  ;;  %v8181_v34 = vld [vmem:[#allocation7 + $0x58c] ss:$16 sps:$4 sm:$0xff]  }
 0x343   :  { %6055 = vmatpush1.bf16.msra.mxu1 %v8101_v59  ;;  %v8176_v59 = vld [vmem:[#allocation7 + $0x680] ss:$16 sps:$4 sm:$0xff]  }
 0x344   :  { %6067 = vmatprep.subr.bf16.mxu1 %v8109_v0  ;;  %v8179_v0 = vld [vmem:[#allocation7 + $0x588] ss:$16 sps:$4 sm:$0xff]  }
 0x345   :  { %5926 = vmatpush1.bf16.msra.mxu0 %v8146_v1  ;;  %v8184_v1 = vld [vmem:[#allocation7 + $0x6a4] ss:$16 sps:$4 sm:$0xff]  }
 0x346   :  { %6057 = vmatmul.mubr.bf16.vlgmr.msra.gmra.mrb[12].mxu1 %v8961_v21  ;;  %5938 = vmatprep.subr.bf16.mxu0 %v8154_v4  ;;  %v4161_v21 = vsub.s32 5, %v8921_v29  ;;  %v8187_v4 = vld [vmem:[#allocation7 + $0x5ac] ss:$16 sps:$4 sm:$0xff]  }
 0x347   :  { %6068 = vmatpush1.bf16.msra.mxu1 %v8107_v5  ;;  %v8182_v5 = vld [vmem:[#allocation7 + $0x6a0] ss:$16 sps:$4 sm:$0xff]  }
 0x348   :  { %6069 = vmatprep.subr.bf16.mxu1 %v8115_v6  ;;  %v4162_v25 = vrot.slane %v8976_v22, %v4161_v21  ;;  %v8185_v6 = vld [vmem:[#allocation7 + $0x5a8] ss:$16 sps:$4 sm:$0xff]   ;;  %v8202_v21 = vld [vmem:[#allocation7 + $0x704] ss:$16 sps:$4 sm:$0xff]  }
 0x34b   :  { %6070 = vmatpush1.bf16.msra.mxu1 %v8113_v62  ;;  %v8190_v62 = vld [vmem:[#allocation7 + $0x6c4] ss:$16 sps:$4 sm:$0xff]  }
 0x34c   :  { %6071 = vmatprep.subr.bf16.mxu1 %v8121_v7  ;;  %v8193_v7 = vld [vmem:[#allocation7 + $0x5cc] ss:$16 sps:$4 sm:$0xff]  }
 0x34f   :  { %6072 = vmatpush1.bf16.msra.mxu1 %v8119_v9  ;;  %v8188_v9 = vld [vmem:[#allocation7 + $0x6c0] ss:$16 sps:$4 sm:$0xff]  }
 0x350   :  { %6073 = vmatprep.subr.bf16.mxu1 %v8127_v53  ;;  %v8191_v53 = vld [vmem:[#allocation7 + $0x5c8] ss:$16 sps:$4 sm:$0xff]  }
 0x353   :  { %6074 = vmatpush1.bf16.msra.mxu1 %v8125_v12  ;;  %v8196_v12 = vld [vmem:[#allocation7 + $0x6e4] ss:$16 sps:$4 sm:$0xff]  }
 0x354   :  { %6075 = vmatprep.subr.bf16.mxu1 %v8133_v13  ;;  %v8199_v13 = vld [vmem:[#allocation7 + $0x5ec] ss:$16 sps:$4 sm:$0xff]  }
 0x357   :  { %6076 = vmatpush1.bf16.msra.mxu1 %v8131_v51  ;;  %v8194_v51 = vld [vmem:[#allocation7 + $0x6e0] ss:$16 sps:$4 sm:$0xff]  }
 0x358   :  { %6077 = vmatprep.subr.bf16.mxu1 %v8139_v19  ;;  %v8205_v19 = vld [vmem:[#allocation7 + $0x60c] ss:$16 sps:$4 sm:$0xff]  }
 0x35a   :  { %v3956_v28 = vpop.f32.mrb[0].mxu0 }
 0x35b   :  { %v4183_v30 = vadd.f32 %v4158_v24, %v3956_v28  ;;  %v3958_v31 = vpop.f32.mrb[1].mxu0  ;;  %6078 = vmatpush1.bf16.msra.mxu1 %v8137_v54  ;;  %v8203_v54 = vld [vmem:[#allocation7 + $0x608] ss:$16 sps:$4 sm:$0xff]   ;;  %v8206_v28 = vld [vmem:[#allocation7 + $0x720] ss:$16 sps:$4 sm:$0xff]  }
 0x35c   :  { %v4184_v33 = vadd.f32 %v4162_v25, %v3958_v31  ;;  %v3960_v35 = vpop.f32.mrb[2].mxu0  ;;  %6079 = vmatprep.subr.bf16.mxu1 %v8145_v27  ;;  %v8211_v27 = vld [vmem:[#allocation7 + $0x62c] ss:$16 sps:$4 sm:$0xff]   ;;  %v8214_v31 = vld [vmem:[#allocation7 + $0x744] ss:$16 sps:$4 sm:$0xff]  }
 0x35d   :  { %v4215_v38 = vmul.f32 0.2, %v4183_v30  ;;  %v4191_v39 = vadd.f32 %v4158_v24, %v3960_v35  ;;  %v3962_v40 = vpop.f32.mrb[3].mxu0  ;;  %vm4199_vm8 = vcmp.gt.f32.partialorder %v4183_v30, 0.0  ;;  %v8200_v24 = vld [vmem:[#allocation7 + $0x700] ss:$16 sps:$4 sm:$0xff]  }
 0x35e   :  { %v4216_v41 = vmul.f32 0.2, %v4184_v33  ;;  %v4192_v14 = vadd.f32 %v4162_v25, %v3962_v40  ;;  %vm4200_vm9 = vcmp.gt.f32.partialorder %v4184_v33, 0.0  ;;  %v8208_v25 = vld [vmem:[#allocation7 + $0x724] ss:$16 sps:$4 sm:$0xff]  }
 0x35f   :  { %vm4207_vm10 = vcmp.gt.f32.partialorder %v4191_v39, 0.0  ;;  %v4223_v2 = vmul.f32 0.2, %v4191_v39  ;;  %6080 = vmatpush1.bf16.msra.mxu1 %v8143_v32  ;;  %v4231_v15 = vsel %vm4199_vm8, %v4183_v30, %v4215_v38  ;;  %v8209_v30 = vld [vmem:[#allocation7 + $0x628] ss:$16 sps:$4 sm:$0xff]  }
 0x360   :  { %vm4208_vm11 = vcmp.gt.f32.partialorder %v4192_v14, 0.0  ;;  %v4224_v43 = vmul.f32 0.2, %v4192_v14  ;;  %6081 = vmatprep.subr.bf16.mxu1 %v8151_v36  ;;  %v4232_v45 = vsel %vm4200_vm9, %v4184_v33, %v4216_v41  ;;  %v8217_v32 = vld [vmem:[#allocation7 + $0x64c] ss:$16 sps:$4 sm:$0xff]  }
 0x361   :  { %v4239_v44 = vsel %vm4207_vm10, %v4191_v39, %v4223_v2  ;;  %v8212_v33 = vld [vmem:[#allocation7 + $0x740] ss:$16 sps:$4 sm:$0xff]   ;;  %v8215_v35 = vld [vmem:[#allocation7 + $0x648] ss:$16 sps:$4 sm:$0xff]   ;;  %v8220_v36 = vld [vmem:[#allocation7 + $0x764] ss:$16 sps:$4 sm:$0xff]  }
 0x362   :  { %v8980_v18 = vpack.c.bf16 %v4239_v44, %v4231_v15  ;;  %v4240_v20 = vsel %vm4208_vm11, %v4192_v14, %v4224_v43  ;;  %v8223_v38 = vld [vmem:[#allocation7 + $0x66c] ss:$16 sps:$4 sm:$0xff]   ;;  %v8218_v39 = vld [vmem:[#allocation7 + $0x760] ss:$16 sps:$4 sm:$0xff]   ;;  %v8221_v40 = vld [vmem:[#allocation7 + $0x668] ss:$16 sps:$4 sm:$0xff]  }
 0x363   :  { %6082 = vmatpush1.bf16.msra.mxu1 %v8149_v42  ;;  %v4248_v46 = vpack.c.bf16 %v4240_v20, %v4232_v45  ;;  %v8226_v41 = vld [vmem:[#allocation7 + $0x784] ss:$16 sps:$4 sm:$0xff]   ;;  %v8229_v14 = vld [vmem:[#allocation7 + $0x68c] ss:$16 sps:$4 sm:$0xff]   ;;  %v4165_v2 = vsub.s32 6, %v8921_v29 }
 0x364   :  { %6083 = vmatprep.subr.bf16.mxu1 %v8157_v17  ;;  %v8224_v42 = vld [vmem:[#allocation7 + $0x780] ss:$16 sps:$4 sm:$0xff]   ;;  %v8227_v43 = vld [vmem:[#allocation7 + $0x688] ss:$16 sps:$4 sm:$0xff]   ;;  %v4169_v17 = vsub.s32 7, %v8921_v29 }
 0x365   :  { %5927 = vmatprep.mubr.bf16.mxu0 %v4248_v46  ;;  %6099 = vmatprep.mubr.bf16.mxu1 %v4248_v46  ;;  %v8232_v15 = vld [vmem:[#allocation7 + $0x7a4] ss:$16 sps:$4 sm:$0xff]   ;;  %v8235_v44 = vld [vmem:[#allocation7 + $0x6ac] ss:$16 sps:$4 sm:$0xff]   ;;  %v8230_v45 = vld [vmem:[#allocation7 + $0x7a0] ss:$16 sps:$4 sm:$0xff]  }
 0x366   :  { %5928 = vmatmul.mubr.bf16.vlgmr.msra.gmra.mrb[8].mxu0 %v8980_v18  ;;  %v4170_v20 = vrot.slane %v8976_v22, %v4169_v17  ;;  %v8233_v46 = vld [vmem:[#allocation7 + $0x6a8] ss:$16 sps:$4 sm:$0xff]  }
 0x367   :  { %5939 = vmatpush1.bf16.msra.mxu0 %v8152_v47  ;;  %6084 = vmatpush1.bf16.msra.mxu1 %v8155_v48  ;;  %v8238_v47 = vld [vmem:[#allocation7 + $0x7c4] ss:$16 sps:$4 sm:$0xff]   ;;  %v8241_v48 = vld [vmem:[#allocation7 + $0x6cc] ss:$16 sps:$4 sm:$0xff]   ;;  %v8266_v17 = vld [vmem:[#allocation7 + $0x7c8] ss:$16 sps:$4 sm:$0xff]  }
 0x368   :  { %5940 = vmatprep.subr.bf16.mxu0 %v8160_v23  ;;  %6085 = vmatprep.subr.bf16.mxu1 %v8163_v49 }
 0x36b   :  { %5941 = vmatpush1.bf16.msra.mxu0 %v8158_v26  ;;  %6086 = vmatpush1.bf16.msra.mxu1 %v8161_v50  ;;  %v8236_v50 = vld [vmem:[#allocation7 + $0x7c0] ss:$16 sps:$4 sm:$0xff]  }
 0x36c   :  { %5942 = vmatprep.subr.bf16.mxu0 %v8166_v52  ;;  %6087 = vmatprep.subr.bf16.mxu1 %v8169_v55 }
 0x36f   :  { %5943 = vmatpush1.bf16.msra.mxu0 %v8164_v56  ;;  %6088 = vmatpush1.bf16.msra.mxu1 %v8167_v57  ;;  %v8239_v56 = vld [vmem:[#allocation7 + $0x6c8] ss:$16 sps:$4 sm:$0xff]   ;;  %v8244_v57 = vld [vmem:[#allocation7 + $0x7e4] ss:$16 sps:$4 sm:$0xff]  }
 0x370   :  { %5944 = vmatprep.subr.bf16.mxu0 %v8172_v58  ;;  %6089 = vmatprep.subr.bf16.mxu1 %v8175_v37 }
 0x373   :  { %5945 = vmatpush1.bf16.msra.mxu0 %v8170_v60  ;;  %6090 = vmatpush1.bf16.msra.mxu1 %v8173_v10 }
 0x374   :  { %5946 = vmatprep.subr.bf16.mxu0 %v8178_v63  ;;  %6091 = vmatprep.subr.bf16.mxu1 %v8181_v34 }
 0x377   :  { %5947 = vmatpush1.bf16.msra.mxu0 %v8176_v59  ;;  %6092 = vmatpush1.bf16.msra.mxu1 %v8179_v0  ;;  %v8242_v59 = vld [vmem:[#allocation7 + $0x7e0] ss:$16 sps:$4 sm:$0xff]  }
 0x378   :  { %5948 = vmatprep.subr.bf16.mxu0 %v8184_v1  ;;  %6093 = vmatprep.subr.bf16.mxu1 %v8187_v4  ;;  %v8245_v1 = vld [vmem:[#allocation7 + $0x6e8] ss:$16 sps:$4 sm:$0xff]  }
 0x37b   :  { %5949 = vmatpush1.bf16.msra.mxu0 %v8182_v5  ;;  %6094 = vmatpush1.bf16.msra.mxu1 %v8185_v6 }
 0x37c   :  { %5950 = vmatprep.subr.bf16.mxu0 %v8190_v62  ;;  %6095 = vmatprep.subr.bf16.mxu1 %v8193_v7 }
 0x37f   :  { %5951 = vmatpush1.bf16.msra.mxu0 %v8188_v9  ;;  %6096 = vmatpush1.bf16.msra.mxu1 %v8191_v53  ;;  %v8250_v9 = vld [vmem:[#allocation7 + $0x70c] ss:$16 sps:$4 sm:$0xff]   ;;  %v8274_v53 = vld [vmem:[#allocation10 + $0x4] ss:$8 sps:$4 sm:$0xff]  }
 0x380   :  { %5952 = vmatprep.subr.bf16.mxu0 %v8196_v12  ;;  %6097 = vmatprep.subr.bf16.mxu1 %v8199_v13  ;;  %v8248_v13 = vld [vmem:[#allocation7 + $0x708] ss:$16 sps:$4 sm:$0xff]  }
 0x383   :  { %5953 = vmatpush1.bf16.msra.mxu0 %v8194_v51  ;;  %6098 = vmatpush1.bf16.msra.mxu1 %v8197_v16  ;;  %v8272_v51 = vld [vmem:[#allocation10] ss:$8 sps:$4 sm:$0xff]  }
 0x384   :  { %5954 = vmatprep.subr.bf16.mxu0 %v8202_v21  ;;  %6110 = vmatprep.subr.bf16.mxu1 %v8205_v19  ;;  %v8253_v16 = vld [vmem:[#allocation7 + $0x72c] ss:$16 sps:$4 sm:$0xff]   ;;  %v8277_v21 = vld [vmem:[#allocation10 + $0x14] ss:$8 sps:$4 sm:$0xff]  }
 0x385   :  { %v8251_v19 = vld [vmem:[#allocation7 + $0x728] ss:$16 sps:$4 sm:$0xff]  }
 0x386   :  { %6100 = vmatmul.mubr.bf16.vlgmr.msra.gmra.mrb[12].mxu1 %v8980_v18  ;;  %v4166_v18 = vrot.slane %v8976_v22, %v4165_v2  ;;  %v8247_v22 = vld [vmem:[#allocation7 + $0x6ec] ss:$16 sps:$4 sm:$0xff]  }
 0x387   :  { %5955 = vmatpush1.bf16.msra.mxu0 %v8200_v24  ;;  %6111 = vmatpush1.bf16.msra.mxu1 %v8203_v54  ;;  %v8275_v24 = vld [vmem:[#allocation10 + $0x10] ss:$8 sps:$4 sm:$0xff]  }
 0x388   :  { %5956 = vmatprep.subr.bf16.mxu0 %v8208_v25  ;;  %6112 = vmatprep.subr.bf16.mxu1 %v8211_v27  ;;  %v8256_v54 = vld [vmem:[#allocation7 + $0x74c] ss:$16 sps:$4 sm:$0xff]   ;;  %v8280_v25 = vld [vmem:[#allocation10 + $0x24] ss:$8 sps:$4 sm:$0xff]  }
 0x389   :  { %v8254_v27 = vld [vmem:[#allocation7 + $0x748] ss:$16 sps:$4 sm:$0xff]   ;;  %v8287_v2 = vld [vmem:[#allocation10 + $0x50] ss:$8 sps:$4 sm:$0xff]  }
 0x38b   :  { %5957 = vmatpush1.bf16.msra.mxu0 %v8206_v28  ;;  %6113 = vmatpush1.bf16.msra.mxu1 %v8209_v30  ;;  %v8278_v28 = vld [vmem:[#allocation10 + $0x20] ss:$8 sps:$4 sm:$0xff]  }
 0x38c   :  { %5958 = vmatprep.subr.bf16.mxu0 %v8214_v31  ;;  %6114 = vmatprep.subr.bf16.mxu1 %v8217_v32  ;;  %v8259_v30 = vld [vmem:[#allocation7 + $0x76c] ss:$16 sps:$4 sm:$0xff]   ;;  %v8283_v31 = vld [vmem:[#allocation10 + $0x34] ss:$8 sps:$4 sm:$0xff]  }
 0x38d   :  { %v8257_v32 = vld [vmem:[#allocation7 + $0x768] ss:$16 sps:$4 sm:$0xff]  }
 0x38f   :  { %5959 = vmatpush1.bf16.msra.mxu0 %v8212_v33  ;;  %6115 = vmatpush1.bf16.msra.mxu1 %v8215_v35  ;;  %v8281_v33 = vld [vmem:[#allocation10 + $0x30] ss:$8 sps:$4 sm:$0xff]  }
 0x390   :  { %5960 = vmatprep.subr.bf16.mxu0 %v8220_v36  ;;  %6116 = vmatprep.subr.bf16.mxu1 %v8223_v38  ;;  %v8262_v35 = vld [vmem:[#allocation7 + $0x78c] ss:$16 sps:$4 sm:$0xff]   ;;  %v8286_v36 = vld [vmem:[#allocation10 + $0x44] ss:$8 sps:$4 sm:$0xff]  }
 0x391   :  { %v8260_v38 = vld [vmem:[#allocation7 + $0x788] ss:$16 sps:$4 sm:$0xff]  }
 0x393   :  { %5961 = vmatpush1.bf16.msra.mxu0 %v8218_v39  ;;  %6117 = vmatpush1.bf16.msra.mxu1 %v8221_v40  ;;  %v8284_v39 = vld [vmem:[#allocation10 + $0x40] ss:$8 sps:$4 sm:$0xff]  }
 0x394   :  { %5962 = vmatprep.subr.bf16.mxu0 %v8226_v41  ;;  %6118 = vmatprep.subr.bf16.mxu1 %v8229_v14  ;;  %v8265_v40 = vld [vmem:[#allocation7 + $0x7ac] ss:$16 sps:$4 sm:$0xff]   ;;  %v8289_v41 = vld [vmem:[#allocation10 + $0x54] ss:$8 sps:$4 sm:$0xff]  }
 0x395   :  { %v8263_v14 = vld [vmem:[#allocation7 + $0x7a8] ss:$16 sps:$4 sm:$0xff]  }
 0x397   :  { %5963 = vmatpush1.bf16.msra.mxu0 %v8224_v42  ;;  %6119 = vmatpush1.bf16.msra.mxu1 %v8227_v43  ;;  %v8268_v42 = vld [vmem:[#allocation7 + $0x7cc] ss:$16 sps:$4 sm:$0xff]   ;;  %v8292_v43 = vld [vmem:[#allocation10 + $0x64] ss:$8 sps:$4 sm:$0xff]  }
 0x398   :  { %5964 = vmatprep.subr.bf16.mxu0 %v8232_v15  ;;  %6120 = vmatprep.subr.bf16.mxu1 %v8235_v44  ;;  %v8290_v15 = vld [vmem:[#allocation10 + $0x60] ss:$8 sps:$4 sm:$0xff]  }
 0x399   :  { %v4128_v23 = vpop.f32.mrb[8].mxu1  ;;  %v8271_v44 = vld [vmem:[#allocation7 + $0x7ec] ss:$16 sps:$4 sm:$0xff]  }
 0x39a   :  { %v4185_v49 = vadd.f32 %v4166_v18, %v4128_v23  ;;  %v4130_v26 = vpop.f32.mrb[9].mxu1  ;;  %v8299_v23 = vld [vmem:[#allocation10 + $0x90] ss:$8 sps:$4 sm:$0xff]  }
 0x39b   :  { %v4186_v52 = vadd.f32 %v4170_v20, %v4130_v26  ;;  %5965 = vmatpush1.bf16.msra.mxu0 %v8230_v45  ;;  %v4132_v55 = vpop.f32.mrb[10].mxu1  ;;  %6121 = vmatpush1.bf16.msra.mxu1 %v8233_v46  ;;  %v8269_v45 = vld [vmem:[#allocation7 + $0x7e8] ss:$16 sps:$4 sm:$0xff]   ;;  %v8302_v26 = vld [vmem:[#allocation10 + $0xa0] ss:$8 sps:$4 sm:$0xff]  }
 0x39c   :  { %v4217_v58 = vmul.f32 0.2, %v4185_v49  ;;  %v4193_v37 = vadd.f32 %v4166_v18, %v4132_v55  ;;  %v4134_v60 = vpop.f32.mrb[11].mxu1  ;;  %5966 = vmatprep.subr.bf16.mxu0 %v8238_v47  ;;  %6122 = vmatprep.subr.bf16.mxu1 %v8241_v48  ;;  %vm4201_vm12 = vcmp.gt.f32.partialorder %v4185_v49, 0.0  ;;  %v8295_v18 = vld [vmem:[#allocation10 + $0x74] ss:$8 sps:$4 sm:$0xff]  }
 0x39d   :  { %v4218_v10 = vmul.f32 0.2, %v4186_v52  ;;  %v4194_v63 = vadd.f32 %v4170_v20, %v4134_v60  ;;  %vm4202_vm13 = vcmp.gt.f32.partialorder %v4186_v52, 0.0  ;;  %v8293_v20 = vld [vmem:[#allocation10 + $0x70] ss:$8 sps:$4 sm:$0xff]  }
 0x39e   :  { %vm4209_vm14 = vcmp.gt.f32.partialorder %v4193_v37, 0.0  ;;  %v4225_v34 = vmul.f32 0.2, %v4193_v37  ;;  %v4233_v4 = vsel %vm4201_vm12, %v4185_v49, %v4217_v58  ;;  %v8298_v46 = vld [vmem:[#allocation10 + $0x84] ss:$8 sps:$4 sm:$0xff]  }
 0x39f   :  { %vm4210_vm15 = vcmp.gt.f32.partialorder %v4194_v63, 0.0  ;;  %v4226_v0 = vmul.f32 0.2, %v4194_v63  ;;  %5967 = vmatpush1.bf16.msra.mxu0 %v8236_v50  ;;  %6123 = vmatpush1.bf16.msra.mxu1 %v8239_v56  ;;  %v4234_v62 = vsel %vm4202_vm13, %v4186_v52, %v4218_v10  ;;  %v8296_v47 = vld [vmem:[#allocation10 + $0x80] ss:$8 sps:$4 sm:$0xff]  }
 0x3a0   :  { %v4241_v5 = vsel %vm4209_vm14, %v4193_v37, %v4225_v34  ;;  %5968 = vmatprep.subr.bf16.mxu0 %v8244_v57  ;;  %6124 = vmatprep.subr.bf16.mxu1 %v8247_v22  ;;  %v8301_v48 = vld [vmem:[#allocation10 + $0x94] ss:$8 sps:$4 sm:$0xff]   ;;  %v8304_v49 = vld [vmem:[#allocation10 + $0xa4] ss:$8 sps:$4 sm:$0xff]   ;;  %v8305_v52 = vld [vmem:[#allocation10 + $0xb0] ss:$8 sps:$4 sm:$0xff]  }
 0x3a1   :  { %v8988_v6 = vpack.c.bf16 %v4241_v5, %v4233_v4  ;;  %v4242_v7 = vsel %vm4210_vm15, %v4194_v63, %v4226_v0  ;;  %v8307_v50 = vld [vmem:[#allocation10 + $0xb4] ss:$8 sps:$4 sm:$0xff]   ;;  %v8310_v55 = vld [vmem:[#allocation10 + $0xc4] ss:$8 sps:$4 sm:$0xff]   ;;  %v8308_v56 = vld [vmem:[#allocation10 + $0xc0] ss:$8 sps:$4 sm:$0xff]  }
 0x3a2   :  { %v4250_v12 = vpack.c.bf16 %v4242_v7, %v4234_v62  ;;  %v8313_v57 = vld [vmem:[#allocation10 + $0xd4] ss:$8 sps:$4 sm:$0xff]   ;;  %v8311_v58 = vld [vmem:[#allocation10 + $0xd0] ss:$8 sps:$4 sm:$0xff]   ;;  %v8316_v37 = vld [vmem:[#allocation10 + $0xe4] ss:$8 sps:$4 sm:$0xff]  }
 0x3a3   :  { %5969 = vmatpush1.bf16.msra.mxu0 %v8242_v59  ;;  %6125 = vmatpush1.bf16.msra.mxu1 %v8245_v1  ;;  %v8314_v60 = vld [vmem:[#allocation10 + $0xe0] ss:$8 sps:$4 sm:$0xff]   ;;  %v8319_v22 = vld [vmem:[#allocation10 + $0xf4] ss:$8 sps:$4 sm:$0xff]   ;;  %v8317_v10 = vld [vmem:[#allocation10 + $0xf0] ss:$8 sps:$4 sm:$0xff]  }
 0x3a4   :  { %5970 = vmatprep.mubr.bf16.mxu0 %v4250_v12  ;;  %6142 = vmatprep.mubr.bf16.mxu1 %v4250_v12  ;;  %v8322_v63 = vld [vmem:[#allocation10 + $0x104] ss:$8 sps:$4 sm:$0xff]   ;;  %v8372_v4 = vld [vmem:[#allocation13 + $0x50] sm:$0xff]   ;;  %v8375_v62 = vld [vmem:[#allocation13 + $0x18] sm:$0xff]  }
 0x3a5   :  { %6126 = vmatprep.subr.bf16.mxu1 %v8250_v9  ;;  %6577 = vmatprep.subr.bf16.mxu0 %v8274_v53  ;;  %v8368_v34 = vld [vmem:[#allocation13 + $0x40] sm:$0xff]   ;;  %v8370_v0 = vld [vmem:[#allocation13 + $0x48] sm:$0xff]   ;;  %v8373_v5 = vld [vmem:[#allocation13 + $0x10] sm:$0xff]  }
 0x3a6   :  { %5971 = vmatmul.mubr.bf16.vlgmr.msra.gmra.mrb[8].mxu0 %v8988_v6  ;;  %v8369_v59 = vld [vmem:[#allocation13] sm:$0xff]   ;;  %v8371_v1 = vld [vmem:[#allocation13 + $0x8] sm:$0xff]   ;;  %v4507_v53 = vld [vmem:[#allocation9] sm:$0xf] }
 0x3a7   :  { %6127 = vmatpush1.bf16.msra.mxu1 %v8248_v13  ;;  %6578 = vmatpush1.bf16.msra.mxu0 %v8272_v51  ;;  %v8376_v7 = vld [vmem:[#allocation13 + $0x60] sm:$0xff]   ;;  %v4512_v12 = vrot.slane %v4507_v53, %v8924_v61  ;;  %v4516_v13 = vrot.slane %v4507_v53, %v8929_v3 }
 0x3a8   :  { %6128 = vmatprep.subr.bf16.mxu1 %v8253_v16  ;;  %6579 = vmatprep.subr.bf16.mxu0 %v8277_v21  ;;  %v8377_v9 = vld [vmem:[#allocation13 + $0x20] sm:$0xff]  }
 0x3ab   :  { %6129 = vmatpush1.bf16.msra.mxu1 %v8251_v19  ;;  %6580 = vmatpush1.bf16.msra.mxu0 %v8275_v24 }
 0x3ac   :  { %6130 = vmatprep.subr.bf16.mxu1 %v8256_v54  ;;  %6581 = vmatprep.subr.bf16.mxu0 %v8280_v25 }
 0x3af   :  { %6131 = vmatpush1.bf16.msra.mxu1 %v8254_v27  ;;  %6582 = vmatpush1.bf16.msra.mxu0 %v8278_v28 }
 0x3b0   :  { %6132 = vmatprep.subr.bf16.mxu1 %v8259_v30  ;;  %6583 = vmatprep.subr.bf16.mxu0 %v8283_v31 }
 0x3b3   :  { %6133 = vmatpush1.bf16.msra.mxu1 %v8257_v32  ;;  %6584 = vmatpush1.bf16.msra.mxu0 %v8281_v33 }
 0x3b4   :  { %6134 = vmatprep.subr.bf16.mxu1 %v8262_v35  ;;  %6585 = vmatprep.subr.bf16.mxu0 %v8286_v36 }
 0x3b7   :  { %6135 = vmatpush1.bf16.msra.mxu1 %v8260_v38  ;;  %6586 = vmatpush1.bf16.msra.mxu0 %v8284_v39 }
 0x3b8   :  { %6136 = vmatprep.subr.bf16.mxu1 %v8265_v40  ;;  %6587 = vmatprep.subr.bf16.mxu0 %v8289_v41  ;;  %v8320_v41 = vld [vmem:[#allocation10 + $0x100] ss:$8 sps:$4 sm:$0xff]  }
 0x3bb   :  { %6137 = vmatpush1.bf16.msra.mxu1 %v8263_v14  ;;  %6588 = vmatpush1.bf16.msra.mxu0 %v8287_v2  ;;  %v8325_v14 = vld [vmem:[#allocation10 + $0x114] ss:$8 sps:$4 sm:$0xff]   ;;  %v8323_v2 = vld [vmem:[#allocation10 + $0x110] ss:$8 sps:$4 sm:$0xff]  }
 0x3bc   :  { %6138 = vmatprep.subr.bf16.mxu1 %v8268_v42  ;;  %6589 = vmatprep.subr.bf16.mxu0 %v8292_v43  ;;  %v8328_v42 = vld [vmem:[#allocation10 + $0x124] ss:$8 sps:$4 sm:$0xff]   ;;  %v8326_v43 = vld [vmem:[#allocation10 + $0x120] ss:$8 sps:$4 sm:$0xff]  }
 0x3bf   :  { %6139 = vmatpush1.bf16.msra.mxu1 %v8266_v17  ;;  %6590 = vmatpush1.bf16.msra.mxu0 %v8290_v15  ;;  %v8331_v17 = vld [vmem:[#allocation10 + $0x134] ss:$8 sps:$4 sm:$0xff]   ;;  %v8329_v15 = vld [vmem:[#allocation10 + $0x130] ss:$8 sps:$4 sm:$0xff]  }
 0x3c0   :  { %6140 = vmatprep.subr.bf16.mxu1 %v8271_v44  ;;  %6591 = vmatprep.subr.bf16.mxu0 %v8295_v18  ;;  %v8334_v44 = vld [vmem:[#allocation10 + $0x144] ss:$8 sps:$4 sm:$0xff]   ;;  %v8332_v18 = vld [vmem:[#allocation10 + $0x140] ss:$8 sps:$4 sm:$0xff]  }
 0x3c3   :  { %6141 = vmatpush1.bf16.msra.mxu1 %v8269_v45  ;;  %6592 = vmatpush1.bf16.msra.mxu0 %v8293_v20  ;;  %v8337_v45 = vld [vmem:[#allocation10 + $0x154] ss:$8 sps:$4 sm:$0xff]   ;;  %v8335_v20 = vld [vmem:[#allocation10 + $0x150] ss:$8 sps:$4 sm:$0xff]  }
 0x3c4   :  { %6593 = vmatprep.subr.bf16.mxu0 %v8298_v46  ;;  %7733 = vmatprep.subr.bf16.mxu1 %v8368_v34  ;;  %v4520_v46 = vrot.slane %v4507_v53, %v4149_v8 }
 0x3c6   :  { %6143 = vmatmul.mubr.bf16.vlgmr.msra.gmra.mrb[12].mxu1 %v8988_v6  ;;  %v8374_v6 = vld [vmem:[#allocation13 + $0x58] sm:$0xff]  }
 0x3c7   :  { %6594 = vmatpush1.bf16.msra.mxu0 %v8296_v47  ;;  %7734 = vmatpush3.bf16.msra.mxu1 %v8369_v59  ;;  %v4524_v47 = vrot.slane %v4507_v53, %v4153_v11  ;;  %v8341_v11 = vld [vmem:[#allocation10 + $0x170] ss:$8 sps:$4 sm:$0xff]   ;;  %v8355_v53 = vld [vmem:[#allocation10 + $0x1b4] ss:$8 sps:$4 sm:$0xff]  }
 0x3c8   :  { %6595 = vmatprep.subr.bf16.mxu0 %v8301_v48  ;;  %7735 = vmatprep.subr.bf16.mxu1 %v8370_v0  ;;  %v8340_v48 = vld [vmem:[#allocation10 + $0x164] ss:$8 sps:$4 sm:$0xff]  }
 0x3cb   :  { %6596 = vmatpush1.bf16.msra.mxu0 %v8299_v23  ;;  %7736 = vmatpush3.bf16.msra.mxu1 %v8371_v1 }
 0x3cc   :  { %6597 = vmatprep.subr.bf16.mxu0 %v8304_v49  ;;  %7737 = vmatprep.subr.bf16.mxu1 %v8372_v4  ;;  %v8344_v4 = vld [vmem:[#allocation10 + $0x180] ss:$8 sps:$4 sm:$0xff]  }
 0x3cf   :  { %6598 = vmatpush1.bf16.msra.mxu0 %v8302_v26  ;;  %7738 = vmatpush3.bf16.msra.mxu1 %v8373_v5 }
 0x3d0   :  { %6599 = vmatprep.subr.bf16.mxu0 %v8307_v50  ;;  %7739 = vmatprep.subr.bf16.mxu1 %v8374_v6  ;;  %v8338_v50 = vld [vmem:[#allocation10 + $0x160] ss:$8 sps:$4 sm:$0xff]   ;;  %v8349_v6 = vld [vmem:[#allocation10 + $0x194] ss:$8 sps:$4 sm:$0xff]  }
 0x3d3   :  { %6600 = vmatpush1.bf16.msra.mxu0 %v8305_v52  ;;  %7740 = vmatpush3.bf16.msra.mxu1 %v8375_v62  ;;  %v8347_v62 = vld [vmem:[#allocation10 + $0x190] ss:$8 sps:$4 sm:$0xff]  }
 0x3d4   :  { %6601 = vmatprep.subr.bf16.mxu0 %v8310_v55  ;;  %7741 = vmatprep.subr.bf16.mxu1 %v8376_v7  ;;  %v8352_v7 = vld [vmem:[#allocation10 + $0x1a4] ss:$8 sps:$4 sm:$0xff]  }
 0x3d7   :  { %6602 = vmatpush1.bf16.msra.mxu0 %v8308_v56  ;;  %7742 = vmatpush3.bf16.msra.mxu1 %v8377_v9  ;;  %v8343_v56 = vld [vmem:[#allocation10 + $0x174] ss:$8 sps:$4 sm:$0xff]   ;;  %v8350_v9 = vld [vmem:[#allocation10 + $0x1a0] ss:$8 sps:$4 sm:$0xff]  }
 0x3d8   :  { %6603 = vmatprep.subr.bf16.mxu0 %v8313_v57 }
 0x3db   :  { %6604 = vmatpush1.bf16.msra.mxu0 %v8311_v58 }
 0x3dc   :  { %6605 = vmatprep.subr.bf16.mxu0 %v8316_v37 }
 0x3df   :  { %6606 = vmatpush1.bf16.msra.mxu0 %v8314_v60 }
 0x3e0   :  { %6607 = vmatprep.subr.bf16.mxu0 %v8319_v22 }
 0x3e3   :  { %6608 = vmatpush1.bf16.msra.mxu0 %v8317_v10  ;;  %v8346_v10 = vld [vmem:[#allocation10 + $0x184] ss:$8 sps:$4 sm:$0xff]  }
 0x3e4   :  { %6620 = vmatprep.subr.bf16.mxu0 %v8322_v63 }
 0x479   :  { %v5972_v51 = vpop.f32.mrb[8].mxu0 }
 0x47a   :  { %v7759_v16 = vadd.f32 %v5972_v51, %v4512_v12  ;;  %v5974_v21 = vpop.f32.mrb[9].mxu0  ;;  %v8356_v51 = vld [vmem:[#allocation10 + $0x1c0] ss:$8 sps:$4 sm:$0xff]  }
 0x47b   :  { %v7760_v19 = vadd.f32 %v5974_v21, %v4516_v13  ;;  %v5976_v24 = vpop.f32.mrb[10].mxu0  ;;  %v8359_v21 = vld [vmem:[#allocation10 + $0x1d0] ss:$8 sps:$4 sm:$0xff]  }
 0x47c   :  { %v6161_v54 = vmul.f32 0.2, %v7759_v16  ;;  %v7761_v25 = vadd.f32 %v5976_v24, %v4512_v12  ;;  %v5978_v27 = vpop.f32.mrb[11].mxu0  ;;  %vm6153_vm0 = vcmp.gt.f32.partialorder %v7759_v16, 0.0  ;;  %v8353_v12 = vld [vmem:[#allocation10 + $0x1b0] ss:$8 sps:$4 sm:$0xff]  }
 0x47d   :  { %v6162_v28 = vmul.f32 0.2, %v7760_v19  ;;  %v7762_v30 = vadd.f32 %v5978_v27, %v4516_v13  ;;  %vm6154_vm1 = vcmp.gt.f32.partialorder %v7760_v19, 0.0  ;;  %v8358_v13 = vld [vmem:[#allocation10 + $0x1c4] ss:$8 sps:$4 sm:$0xff]  }
 0x47e   :  { %vm6157_vm2 = vcmp.gt.f32.partialorder %v7761_v25, 0.0  ;;  %v6165_v31 = vmul.f32 0.2, %v7761_v25  ;;  %v6169_v33 = vsel %vm6153_vm0, %v7759_v16, %v6161_v54  ;;  %v8361_v16 = vld [vmem:[#allocation10 + $0x1d4] ss:$8 sps:$4 sm:$0xff]   ;;  %v8378_v27 = vld [vmem:[#allocation13 + $0x68] sm:$0xff]  }
 0x47f   :  { %vm6158_vm3 = vcmp.gt.f32.partialorder %v7762_v30, 0.0  ;;  %v6166_v32 = vmul.f32 0.2, %v7762_v30  ;;  %v6170_v38 = vsel %vm6154_vm1, %v7760_v19, %v6162_v28  ;;  %v8364_v19 = vld [vmem:[#allocation10 + $0x1e4] ss:$8 sps:$4 sm:$0xff]   ;;  %7743 = vmatprep.subr.bf16.mxu1 %v8378_v27 }
 0x480   :  { %v6173_v35 = vsel %vm6157_vm2, %v7761_v25, %v6165_v31  ;;  %v8362_v24 = vld [vmem:[#allocation10 + $0x1e0] ss:$8 sps:$4 sm:$0xff]   ;;  %v8367_v54 = vld [vmem:[#allocation10 + $0x1f4] ss:$8 sps:$4 sm:$0xff]   ;;  %v8365_v25 = vld [vmem:[#allocation10 + $0x1f0] ss:$8 sps:$4 sm:$0xff]  }
 0x481   :  { %v6177_v36 = vpack.c.bf16 %v6173_v35, %v6169_v33  ;;  %v6174_v39 = vsel %vm6158_vm3, %v7762_v30, %v6166_v32  ;;  %v8379_v28 = vld [vmem:[#allocation13 + $0x28] sm:$0xff]   ;;  %v8380_v30 = vld [vmem:[#allocation13 + $0x70] sm:$0xff]   ;;  %v8382_v32 = vld [vmem:[#allocation13 + $0x78] sm:$0xff]  }
 0x482   :  { %v6178_v40 = vpack.c.bf16 %v6174_v39, %v6170_v38  ;;  %7744 = vmatpush3.bf16.msra.mxu1 %v8379_v28  ;;  %v8381_v31 = vld [vmem:[#allocation13 + $0x30] sm:$0xff]   ;;  %v8383_v33 = vld [vmem:[#allocation13 + $0x38] sm:$0xff]  }
 0x483   :  { %7745 = vmatprep.subr.bf16.mxu1 %v8380_v30  ;;  %v6245_v35 = vld [vmem:[#allocation12] sm:$0x3] }
 0x484   :  { %6609 = vmatprep.mubr.bf16.mxu0 %v6178_v40  ;;  %v6254_v38 = vrot.slane %v6245_v35, %v8929_v3 }
 0x485   :  { %6610 = vmatmul.mubr.bf16.vlgmr.msra.gmra.mrb[12].mxu0 %v6177_v36  ;;  %v6250_v36 = vrot.slane %v6245_v35, %v8924_v61 }
 0x486   :  { %6621 = vmatpush1.bf16.msra.mxu0 %v8320_v41  ;;  %7746 = vmatpush3.bf16.msra.mxu1 %v8381_v31 }
 0x487   :  { %6622 = vmatprep.subr.bf16.mxu0 %v8325_v14  ;;  %7747 = vmatprep.subr.bf16.mxu1 %v8382_v32 }
 0x48a   :  { %6623 = vmatpush1.bf16.msra.mxu0 %v8323_v2  ;;  %7748 = vmatpush3.bf16.msra.mxu1 %v8383_v33 }
 0x48b   :  { %6624 = vmatprep.subr.bf16.mxu0 %v8328_v42 }
 0x48e   :  { %6625 = vmatpush1.bf16.msra.mxu0 %v8326_v43 }
 0x48f   :  { %6626 = vmatprep.subr.bf16.mxu0 %v8331_v17 }
 0x492   :  { %6627 = vmatpush1.bf16.msra.mxu0 %v8329_v15 }
 0x493   :  { %6628 = vmatprep.subr.bf16.mxu0 %v8334_v44 }
 0x496   :  { %6629 = vmatpush1.bf16.msra.mxu0 %v8332_v18 }
 0x497   :  { %6630 = vmatprep.subr.bf16.mxu0 %v8337_v45 }
 0x499   :  { %v6144_v23 = vpop.f32.mrb[12].mxu1 }
 0x49a   :  { %6631 = vmatpush1.bf16.msra.mxu0 %v8335_v20  ;;  %v7763_v49 = vadd.f32 %v6144_v23, %v4520_v46  ;;  %v6146_v26 = vpop.f32.mrb[13].mxu1 }
 0x49b   :  { %v7764_v52 = vadd.f32 %v6146_v26, %v4524_v47  ;;  %v6148_v55 = vpop.f32.mrb[14].mxu1  ;;  %6632 = vmatprep.subr.bf16.mxu0 %v8340_v48 }
 0x49c   :  { %v6163_v57 = vmul.f32 0.2, %v7763_v49  ;;  %v7765_v58 = vadd.f32 %v6148_v55, %v4520_v46  ;;  %v6150_v37 = vpop.f32.mrb[15].mxu1  ;;  %vm6155_vm4 = vcmp.gt.f32.partialorder %v7763_v49, 0.0 }
 0x49d   :  { %v6164_v60 = vmul.f32 0.2, %v7764_v52  ;;  %v7766_v8 = vadd.f32 %v6150_v37, %v4524_v47  ;;  %vm6156_vm5 = vcmp.gt.f32.partialorder %v7764_v52, 0.0 }
 0x49e   :  { %vm6159_vm6 = vcmp.gt.f32.partialorder %v7765_v58, 0.0  ;;  %v6167_v29 = vmul.f32 0.2, %v7765_v58  ;;  %6633 = vmatpush1.bf16.msra.mxu0 %v8338_v50  ;;  %v6171_v63 = vsel %vm6155_vm4, %v7763_v49, %v6163_v57  ;;  %v7716_v49 = vld [vmem:[#allocation15] ss:$0 sm:$0xff] }
 0x49f   :  { %vm6160_vm7 = vcmp.gt.f32.partialorder %v7766_v8, 0.0  ;;  %v6168_v22 = vmul.f32 0.2, %v7766_v8  ;;  %6634 = vmatprep.subr.bf16.mxu0 %v8343_v56  ;;  %v6172_v0 = vsel %vm6156_vm5, %v7764_v52, %v6164_v60 }
 0x4a0   :  { %v6175_v34 = vsel %vm6159_vm6, %v7765_v58, %v6167_v29 }
 0x4a1   :  { %v6179_v59 = vpack.c.bf16 %v6175_v34, %v6171_v63  ;;  %v6176_v1 = vsel %vm6160_vm7, %v7766_v8, %v6168_v22 }
 0x4a2   :  { %6635 = vmatpush1.bf16.msra.mxu0 %v8341_v11  ;;  %v6180_v5 = vpack.c.bf16 %v6176_v1, %v6172_v0 }
 0x4a3   :  { %6636 = vmatprep.subr.bf16.mxu0 %v8346_v10 }
 0x4a4   :  { %6652 = vmatprep.mubr.bf16.mxu0 %v6180_v5 }
 0x4a6   :  { %6637 = vmatpush1.bf16.msra.mxu0 %v8344_v4 }
 0x4a7   :  { %6638 = vmatprep.subr.bf16.mxu0 %v8349_v6 }
 0x4aa   :  { %6639 = vmatpush1.bf16.msra.mxu0 %v8347_v62 }
 0x4ab   :  { %6640 = vmatprep.subr.bf16.mxu0 %v8352_v7 }
 0x4ae   :  { %6641 = vmatpush1.bf16.msra.mxu0 %v8350_v9 }
 0x4af   :  { %6642 = vmatprep.subr.bf16.mxu0 %v8355_v53 }
 0x4b2   :  { %6643 = vmatpush1.bf16.msra.mxu0 %v8353_v12 }
 0x4b3   :  { %6644 = vmatprep.subr.bf16.mxu0 %v8358_v13 }
 0x4b6   :  { %6645 = vmatpush1.bf16.msra.mxu0 %v8356_v51 }
 0x4b7   :  { %6646 = vmatprep.subr.bf16.mxu0 %v8361_v16 }
 0x4ba   :  { %6647 = vmatpush1.bf16.msra.mxu0 %v8359_v21 }
 0x4bb   :  { %6648 = vmatprep.subr.bf16.mxu0 %v8364_v19 }
 0x4be   :  { %6649 = vmatpush1.bf16.msra.mxu0 %v8362_v24 }
 0x4bf   :  { %6650 = vmatprep.subr.bf16.mxu0 %v8367_v54 }
 0x4c2   :  { %6651 = vmatpush1.bf16.msra.mxu0 %v8365_v25 }
 0x4c5   :  { %6653 = vmatmul.mubr.bf16.vlgmr.msra.gmra.mrb[12].mxu0 %v6179_v59 }
 0x598   :  { %v6654_v39 = vpop.f32.mrb[12].mxu0 }
 0x599   :  { %v7767_v40 = vadd.f32 %v6654_v39, %v6250_v36  ;;  %v6656_v41 = vpop.f32.mrb[13].mxu0 }
 0x59a   :  { %v7768_v14 = vadd.f32 %v6656_v41, %v6254_v38  ;;  %v6658_v2 = vpop.f32.mrb[14].mxu0 }
 0x59b   :  { %v6667_v42 = vmul.f32 0.2, %v7767_v40  ;;  %v7769_v43 = vadd.f32 %v6658_v2, %v6250_v36  ;;  %v6660_v17 = vpop.f32.mrb[15].mxu0  ;;  %vm6663_vm8 = vcmp.gt.f32.partialorder %v7767_v40, 0.0 }
 0x59c   :  { %v6668_v15 = vmul.f32 0.2, %v7768_v14  ;;  %v7770_v44 = vadd.f32 %v6660_v17, %v6254_v38  ;;  %vm6664_vm9 = vcmp.gt.f32.partialorder %v7768_v14, 0.0 }
 0x59d   :  { %vm6665_vm10 = vcmp.gt.f32.partialorder %v7769_v43, 0.0  ;;  %v6669_v18 = vmul.f32 0.2, %v7769_v43  ;;  %v6671_v20 = vsel %vm6663_vm8, %v7767_v40, %v6667_v42 }
 0x59e   :  { %vm6666_vm11 = vcmp.gt.f32.partialorder %v7770_v44, 0.0  ;;  %v6670_v45 = vmul.f32 0.2, %v7770_v44  ;;  %v6672_v3 = vsel %vm6664_vm9, %v7768_v14, %v6668_v15 }
 0x59f   :  { %v6673_v61 = vsel %vm6665_vm10, %v7769_v43, %v6669_v18 }
 0x5a0   :  { %v6675_v46 = vpack.c.bf16 %v6673_v61, %v6671_v20  ;;  %v6674_v47 = vsel %vm6666_vm11, %v7770_v44, %v6670_v45 }
 0x5a1   :  { %v6676_v48 = vpack.c.bf16 %v6674_v47, %v6672_v3 }
 0x5a3   :  { %6844 = vmatprep.mubr.bf16.mxu1 %v6676_v48 }
 0x5a4   :  { %6845 = vmatmul.mubr.bf16.vlgmr.msra.gmra.mrb[16].mxu1 %v6675_v46 }
 0x677   :  { %v7749_v23 = vpop.f32.mrb[16].mxu1 }
 0x678   :  { %v7750_v26 = vpop.f32.mrb[17].mxu1 }
 0x679   :  { %v7751_v50 = vadd.f32 %v7750_v26, %v7749_v23  ;;  %v7752_v52 = vpop.f32.mrb[18].mxu1 }
 0x67a   :  { %v7753_v55 = vpop.f32.mrb[19].mxu1 }
 0x67b   :  { %v6847_v56 = vadd.f32 %v7751_v50, %v7716_v49  ;;  %v7754_v57 = vadd.f32 %v7753_v55, %v7752_v52 }
 0x67d   :  { %v6853_v58 = vsub.f32 0.0, %v6847_v56  ;;  %v6850_v37 = vadd.f32 %v7754_v57, %v7716_v49 }
 0x67f   :  { %v6855_v60 = vmul.f32 1.442695, %v6853_v58  ;;  %v6854_v8 = vsub.f32 0.0, %v6850_v37 }
 0x681   :  { %8384 = vpow2.f32 %v6855_v60  ;;  %v6857_v29 = vmul.f32 1.442695, %v6854_v8 }
 0x683   :  { %8386 = vpow2.f32 %v6857_v29 }
 0x68b   :  { %v8385_v11 = vpop.eup %8384 }
 0x68c   :  { %v6859_v22 = vadd.f32 1.0, %v8385_v11 }
 0x68d   :  { %v8387_v10 = vpop.eup %8386 }
 0x68e   :  { %8388 = vrcp.f32 %v6859_v22  ;;  %v6860_v63 = vadd.f32 1.0, %v8387_v10 }
 0x690   :  { %8390 = vrcp.f32 %v6860_v63 }
 0x698   :  { %v8389_v34 = vpop.eup %8388 }
 0x699   :  { %6865 = vst [vmem:[%s9017_s11] sm:$0xff] %v8389_v34 }
 0x69a   :  { %v8391_v59 = vpop.eup %8390 }
 0x69b   :  { %6866 = vst [vmem:[%s9017_s11 + $0x8] sm:$0xff] %v8391_v59 }
 0x69c   :  { %6871 = vsyncpa [#allocation3], 1 }
 0x69d   :  { %6872 = vsyncpa [#allocation5], 1 }
 0x69e   :  { %6873 = vsyncpa [#allocation8], 1 }
 0x69f   :  { %6874 = vsyncpa [#allocation11], 1 }
 0x6a0   :  { %6875 = vsyncpa [#allocation14], 1 }

</bundles_post_ra>
